<compile_context>
chip_gen: v7x
topology: tpu7x:2x2x1
jax: 0.10.0
libtpu: 0.0.40
codegen_flags: <defaults>
</compile_context>

<pallas_src>
import math

import numpy as np
import jax
import jax.numpy as jnp
from jax import lax
from jax.experimental import pallas as pl
from jax.experimental.pallas import tpu as pltpu

_NEG_LARGE = -1e30   # finite "-inf" for the running softmax max (avoids inf-inf)
_MASK_BIAS = -1e9    # harvardnlp masked_fill value
# Note: if an entire mask row is zero, softmax degrades to ~uniform over masked
# keys (same as the reference's -1e9 path): no NaN, output garbage-by-design.


def _layer_norm(v, a, b, eps):
    """LayerNormP: a * (v - mean) / (std_biased + eps) + b  (exact divide)."""
    mean = jnp.mean(v, axis=-1, keepdims=True)
    var = jnp.mean((v - mean) ** 2, axis=-1, keepdims=True)        # biased
    inv = 1.0 / (jnp.sqrt(var) + eps)
    return a * (v - mean) * inv + b


# ---------------------------------------------------------------------------
# Kernel A: LN1(x) @ [Wq/sqrt(dk) | Wk | Wv] + [bq/sqrt(dk) | bk | bv] -> q,k,v
# ---------------------------------------------------------------------------
def _make_qkv_kernel(d_model, eps):
    def kernel(x_ref, a_ref, b_ref, w_ref, bias_ref, q_ref, k_ref, v_ref):
        x = x_ref[0]                                               # (TS, D) f32
        xn = _layer_norm(x, a_ref[...], b_ref[...], eps).astype(jnp.bfloat16)
        qkv = jnp.dot(xn, w_ref[...], preferred_element_type=jnp.float32) + bias_ref[...]
        qkv = qkv.astype(jnp.bfloat16)                             # (TS, 3D)
        q_ref[0] = qkv[:, :d_model]
        k_ref[0] = qkv[:, d_model:2 * d_model]
        v_ref[0] = qkv[:, 2 * d_model:]
    return kernel


# ---------------------------------------------------------------------------
# Kernel B: flash attention (online softmax over KV tiles) + output projection
#           + residual + LN2 + D_FF-tiled FFN + residual.
# ---------------------------------------------------------------------------
def _make_attn_ffn_kernel(n_heads, dk, n_ff_tiles, eps):
    f32, bf16 = jnp.float32, jnp.bfloat16

    def kernel(x_ref, q_ref, k_ref, v_ref, mask_ref,
               wo_ref, bo_ref, ln2a_ref, ln2b_ref,
               w1_ref, b1_ref, w2_ref, b2_ref,
               o_ref, m_sc, l_sc, acc_sc):
        kv = pl.program_id(2)

        @pl.when(kv == 0)
        def _init():
            m_sc[...] = jnp.full_like(m_sc, _NEG_LARGE)
            l_sc[...] = jnp.zeros_like(l_sc)
            acc_sc[...] = jnp.zeros_like(acc_sc)

        # additive mask bias: computed once per KV tile, shared by every head.
        bias = jnp.where(mask_ref[0] > 0, 0.0, _MASK_BIAS).astype(f32)    # (1, TK)

        q = q_ref[0]   # (TQ, D) bf16, already scaled by 1/sqrt(dk)
        k = k_ref[0]   # (TK, D) bf16
        v = v_ref[0]   # (TK, D) bf16

        # Per-head online softmax. Static loop over heads: all state that
        # crosses iterations / grid steps lives in VMEM scratch, and per-head
        # temporaries (s, p, ctx) are dead at the end of each iteration.
        for h in range(n_heads):
            lo = h * dk
            qh = q[:, lo:lo + dk]
            kh = k[:, lo:lo + dk]
            vh = v[:, lo:lo + dk]
            # q @ k^T without a transpose: contract the last axis of both sides.
            s = lax.dot_general(qh, kh, (((1,), (1,)), ((), ())),
                                preferred_element_type=f32) + bias        # (TQ, TK)
            m_prev = m_sc[h]                                              # (TQ, 1)
            m_new = jnp.maximum(m_prev, jnp.max(s, axis=-1, keepdims=True))
            alpha = jnp.exp(m_prev - m_new)                               # (TQ, 1)
            p = jnp.exp(s - m_new)                                        # f32
            l_sc[h] = alpha * l_sc[h] + jnp.sum(p, axis=-1, keepdims=True)
            acc_sc[:, lo:lo + dk] = alpha * acc_sc[:, lo:lo + dk] + jnp.dot(
                p.astype(bf16), vh, preferred_element_type=f32)
            m_sc[h] = m_new

        @pl.when(kv == pl.num_programs(2) - 1)
        def _finalize():
            # per-head softmax normalisation (reciprocal rides the EUP slot)
            for h in range(n_heads):
                lo = h * dk
                inv = pl.reciprocal(l_sc[h], approx=True)                 # (TQ, 1)
                acc_sc[:, lo:lo + dk] = acc_sc[:, lo:lo + dk] * inv
            # ONE D-wide output projection (heads are already stacked along D).
            attn = jnp.dot(acc_sc[...].astype(bf16), wo_ref[...],
                           preferred_element_type=f32)                    # (TQ, D)
            x1 = x_ref[0] + attn + bo_ref[...]                            # residual

            xn2 = _layer_norm(x1, ln2a_ref[...], ln2b_ref[...], eps).astype(bf16)
            tq, dm = xn2.shape

            def ff_step(t, ff):
                # (TQ, TF) chunk of the hidden layer; never build (TQ, D_FF).
                hid = jnp.dot(xn2, w1_ref[t], preferred_element_type=f32) + b1_ref[t]
                hid = jnp.maximum(hid, 0.0).astype(bf16)                  # ReLU in f32
                return ff + jnp.dot(hid, w2_ref[t], preferred_element_type=f32)

            ff = lax.fori_loop(0, n_ff_tiles, ff_step,
                               jnp.zeros((tq, dm), f32), unroll=True)
            o_ref[0] = x1 + ff + b2_ref[...]                              # residual
    return kernel


def encoder_layer_pallas(x, mask, params, *, n_heads, eps=1e-6,
                         block_q=256, block_kv=512, block_seq=256, block_ff=512,
                         single_buffer_weights=True,
                         vmem_limit_bytes=64 * 1024 * 1024):
    """x: (B, S, D) f32, mask: (B, 1, S) f32 (1 = keep, 0 = masked)."""
    B, S, D = x.shape
    d_ff = params["w1"].shape[1]
    assert D % n_heads == 0
    dk = D // n_heads
    scale = 1.0 / math.sqrt(dk)

    ts = min(block_seq, S)
    tq = min(block_q, S)
    tk = min(block_kv, S)
    tf = min(block_ff, d_ff)
    assert S % ts == 0 and S % tq == 0 and S % tk == 0, "seq tiles must divide S"
    assert d_ff % tf == 0, "FF tile must divide d_ff"
    nf = d_ff // tf

    f32, bf16 = jnp.float32, jnp.bfloat16

    # ---- wrapper-side weight packing (runs once under jit) -----------------
    # fused QKV weight with 1/sqrt(dk) folded into the Q columns
    wqkv = jnp.concatenate([params["wq"] * scale, params["wk"], params["wv"]],
                           axis=1).astype(bf16)                            # (D, 3D)
    bqkv = jnp.concatenate([params["bq"] * scale, params["bk"], params["bv"]],
                           axis=1).astype(f32)                             # (1, 3D)
    # D_FF-tiled FFN weights (leading tile axis -> fori_loop indexes whole slabs,
    # no dynamic lane-dim slicing inside the kernel).
    w1t = params["w1"].reshape(D, nf, tf).transpose(1, 0, 2).astype(bf16)  # (nf, D, tf)
    b1t = params["b1"].reshape(1, nf, tf).transpose(1, 0, 2).astype(f32)   # (nf, 1, tf)
    w2t = params["w2"].reshape(nf, tf, D).astype(bf16)                     # (nf, tf, D)
    wo = params["wo"].astype(bf16)
    bo = params["bo"].astype(f32)
    b2 = params["b2"].astype(f32)
    ln1_a = params["ln1_a"].astype(f32); ln1_b = params["ln1_b"].astype(f32)
    ln2_a = params["ln2_a"].astype(f32); ln2_b = params["ln2_b"].astype(f32)

    def const_spec(arr):
        nd = arr.ndim
        idx = lambda *_args, _nd=nd: (0,) * _nd
        if single_buffer_weights:
            # constant index_map -> fetched once; single-buffer to halve weight VMEM.
            return pl.BlockSpec(arr.shape, idx,
                                pipeline_mode=pl.Buffered(buffer_count=1))
        return pl.BlockSpec(arr.shape, idx)

    # ---- kernel A: LN1 + fused QKV projection ------------------------------
    act = jax.ShapeDtypeStruct((B, S, D), bf16)
    q, k, v = pl.pallas_call(
        _make_qkv_kernel(D, eps),
        out_shape=(act, act, act),
        grid=(B, S // ts),
        in_specs=[
            pl.BlockSpec((1, ts, D), lambda b, s: (b, s, 0)),
            const_spec(ln1_a), const_spec(ln1_b),
            const_spec(wqkv), const_spec(bqkv),
        ],
        out_specs=(pl.BlockSpec((1, ts, D), lambda b, s: (b, s, 0)),
                   pl.BlockSpec((1, ts, D), lambda b, s: (b, s, 0)),
                   pl.BlockSpec((1, ts, D), lambda b, s: (b, s, 0))),
        compiler_params=pltpu.CompilerParams(
            dimension_semantics=("parallel", "parallel"),
            vmem_limit_bytes=vmem_limit_bytes),
    )(x, ln1_a, ln1_b, wqkv, bqkv)

    # ---- kernel B: flash attention + out-proj + LN2 + tiled FFN ------------
    out = pl.pallas_call(
        _make_attn_ffn_kernel(n_heads, dk, nf, eps),
        out_shape=jax.ShapeDtypeStruct((B, S, D), f32),
        grid=(B, S // tq, S // tk),
        in_specs=[
            pl.BlockSpec((1, tq, D), lambda b, i, j: (b, i, 0)),    # x (residual)
            pl.BlockSpec((1, tq, D), lambda b, i, j: (b, i, 0)),    # q
            pl.BlockSpec((1, tk, D), lambda b, i, j: (b, j, 0)),    # k
            pl.BlockSpec((1, tk, D), lambda b, i, j: (b, j, 0)),    # v
            pl.BlockSpec((1, 1, tk), lambda b, i, j: (b, 0, j)),    # mask
            const_spec(wo), const_spec(bo),
            const_spec(ln2_a), const_spec(ln2_b),
            const_spec(w1t), const_spec(b1t), const_spec(w2t), const_spec(b2),
        ],
        out_specs=pl.BlockSpec((1, tq, D), lambda b, i, j: (b, i, 0)),
        scratch_shapes=[
            pltpu.VMEM((n_heads, tq, 1), f32),    # running max  m
            pltpu.VMEM((n_heads, tq, 1), f32),    # running sum  l
            pltpu.VMEM((tq, D), f32),             # per-head ctx stacked along D
        ],
        compiler_params=pltpu.CompilerParams(
            dimension_semantics=("parallel", "parallel", "arbitrary"),
            vmem_limit_bytes=vmem_limit_bytes),
    )(x, q, k, v, mask, wo, bo, ln2_a, ln2_b, w1t, b1t, w2t, b2)
    return out


def encoder_layer_reference(x, mask, params, *, n_heads, eps=1e-6):
    """Pure-JAX (f32) mirror of the PyTorch EncoderLayerP forward (eval mode)."""
    def layer_norm(v, a, b):
        mean = jnp.mean(v, axis=-1, keepdims=True)
        std = jnp.sqrt(jnp.mean((v - mean) ** 2, axis=-1, keepdims=True))
        return a[0] * (v - mean) / (std + eps) + b[0]

    B, S, D = x.shape
    dk = D // n_heads

    xn = layer_norm(x, params["ln1_a"], params["ln1_b"])
    q = xn @ params["wq"] + params["bq"][0]
    k = xn @ params["wk"] + params["bk"][0]
    v = xn @ params["wv"] + params["bv"][0]

    def split(t):  # (B,S,D) -> (B,H,S,dk)
        return t.reshape(B, S, n_heads, dk).transpose(0, 2, 1, 3)

    qh, kh, vh = split(q), split(k), split(v)
    scores = jnp.einsum("bhqd,bhkd->bhqk", qh, kh) / math.sqrt(dk)
    m = mask[:, None, :, :]  # (B,1,1,S)
    scores = jnp.where(m > 0, scores, -1e9)
    p = jax.nn.softmax(scores, axis=-1)
    o = jnp.einsum("bhqk,bhkd->bhqd", p, vh)
    o = o.transpose(0, 2, 1, 3).reshape(B, S, D)
    attn_out = o @ params["wo"] + params["bo"][0]
    x1 = x + attn_out

    xn2 = layer_norm(x1, params["ln2_a"], params["ln2_b"])
    hid = jax.nn.relu(xn2 @ params["w1"] + params["b1"][0])
    ff = hid @ params["w2"] + params["b2"][0]
    return x1 + ff


if __name__ == "__main__":
    B, S, D, H, D_FF = 2, 8, 32, 4, 64   # small demo shapes; tune at lane-dense shapes

    key = jax.random.PRNGKey(0)
    keys = jax.random.split(key, 13)

    def init(k, shape, scale=0.1):
        return (scale * jax.random.normal(k, shape)).astype(jnp.float32)

    params = {
        "ln1_a": jnp.ones((1, D), jnp.float32),
        "ln1_b": jnp.zeros((1, D), jnp.float32),
        "wq": init(keys[0], (D, D)), "bq": init(keys[1], (1, D)),
        "wk": init(keys[2], (D, D)), "bk": init(keys[3], (1, D)),
        "wv": init(keys[4], (D, D)), "bv": init(keys[5], (1, D)),
        "wo": init(keys[6], (D, D)), "bo": init(keys[7], (1, D)),
        "ln2_a": jnp.ones((1, D), jnp.float32),
        "ln2_b": jnp.zeros((1, D), jnp.float32),
        "w1": init(keys[8], (D, D_FF)), "b1": init(keys[9], (1, D_FF)),
        "w2": init(keys[10], (D_FF, D)), "b2": init(keys[11], (1, D)),
    }

    x = jax.random.normal(keys[12], (B, S, D), jnp.float32)
    # src-style mask: batch 0 attends to all 8 positions, batch 1 to the first 5
    lengths = jnp.array([8, 5])
    mask = (jnp.arange(S)[None, None, :] < lengths[:, None, None]).astype(jnp.float32)

    run = jax.jit(lambda x_, m_, p_: encoder_layer_pallas(x_, m_, p_, n_heads=H))
    try:
        out = jax.block_until_ready(run(x, mask, params))
    except Exception:
        # pl.Buffered(1) single-buffered weights are a newer pipeline feature;
        # retry with default double-buffered weights if this build rejects it.
        run = jax.jit(lambda x_, m_, p_: encoder_layer_pallas(
            x_, m_, p_, n_heads=H, single_buffer_weights=False))
        out = jax.block_until_ready(run(x, mask, params))

    ref = encoder_layer_reference(x, mask, params, n_heads=H)
    # bf16 MXU operands + approx softmax reciprocal -> slightly loose tolerance
    np.testing.assert_allclose(np.asarray(out), np.asarray(ref), rtol=2e-2, atol=2e-2)

    print("KERNEL_OK")
</pallas_src>

<mosaic_0001>
module attributes {stable_mosaic.version = 11 : i64} {
  func.func @kernel(%arg0: i32, %arg1: i32, %arg2: memref<1x8x32xf32, #tpu.memory_space<vmem>>, %arg3: memref<1x32xf32, #tpu.memory_space<vmem>>, %arg4: memref<1x32xf32, #tpu.memory_space<vmem>>, %arg5: memref<32x96xbf16, #tpu.memory_space<vmem>>, %arg6: memref<1x96xf32, #tpu.memory_space<vmem>>, %arg7: memref<1x8x32xbf16, #tpu.memory_space<vmem>>, %arg8: memref<1x8x32xbf16, #tpu.memory_space<vmem>>, %arg9: memref<1x8x32xbf16, #tpu.memory_space<vmem>>) attributes {dimension_semantics = [#tpu.dimension_semantics<parallel>, #tpu.dimension_semantics<parallel>], iteration_bounds = array<i64: 2, 1>, scalar_prefetch = 0 : i64, scratch_operands = 0 : i64, tpu.core_type = #tpu.core_type<tc>, window_params = [{transform_indices = @transform_0, window_bounds = array<i64: 1, 8, 32>}, {pipeline_mode = #tpu.pipeline_mode<synchronous>, transform_indices = @transform_1, window_bounds = array<i64: 1, 32>}, {pipeline_mode = #tpu.pipeline_mode<synchronous>, transform_indices = @transform_2, window_bounds = array<i64: 1, 32>}, {pipeline_mode = #tpu.pipeline_mode<synchronous>, transform_indices = @transform_3, window_bounds = array<i64: 32, 96>}, {pipeline_mode = #tpu.pipeline_mode<synchronous>, transform_indices = @transform_4, window_bounds = array<i64: 1, 96>}, {transform_indices = @transform_5, window_bounds = array<i64: 1, 8, 32>}, {transform_indices = @transform_6, window_bounds = array<i64: 1, 8, 32>}, {transform_indices = @transform_7, window_bounds = array<i64: 1, 8, 32>}]} {
    %c0 = arith.constant 0 : index
    %c0_0 = arith.constant 0 : index
    %c0_1 = arith.constant 0 : index
    %0 = vector.load %arg2[%c0, %c0_0, %c0_1] : memref<1x8x32xf32, #tpu.memory_space<vmem>>, vector<1x8x32xf32>
    %1 = vector.shape_cast %0 : vector<1x8x32xf32> to vector<8x32xf32>
    %c0_2 = arith.constant 0 : index
    %c0_3 = arith.constant 0 : index
    %2 = vector.load %arg3[%c0_2, %c0_3] : memref<1x32xf32, #tpu.memory_space<vmem>>, vector<1x32xf32>
    %c0_4 = arith.constant 0 : index
    %c0_5 = arith.constant 0 : index
    %3 = vector.load %arg4[%c0_4, %c0_5] : memref<1x32xf32, #tpu.memory_space<vmem>>, vector<1x32xf32>
    %cst = arith.constant dense<0.000000e+00> : vector<8xf32>
    %4 = vector.multi_reduction <add>, %1, %cst [1] : vector<8x32xf32> to vector<8xf32>
    %5 = vector.shape_cast %4 : vector<8xf32> to vector<8x1xf32>
    %cst_6 = arith.constant 3.200000e+01 : f32
    %6 = vector.broadcast %cst_6 : f32 to vector<8x1xf32>
    %7 = arith.divf %5, %6 : vector<8x1xf32>
    %8 = vector.broadcast %7 : vector<8x1xf32> to vector<8x32xf32>
    %9 = arith.subf %1, %8 : vector<8x32xf32>
    %10 = arith.mulf %9, %9 : vector<8x32xf32>
    %cst_7 = arith.constant dense<0.000000e+00> : vector<8xf32>
    %11 = vector.multi_reduction <add>, %10, %cst_7 [1] : vector<8x32xf32> to vector<8xf32>
    %12 = vector.shape_cast %11 : vector<8xf32> to vector<8x1xf32>
    %cst_8 = arith.constant 3.200000e+01 : f32
    %13 = vector.broadcast %cst_8 : f32 to vector<8x1xf32>
    %14 = arith.divf %12, %13 : vector<8x1xf32>
    %15 = math.sqrt %14 : vector<8x1xf32>
    %cst_9 = arith.constant 9.99999997E-7 : f32
    %16 = vector.broadcast %cst_9 : f32 to vector<8x1xf32>
    %17 = arith.addf %15, %16 : vector<8x1xf32>
    %cst_10 = arith.constant 1.000000e+00 : f32
    %18 = vector.broadcast %cst_10 : f32 to vector<8x1xf32>
    %19 = arith.divf %18, %17 : vector<8x1xf32>
    %20 = vector.broadcast %7 : vector<8x1xf32> to vector<8x32xf32>
    %21 = arith.subf %1, %20 : vector<8x32xf32>
    %22 = vector.broadcast %2 : vector<1x32xf32> to vector<8x32xf32>
    %23 = arith.mulf %22, %21 : vector<8x32xf32>
    %24 = vector.broadcast %19 : vector<8x1xf32> to vector<8x32xf32>
    %25 = arith.mulf %23, %24 : vector<8x32xf32>
    %26 = vector.broadcast %3 : vector<1x32xf32> to vector<8x32xf32>
    %27 = arith.addf %25, %26 : vector<8x32xf32>
    %28 = arith.truncf %27 : vector<8x32xf32> to vector<8x32xbf16>
    %c0_11 = arith.constant 0 : index
    %c0_12 = arith.constant 0 : index
    %29 = vector.load %arg5[%c0_11, %c0_12] : memref<32x96xbf16, #tpu.memory_space<vmem>>, vector<32x96xbf16>
    %cst_13 = arith.constant dense<0.000000e+00> : vector<8x96xf32>
    %30 = tpu.matmul %28, %29, %cst_13 {dimension_numbers = #tpu.dot_dimension_numbers<[1], [0], [0], [1], [0, 0, 1, 1], [], []>} : vector<8x32xbf16>, vector<32x96xbf16>, vector<8x96xf32> -> vector<8x96xf32>
    %c0_14 = arith.constant 0 : index
    %c0_15 = arith.constant 0 : index
    %31 = vector.load %arg6[%c0_14, %c0_15] : memref<1x96xf32, #tpu.memory_space<vmem>>, vector<1x96xf32>
    %32 = vector.broadcast %31 : vector<1x96xf32> to vector<8x96xf32>
    %33 = arith.addf %30, %32 : vector<8x96xf32>
    %34 = arith.truncf %33 : vector<8x96xf32> to vector<8x96xbf16>
    %35 = vector.extract_strided_slice %34 {offsets = [0, 0], sizes = [8, 32], strides = [1, 1]} : vector<8x96xbf16> to vector<8x32xbf16>
    %c0_16 = arith.constant 0 : index
    %c0_17 = arith.constant 0 : index
    %c0_18 = arith.constant 0 : index
    %36 = vector.load %arg7[%c0_16, %c0_17, %c0_18] : memref<1x8x32xbf16, #tpu.memory_space<vmem>>, vector<1x8x32xbf16>
    %37 = vector.shape_cast %36 : vector<1x8x32xbf16> to vector<8x32xbf16>
    %38 = vector.shape_cast %35 : vector<8x32xbf16> to vector<1x8x32xbf16>
    tpu.vector_store %arg7[%c0_16, %c0_17, %c0_18], %38 {strides = array<i32>} : memref<1x8x32xbf16, #tpu.memory_space<vmem>>, vector<1x8x32xbf16>,
    %39 = vector.extract_strided_slice %34 {offsets = [0, 32], sizes = [8, 32], strides = [1, 1]} : vector<8x96xbf16> to vector<8x32xbf16>
    %c0_19 = arith.constant 0 : index
    %c0_20 = arith.constant 0 : index
    %c0_21 = arith.constant 0 : index
    %40 = vector.load %arg8[%c0_19, %c0_20, %c0_21] : memref<1x8x32xbf16, #tpu.memory_space<vmem>>, vector<1x8x32xbf16>
    %41 = vector.shape_cast %40 : vector<1x8x32xbf16> to vector<8x32xbf16>
    %42 = vector.shape_cast %39 : vector<8x32xbf16> to vector<1x8x32xbf16>
    tpu.vector_store %arg8[%c0_19, %c0_20, %c0_21], %42 {strides = array<i32>} : memref<1x8x32xbf16, #tpu.memory_space<vmem>>, vector<1x8x32xbf16>,
    %43 = vector.extract_strided_slice %34 {offsets = [0, 64], sizes = [8, 32], strides = [1, 1]} : vector<8x96xbf16> to vector<8x32xbf16>
    %c0_22 = arith.constant 0 : index
    %c0_23 = arith.constant 0 : index
    %c0_24 = arith.constant 0 : index
    %44 = vector.load %arg9[%c0_22, %c0_23, %c0_24] : memref<1x8x32xbf16, #tpu.memory_space<vmem>>, vector<1x8x32xbf16>
    %45 = vector.shape_cast %44 : vector<1x8x32xbf16> to vector<8x32xbf16>
    %46 = vector.shape_cast %43 : vector<8x32xbf16> to vector<1x8x32xbf16>
    tpu.vector_store %arg9[%c0_22, %c0_23, %c0_24], %46 {strides = array<i32>} : memref<1x8x32xbf16, #tpu.memory_space<vmem>>, vector<1x8x32xbf16>,
    return
  }
  func.func @transform_0(%arg0: i32, %arg1: i32) -> (i32, i32, i32) {
    %c0_i32 = arith.constant 0 : i32
    %c0_i32_0 = arith.constant 0 : i32
    return %arg0, %arg1, %c0_i32 : i32, i32, i32
  }
  func.func @transform_1(%arg0: i32, %arg1: i32) -> (i32, i32) {
    %c0_i32 = arith.constant 0 : i32
    %c0_i32_0 = arith.constant 0 : i32
    %c0_i32_1 = arith.constant 0 : i32
    return %c0_i32, %c0_i32_0 : i32, i32
  }
  func.func @transform_2(%arg0: i32, %arg1: i32) -> (i32, i32) {
    %c0_i32 = arith.constant 0 : i32
    %c0_i32_0 = arith.constant 0 : i32
    %c0_i32_1 = arith.constant 0 : i32
    return %c0_i32, %c0_i32_0 : i32, i32
  }
  func.func @transform_3(%arg0: i32, %arg1: i32) -> (i32, i32) {
    %c0_i32 = arith.constant 0 : i32
    %c0_i32_0 = arith.constant 0 : i32
    %c0_i32_1 = arith.constant 0 : i32
    return %c0_i32, %c0_i32_0 : i32, i32
  }
  func.func @transform_4(%arg0: i32, %arg1: i32) -> (i32, i32) {
    %c0_i32 = arith.constant 0 : i32
    %c0_i32_0 = arith.constant 0 : i32
    %c0_i32_1 = arith.constant 0 : i32
    return %c0_i32, %c0_i32_0 : i32, i32
  }
  func.func @transform_5(%arg0: i32, %arg1: i32) -> (i32, i32, i32) {
    %c0_i32 = arith.constant 0 : i32
    %c0_i32_0 = arith.constant 0 : i32
    return %arg0, %arg1, %c0_i32 : i32, i32, i32
  }
  func.func @transform_6(%arg0: i32, %arg1: i32) -> (i32, i32, i32) {
    %c0_i32 = arith.constant 0 : i32
    %c0_i32_0 = arith.constant 0 : i32
    return %arg0, %arg1, %c0_i32 : i32, i32, i32
  }
  func.func @transform_7(%arg0: i32, %arg1: i32) -> (i32, i32, i32) {
    %c0_i32 = arith.constant 0 : i32
    %c0_i32_0 = arith.constant 0 : i32
    return %arg0, %arg1, %c0_i32 : i32, i32, i32
  }
}

module attributes {stable_mosaic.version = 11 : i64} {
  func.func @kernel(%arg0: i32, %arg1: i32, %arg2: i32, %arg3: memref<1x8x32xf32, #tpu.memory_space<vmem>>, %arg4: memref<1x8x32xbf16, #tpu.memory_space<vmem>>, %arg5: memref<1x8x32xbf16, #tpu.memory_space<vmem>>, %arg6: memref<1x8x32xbf16, #tpu.memory_space<vmem>>, %arg7: memref<1x1x8xf32, #tpu.memory_space<vmem>>, %arg8: memref<32x32xbf16, #tpu.memory_space<vmem>>, %arg9: memref<1x32xf32, #tpu.memory_space<vmem>>, %arg10: memref<1x32xf32, #tpu.memory_space<vmem>>, %arg11: memref<1x32xf32, #tpu.memory_space<vmem>>, %arg12: memref<1x32x64xbf16, #tpu.memory_space<vmem>>, %arg13: memref<1x1x64xf32, #tpu.memory_space<vmem>>, %arg14: memref<1x64x32xbf16, #tpu.memory_space<vmem>>, %arg15: memref<1x32xf32, #tpu.memory_space<vmem>>, %arg16: memref<1x8x32xf32, #tpu.memory_space<vmem>>, %arg17: memref<4x8x1xf32, #tpu.memory_space<vmem>>, %arg18: memref<4x8x1xf32, #tpu.memory_space<vmem>>, %arg19: memref<8x32xf32, #tpu.memory_space<vmem>>) attributes {dimension_semantics = [#tpu.dimension_semantics<parallel>, #tpu.dimension_semantics<parallel>, #tpu.dimension_semantics<arbitrary>], iteration_bounds = array<i64: 2, 1, 1>, scalar_prefetch = 0 : i64, scratch_operands = 3 : i64, tpu.core_type = #tpu.core_type<tc>, window_params = [{transform_indices = @transform_0, window_bounds = array<i64: 1, 8, 32>}, {transform_indices = @transform_1, window_bounds = array<i64: 1, 8, 32>}, {transform_indices = @transform_2, window_bounds = array<i64: 1, 8, 32>}, {transform_indices = @transform_3, window_bounds = array<i64: 1, 8, 32>}, {transform_indices = @transform_4, window_bounds = array<i64: 1, 1, 8>}, {pipeline_mode = #tpu.pipeline_mode<synchronous>, transform_indices = @transform_5, window_bounds = array<i64: 32, 32>}, {pipeline_mode = #tpu.pipeline_mode<synchronous>, transform_indices = @transform_6, window_bounds = array<i64: 1, 32>}, {pipeline_mode = #tpu.pipeline_mode<synchronous>, transform_indices = @transform_7, window_bounds = array<i64: 1, 32>}, {pipeline_mode = #tpu.pipeline_mode<synchronous>, transform_indices = @transform_8, window_bounds = array<i64: 1, 32>}, {pipeline_mode = #tpu.pipeline_mode<synchronous>, transform_indices = @transform_9, window_bounds = array<i64: 1, 32, 64>}, {pipeline_mode = #tpu.pipeline_mode<synchronous>, transform_indices = @transform_10, window_bounds = array<i64: 1, 1, 64>}, {pipeline_mode = #tpu.pipeline_mode<synchronous>, transform_indices = @transform_11, window_bounds = array<i64: 1, 64, 32>}, {pipeline_mode = #tpu.pipeline_mode<synchronous>, transform_indices = @transform_12, window_bounds = array<i64: 1, 32>}, {transform_indices = @transform_13, window_bounds = array<i64: 1, 8, 32>}]} {
    %c0_i32 = arith.constant 0 : i32
    %0 = arith.cmpi eq, %arg2, %c0_i32 : i32
    %1 = arith.extui %0 : i1 to i32
    %c0_i32_0 = arith.constant 0 : i32
    %2 = arith.cmpi ne, %1, %c0_i32_0 : i32
    scf.if %2 {
      %cst_90 = arith.constant -1.000000e+30 : f32
      %159 = vector.broadcast %cst_90 : f32 to vector<4x8x1xf32>
      %c0_91 = arith.constant 0 : index
      %c0_92 = arith.constant 0 : index
      %c0_93 = arith.constant 0 : index
      %160 = vector.load %arg17[%c0_91, %c0_92, %c0_93] : memref<4x8x1xf32, #tpu.memory_space<vmem>>, vector<4x8x1xf32>
      tpu.vector_store %arg17[%c0_91, %c0_92, %c0_93], %159 {strides = array<i32>} : memref<4x8x1xf32, #tpu.memory_space<vmem>>, vector<4x8x1xf32>,
      %cst_94 = arith.constant 0.000000e+00 : f32
      %161 = vector.broadcast %cst_94 : f32 to vector<4x8x1xf32>
      %c0_95 = arith.constant 0 : index
      %c0_96 = arith.constant 0 : index
      %c0_97 = arith.constant 0 : index
      %162 = vector.load %arg18[%c0_95, %c0_96, %c0_97] : memref<4x8x1xf32, #tpu.memory_space<vmem>>, vector<4x8x1xf32>
      tpu.vector_store %arg18[%c0_95, %c0_96, %c0_97], %161 {strides = array<i32>} : memref<4x8x1xf32, #tpu.memory_space<vmem>>, vector<4x8x1xf32>,
      %cst_98 = arith.constant 0.000000e+00 : f32
      %163 = vector.broadcast %cst_98 : f32 to vector<8x32xf32>
      %c0_99 = arith.constant 0 : index
      %c0_100 = arith.constant 0 : index
      %164 = vector.load %arg19[%c0_99, %c0_100] : memref<8x32xf32, #tpu.memory_space<vmem>>, vector<8x32xf32>
      tpu.vector_store %arg19[%c0_99, %c0_100], %163 {strides = array<i32>} : memref<8x32xf32, #tpu.memory_space<vmem>>, vector<8x32xf32>,
    } else {
    }
    %c0 = arith.constant 0 : index
    %c0_1 = arith.constant 0 : index
    %c0_2 = arith.constant 0 : index
    %3 = vector.load %arg7[%c0, %c0_1, %c0_2] : memref<1x1x8xf32, #tpu.memory_space<vmem>>, vector<1x1x8xf32>
    %4 = vector.shape_cast %3 : vector<1x1x8xf32> to vector<1x8xf32>
    %cst = arith.constant 0.000000e+00 : f32
    %5 = vector.broadcast %cst : f32 to vector<1x8xf32>
    %6 = arith.cmpf ogt, %4, %5 : vector<1x8xf32>
    %cst_3 = arith.constant 0.000000e+00 : f32
    %cst_4 = arith.constant -1.000000e+09 : f32
    %7 = vector.broadcast %cst_3 : f32 to vector<1x8xf32>
    %8 = vector.broadcast %cst_4 : f32 to vector<1x8xf32>
    %9 = arith.select %6, %7, %8 : vector<1x8xi1>, vector<1x8xf32>
    %c0_5 = arith.constant 0 : index
    %c0_6 = arith.constant 0 : index
    %c0_7 = arith.constant 0 : index
    %10 = vector.load %arg4[%c0_5, %c0_6, %c0_7] : memref<1x8x32xbf16, #tpu.memory_space<vmem>>, vector<1x8x32xbf16>
    %11 = vector.shape_cast %10 : vector<1x8x32xbf16> to vector<8x32xbf16>
    %c0_8 = arith.constant 0 : index
    %c0_9 = arith.constant 0 : index
    %c0_10 = arith.constant 0 : index
    %12 = vector.load %arg5[%c0_8, %c0_9, %c0_10] : memref<1x8x32xbf16, #tpu.memory_space<vmem>>, vector<1x8x32xbf16>
    %13 = vector.shape_cast %12 : vector<1x8x32xbf16> to vector<8x32xbf16>
    %c0_11 = arith.constant 0 : index
    %c0_12 = arith.constant 0 : index
    %c0_13 = arith.constant 0 : index
    %14 = vector.load %arg6[%c0_11, %c0_12, %c0_13] : memref<1x8x32xbf16, #tpu.memory_space<vmem>>, vector<1x8x32xbf16>
    %15 = vector.shape_cast %14 : vector<1x8x32xbf16> to vector<8x32xbf16>
    %16 = vector.extract_strided_slice %11 {offsets = [0, 0], sizes = [8, 8], strides = [1, 1]} : vector<8x32xbf16> to vector<8x8xbf16>
    %17 = vector.extract_strided_slice %13 {offsets = [0, 0], sizes = [8, 8], strides = [1, 1]} : vector<8x32xbf16> to vector<8x8xbf16>
    %18 = vector.extract_strided_slice %15 {offsets = [0, 0], sizes = [8, 8], strides = [1, 1]} : vector<8x32xbf16> to vector<8x8xbf16>
    %cst_14 = arith.constant dense<0.000000e+00> : vector<8x8xf32>
    %19 = tpu.matmul %16, %17, %cst_14 {dimension_numbers = #tpu.dot_dimension_numbers<[1], [1], [0], [0], [0, 0, 1, 0], [], []>} : vector<8x8xbf16>, vector<8x8xbf16>, vector<8x8xf32> -> vector<8x8xf32>
    %20 = vector.broadcast %9 : vector<1x8xf32> to vector<8x8xf32>
    %21 = arith.addf %19, %20 : vector<8x8xf32>
    %c0_15 = arith.constant 0 : index
    %c0_16 = arith.constant 0 : index
    %c0_17 = arith.constant 0 : index
    %22 = vector.load %arg17[%c0_15, %c0_16, %c0_17] : memref<4x8x1xf32, #tpu.memory_space<vmem>>, vector<1x8x1xf32>
    %23 = vector.shape_cast %22 : vector<1x8x1xf32> to vector<8x1xf32>
    %cst_18 = arith.constant dense<0xFF800000> : vector<8xf32>
    %24 = vector.multi_reduction <maximumf>, %21, %cst_18 [1] : vector<8x8xf32> to vector<8xf32>
    %25 = vector.shape_cast %24 : vector<8xf32> to vector<8x1xf32>
    %26 = arith.maximumf %23, %25 : vector<8x1xf32>
    %27 = arith.subf %23, %26 : vector<8x1xf32>
    %28 = math.exp %27 : vector<8x1xf32>
    %29 = vector.broadcast %26 : vector<8x1xf32> to vector<8x8xf32>
    %30 = arith.subf %21, %29 : vector<8x8xf32>
    %31 = math.exp %30 : vector<8x8xf32>
    %c0_19 = arith.constant 0 : index
    %c0_20 = arith.constant 0 : index
    %c0_21 = arith.constant 0 : index
    %32 = vector.load %arg18[%c0_19, %c0_20, %c0_21] : memref<4x8x1xf32, #tpu.memory_space<vmem>>, vector<1x8x1xf32>
    %33 = vector.shape_cast %32 : vector<1x8x1xf32> to vector<8x1xf32>
    %34 = arith.mulf %28, %33 : vector<8x1xf32>
    %cst_22 = arith.constant dense<0.000000e+00> : vector<8xf32>
    %35 = vector.multi_reduction <add>, %31, %cst_22 [1] : vector<8x8xf32> to vector<8xf32>
    %36 = vector.shape_cast %35 : vector<8xf32> to vector<8x1xf32>
    %37 = arith.addf %34, %36 : vector<8x1xf32>
    %c0_23 = arith.constant 0 : index
    %c0_24 = arith.constant 0 : index
    %c0_25 = arith.constant 0 : index
    %38 = vector.load %arg18[%c0_23, %c0_24, %c0_25] : memref<4x8x1xf32, #tpu.memory_space<vmem>>, vector<1x8x1xf32>
    %39 = vector.shape_cast %38 : vector<1x8x1xf32> to vector<8x1xf32>
    %40 = vector.shape_cast %37 : vector<8x1xf32> to vector<1x8x1xf32>
    tpu.vector_store %arg18[%c0_23, %c0_24, %c0_25], %40 {strides = array<i32>} : memref<4x8x1xf32, #tpu.memory_space<vmem>>, vector<1x8x1xf32>,
    %c0_26 = arith.constant 0 : index
    %c0_27 = arith.constant 0 : index
    %41 = vector.load %arg19[%c0_26, %c0_27] : memref<8x32xf32, #tpu.memory_space<vmem>>, vector<8x8xf32>
    %42 = vector.broadcast %28 : vector<8x1xf32> to vector<8x8xf32>
    %43 = arith.mulf %42, %41 : vector<8x8xf32>
    %44 = arith.truncf %31 : vector<8x8xf32> to vector<8x8xbf16>
    %cst_28 = arith.constant dense<0.000000e+00> : vector<8x8xf32>
    %45 = tpu.matmul %44, %18, %cst_28 {dimension_numbers = #tpu.dot_dimension_numbers<[1], [0], [0], [1], [0, 0, 1, 1], [], []>} : vector<8x8xbf16>, vector<8x8xbf16>, vector<8x8xf32> -> vector<8x8xf32>
    %46 = arith.addf %43, %45 : vector<8x8xf32>
    %c0_29 = arith.constant 0 : index
    %c0_30 = arith.constant 0 : index
    %47 = vector.load %arg19[%c0_29, %c0_30] : memref<8x32xf32, #tpu.memory_space<vmem>>, vector<8x8xf32>
    tpu.vector_store %arg19[%c0_29, %c0_30], %46 {strides = array<i32>} : memref<8x32xf32, #tpu.memory_space<vmem>>, vector<8x8xf32>,
    %c0_31 = arith.constant 0 : index
    %c0_32 = arith.constant 0 : index
    %c0_33 = arith.constant 0 : index
    %48 = vector.load %arg17[%c0_31, %c0_32, %c0_33] : memref<4x8x1xf32, #tpu.memory_space<vmem>>, vector<1x8x1xf32>
    %49 = vector.shape_cast %48 : vector<1x8x1xf32> to vector<8x1xf32>
    %50 = vector.shape_cast %26 : vector<8x1xf32> to vector<1x8x1xf32>
    tpu.vector_store %arg17[%c0_31, %c0_32, %c0_33], %50 {strides = array<i32>} : memref<4x8x1xf32, #tpu.memory_space<vmem>>, vector<1x8x1xf32>,
    %51 = vector.extract_strided_slice %11 {offsets = [0, 8], sizes = [8, 8], strides = [1, 1]} : vector<8x32xbf16> to vector<8x8xbf16>
    %52 = vector.extract_strided_slice %13 {offsets = [0, 8], sizes = [8, 8], strides = [1, 1]} : vector<8x32xbf16> to vector<8x8xbf16>
    %53 = vector.extract_strided_slice %15 {offsets = [0, 8], sizes = [8, 8], strides = [1, 1]} : vector<8x32xbf16> to vector<8x8xbf16>
    %cst_34 = arith.constant dense<0.000000e+00> : vector<8x8xf32>
    %54 = tpu.matmul %51, %52, %cst_34 {dimension_numbers = #tpu.dot_dimension_numbers<[1], [1], [0], [0], [0, 0, 1, 0], [], []>} : vector<8x8xbf16>, vector<8x8xbf16>, vector<8x8xf32> -> vector<8x8xf32>
    %55 = vector.broadcast %9 : vector<1x8xf32> to vector<8x8xf32>
    %56 = arith.addf %54, %55 : vector<8x8xf32>
    %c1 = arith.constant 1 : index
    %c0_35 = arith.constant 0 : index
    %c0_36 = arith.constant 0 : index
    %57 = vector.load %arg17[%c1, %c0_35, %c0_36] : memref<4x8x1xf32, #tpu.memory_space<vmem>>, vector<1x8x1xf32>
    %58 = vector.shape_cast %57 : vector<1x8x1xf32> to vector<8x1xf32>
    %cst_37 = arith.constant dense<0xFF800000> : vector<8xf32>
    %59 = vector.multi_reduction <maximumf>, %56, %cst_37 [1] : vector<8x8xf32> to vector<8xf32>
    %60 = vector.shape_cast %59 : vector<8xf32> to vector<8x1xf32>
    %61 = arith.maximumf %58, %60 : vector<8x1xf32>
    %62 = arith.subf %58, %61 : vector<8x1xf32>
    %63 = math.exp %62 : vector<8x1xf32>
    %64 = vector.broadcast %61 : vector<8x1xf32> to vector<8x8xf32>
    %65 = arith.subf %56, %64 : vector<8x8xf32>
    %66 = math.exp %65 : vector<8x8xf32>
    %c1_38 = arith.constant 1 : index
    %c0_39 = arith.constant 0 : index
    %c0_40 = arith.constant 0 : index
    %67 = vector.load %arg18[%c1_38, %c0_39, %c0_40] : memref<4x8x1xf32, #tpu.memory_space<vmem>>, vector<1x8x1xf32>
    %68 = vector.shape_cast %67 : vector<1x8x1xf32> to vector<8x1xf32>
    %69 = arith.mulf %63, %68 : vector<8x1xf32>
    %cst_41 = arith.constant dense<0.000000e+00> : vector<8xf32>
    %70 = vector.multi_reduction <add>, %66, %cst_41 [1] : vector<8x8xf32> to vector<8xf32>
    %71 = vector.shape_cast %70 : vector<8xf32> to vector<8x1xf32>
    %72 = arith.addf %69, %71 : vector<8x1xf32>
    %c1_42 = arith.constant 1 : index
    %c0_43 = arith.constant 0 : index
    %c0_44 = arith.constant 0 : index
    %73 = vector.load %arg18[%c1_42, %c0_43, %c0_44] : memref<4x8x1xf32, #tpu.memory_space<vmem>>, vector<1x8x1xf32>
    %74 = vector.shape_cast %73 : vector<1x8x1xf32> to vector<8x1xf32>
    %75 = vector.shape_cast %72 : vector<8x1xf32> to vector<1x8x1xf32>
    tpu.vector_store %arg18[%c1_42, %c0_43, %c0_44], %75 {strides = array<i32>} : memref<4x8x1xf32, #tpu.memory_space<vmem>>, vector<1x8x1xf32>,
    %c0_45 = arith.constant 0 : index
    %c8 = arith.constant 8 : index
    %76 = vector.load %arg19[%c0_45, %c8] : memref<8x32xf32, #tpu.memory_space<vmem>>, vector<8x8xf32>
    %77 = vector.broadcast %63 : vector<8x1xf32> to vector<8x8xf32>
    %78 = arith.mulf %77, %76 : vector<8x8xf32>
    %79 = arith.truncf %66 : vector<8x8xf32> to vector<8x8xbf16>
    %cst_46 = arith.constant dense<0.000000e+00> : vector<8x8xf32>
    %80 = tpu.matmul %79, %53, %cst_46 {dimension_numbers = #tpu.dot_dimension_numbers<[1], [0], [0], [1], [0, 0, 1, 1], [], []>} : vector<8x8xbf16>, vector<8x8xbf16>, vector<8x8xf32> -> vector<8x8xf32>
    %81 = arith.addf %78, %80 : vector<8x8xf32>
    %c0_47 = arith.constant 0 : index
    %c8_48 = arith.constant 8 : index
    %82 = vector.load %arg19[%c0_47, %c8_48] : memref<8x32xf32, #tpu.memory_space<vmem>>, vector<8x8xf32>
    tpu.vector_store %arg19[%c0_47, %c8_48], %81 {strides = array<i32>} : memref<8x32xf32, #tpu.memory_space<vmem>>, vector<8x8xf32>,
    %c1_49 = arith.constant 1 : index
    %c0_50 = arith.constant 0 : index
    %c0_51 = arith.constant 0 : index
    %83 = vector.load %arg17[%c1_49, %c0_50, %c0_51] : memref<4x8x1xf32, #tpu.memory_space<vmem>>, vector<1x8x1xf32>
    %84 = vector.shape_cast %83 : vector<1x8x1xf32> to vector<8x1xf32>
    %85 = vector.shape_cast %61 : vector<8x1xf32> to vector<1x8x1xf32>
    tpu.vector_store %arg17[%c1_49, %c0_50, %c0_51], %85 {strides = array<i32>} : memref<4x8x1xf32, #tpu.memory_space<vmem>>, vector<1x8x1xf32>,
    %86 = vector.extract_strided_slice %11 {offsets = [0, 16], sizes = [8, 8], strides = [1, 1]} : vector<8x32xbf16> to vector<8x8xbf16>
    %87 = vector.extract_strided_slice %13 {offsets = [0, 16], sizes = [8, 8], strides = [1, 1]} : vector<8x32xbf16> to vector<8x8xbf16>
    %88 = vector.extract_strided_slice %15 {offsets = [0, 16], sizes = [8, 8], strides = [1, 1]} : vector<8x32xbf16> to vector<8x8xbf16>
    %cst_52 = arith.constant dense<0.000000e+00> : vector<8x8xf32>
    %89 = tpu.matmul %86, %87, %cst_52 {dimension_numbers = #tpu.dot_dimension_numbers<[1], [1], [0], [0], [0, 0, 1, 0], [], []>} : vector<8x8xbf16>, vector<8x8xbf16>, vector<8x8xf32> -> vector<8x8xf32>
    %90 = vector.broadcast %9 : vector<1x8xf32> to vector<8x8xf32>
    %91 = arith.addf %89, %90 : vector<8x8xf32>
    %c2 = arith.constant 2 : index
    %c0_53 = arith.constant 0 : index
    %c0_54 = arith.constant 0 : index
    %92 = vector.load %arg17[%c2, %c0_53, %c0_54] : memref<4x8x1xf32, #tpu.memory_space<vmem>>, vector<1x8x1xf32>
    %93 = vector.shape_cast %92 : vector<1x8x1xf32> to vector<8x1xf32>
    %cst_55 = arith.constant dense<0xFF800000> : vector<8xf32>
    %94 = vector.multi_reduction <maximumf>, %91, %cst_55 [1] : vector<8x8xf32> to vector<8xf32>
    %95 = vector.shape_cast %94 : vector<8xf32> to vector<8x1xf32>
    %96 = arith.maximumf %93, %95 : vector<8x1xf32>
    %97 = arith.subf %93, %96 : vector<8x1xf32>
    %98 = math.exp %97 : vector<8x1xf32>
    %99 = vector.broadcast %96 : vector<8x1xf32> to vector<8x8xf32>
    %100 = arith.subf %91, %99 : vector<8x8xf32>
    %101 = math.exp %100 : vector<8x8xf32>
    %c2_56 = arith.constant 2 : index
    %c0_57 = arith.constant 0 : index
    %c0_58 = arith.constant 0 : index
    %102 = vector.load %arg18[%c2_56, %c0_57, %c0_58] : memref<4x8x1xf32, #tpu.memory_space<vmem>>, vector<1x8x1xf32>
    %103 = vector.shape_cast %102 : vector<1x8x1xf32> to vector<8x1xf32>
    %104 = arith.mulf %98, %103 : vector<8x1xf32>
    %cst_59 = arith.constant dense<0.000000e+00> : vector<8xf32>
    %105 = vector.multi_reduction <add>, %101, %cst_59 [1] : vector<8x8xf32> to vector<8xf32>
    %106 = vector.shape_cast %105 : vector<8xf32> to vector<8x1xf32>
    %107 = arith.addf %104, %106 : vector<8x1xf32>
    %c2_60 = arith.constant 2 : index
    %c0_61 = arith.constant 0 : index
    %c0_62 = arith.constant 0 : index
    %108 = vector.load %arg18[%c2_60, %c0_61, %c0_62] : memref<4x8x1xf32, #tpu.memory_space<vmem>>, vector<1x8x1xf32>
    %109 = vector.shape_cast %108 : vector<1x8x1xf32> to vector<8x1xf32>
    %110 = vector.shape_cast %107 : vector<8x1xf32> to vector<1x8x1xf32>
    tpu.vector_store %arg18[%c2_60, %c0_61, %c0_62], %110 {strides = array<i32>} : memref<4x8x1xf32, #tpu.memory_space<vmem>>, vector<1x8x1xf32>,
    %c0_63 = arith.constant 0 : index
    %c16 = arith.constant 16 : index
    %111 = vector.load %arg19[%c0_63, %c16] : memref<8x32xf32, #tpu.memory_space<vmem>>, vector<8x8xf32>
    %112 = vector.broadcast %98 : vector<8x1xf32> to vector<8x8xf32>
    %113 = arith.mulf %112, %111 : vector<8x8xf32>
    %114 = arith.truncf %101 : vector<8x8xf32> to vector<8x8xbf16>
    %cst_64 = arith.constant dense<0.000000e+00> : vector<8x8xf32>
    %115 = tpu.matmul %114, %88, %cst_64 {dimension_numbers = #tpu.dot_dimension_numbers<[1], [0], [0], [1], [0, 0, 1, 1], [], []>} : vector<8x8xbf16>, vector<8x8xbf16>, vector<8x8xf32> -> vector<8x8xf32>
    %116 = arith.addf %113, %115 : vector<8x8xf32>
    %c0_65 = arith.constant 0 : index
    %c16_66 = arith.constant 16 : index
    %117 = vector.load %arg19[%c0_65, %c16_66] : memref<8x32xf32, #tpu.memory_space<vmem>>, vector<8x8xf32>
    tpu.vector_store %arg19[%c0_65, %c16_66], %116 {strides = array<i32>} : memref<8x32xf32, #tpu.memory_space<vmem>>, vector<8x8xf32>,
    %c2_67 = arith.constant 2 : index
    %c0_68 = arith.constant 0 : index
    %c0_69 = arith.constant 0 : index
    %118 = vector.load %arg17[%c2_67, %c0_68, %c0_69] : memref<4x8x1xf32, #tpu.memory_space<vmem>>, vector<1x8x1xf32>
    %119 = vector.shape_cast %118 : vector<1x8x1xf32> to vector<8x1xf32>
    %120 = vector.shape_cast %96 : vector<8x1xf32> to vector<1x8x1xf32>
    tpu.vector_store %arg17[%c2_67, %c0_68, %c0_69], %120 {strides = array<i32>} : memref<4x8x1xf32, #tpu.memory_space<vmem>>, vector<1x8x1xf32>,
    %121 = vector.extract_strided_slice %11 {offsets = [0, 24], sizes = [8, 8], strides = [1, 1]} : vector<8x32xbf16> to vector<8x8xbf16>
    %122 = vector.extract_strided_slice %13 {offsets = [0, 24], sizes = [8, 8], strides = [1, 1]} : vector<8x32xbf16> to vector<8x8xbf16>
    %123 = vector.extract_strided_slice %15 {offsets = [0, 24], sizes = [8, 8], strides = [1, 1]} : vector<8x32xbf16> to vector<8x8xbf16>
    %cst_70 = arith.constant dense<0.000000e+00> : vector<8x8xf32>
    %124 = tpu.matmul %121, %122, %cst_70 {dimension_numbers = #tpu.dot_dimension_numbers<[1], [1], [0], [0], [0, 0, 1, 0], [], []>} : vector<8x8xbf16>, vector<8x8xbf16>, vector<8x8xf32> -> vector<8x8xf32>
    %125 = vector.broadcast %9 : vector<1x8xf32> to vector<8x8xf32>
    %126 = arith.addf %124, %125 : vector<8x8xf32>
    %c3 = arith.constant 3 : index
    %c0_71 = arith.constant 0 : index
    %c0_72 = arith.constant 0 : index
    %127 = vector.load %arg17[%c3, %c0_71, %c0_72] : memref<4x8x1xf32, #tpu.memory_space<vmem>>, vector<1x8x1xf32>
    %128 = vector.shape_cast %127 : vector<1x8x1xf32> to vector<8x1xf32>
    %cst_73 = arith.constant dense<0xFF800000> : vector<8xf32>
    %129 = vector.multi_reduction <maximumf>, %126, %cst_73 [1] : vector<8x8xf32> to vector<8xf32>
    %130 = vector.shape_cast %129 : vector<8xf32> to vector<8x1xf32>
    %131 = arith.maximumf %128, %130 : vector<8x1xf32>
    %132 = arith.subf %128, %131 : vector<8x1xf32>
    %133 = math.exp %132 : vector<8x1xf32>
    %134 = vector.broadcast %131 : vector<8x1xf32> to vector<8x8xf32>
    %135 = arith.subf %126, %134 : vector<8x8xf32>
    %136 = math.exp %135 : vector<8x8xf32>
    %c3_74 = arith.constant 3 : index
    %c0_75 = arith.constant 0 : index
    %c0_76 = arith.constant 0 : index
    %137 = vector.load %arg18[%c3_74, %c0_75, %c0_76] : memref<4x8x1xf32, #tpu.memory_space<vmem>>, vector<1x8x1xf32>
    %138 = vector.shape_cast %137 : vector<1x8x1xf32> to vector<8x1xf32>
    %139 = arith.mulf %133, %138 : vector<8x1xf32>
    %cst_77 = arith.constant dense<0.000000e+00> : vector<8xf32>
    %140 = vector.multi_reduction <add>, %136, %cst_77 [1] : vector<8x8xf32> to vector<8xf32>
    %141 = vector.shape_cast %140 : vector<8xf32> to vector<8x1xf32>
    %142 = arith.addf %139, %141 : vector<8x1xf32>
    %c3_78 = arith.constant 3 : index
    %c0_79 = arith.constant 0 : index
    %c0_80 = arith.constant 0 : index
    %143 = vector.load %arg18[%c3_78, %c0_79, %c0_80] : memref<4x8x1xf32, #tpu.memory_space<vmem>>, vector<1x8x1xf32>
    %144 = vector.shape_cast %143 : vector<1x8x1xf32> to vector<8x1xf32>
    %145 = vector.shape_cast %142 : vector<8x1xf32> to vector<1x8x1xf32>
    tpu.vector_store %arg18[%c3_78, %c0_79, %c0_80], %145 {strides = array<i32>} : memref<4x8x1xf32, #tpu.memory_space<vmem>>, vector<1x8x1xf32>,
    %c0_81 = arith.constant 0 : index
    %c24 = arith.constant 24 : index
    %146 = vector.load %arg19[%c0_81, %c24] : memref<8x32xf32, #tpu.memory_space<vmem>>, vector<8x8xf32>
    %147 = vector.broadcast %133 : vector<8x1xf32> to vector<8x8xf32>
    %148 = arith.mulf %147, %146 : vector<8x8xf32>
    %149 = arith.truncf %136 : vector<8x8xf32> to vector<8x8xbf16>
    %cst_82 = arith.constant dense<0.000000e+00> : vector<8x8xf32>
    %150 = tpu.matmul %149, %123, %cst_82 {dimension_numbers = #tpu.dot_dimension_numbers<[1], [0], [0], [1], [0, 0, 1, 1], [], []>} : vector<8x8xbf16>, vector<8x8xbf16>, vector<8x8xf32> -> vector<8x8xf32>
    %151 = arith.addf %148, %150 : vector<8x8xf32>
    %c0_83 = arith.constant 0 : index
    %c24_84 = arith.constant 24 : index
    %152 = vector.load %arg19[%c0_83, %c24_84] : memref<8x32xf32, #tpu.memory_space<vmem>>, vector<8x8xf32>
    tpu.vector_store %arg19[%c0_83, %c24_84], %151 {strides = array<i32>} : memref<8x32xf32, #tpu.memory_space<vmem>>, vector<8x8xf32>,
    %c3_85 = arith.constant 3 : index
    %c0_86 = arith.constant 0 : index
    %c0_87 = arith.constant 0 : index
    %153 = vector.load %arg17[%c3_85, %c0_86, %c0_87] : memref<4x8x1xf32, #tpu.memory_space<vmem>>, vector<1x8x1xf32>
    %154 = vector.shape_cast %153 : vector<1x8x1xf32> to vector<8x1xf32>
    %155 = vector.shape_cast %131 : vector<8x1xf32> to vector<1x8x1xf32>
    tpu.vector_store %arg17[%c3_85, %c0_86, %c0_87], %155 {strides = array<i32>} : memref<4x8x1xf32, #tpu.memory_space<vmem>>, vector<1x8x1xf32>,
    %c0_i32_88 = arith.constant 0 : i32
    %156 = arith.cmpi eq, %arg2, %c0_i32_88 : i32
    %157 = arith.extui %156 : i1 to i32
    %c0_i32_89 = arith.constant 0 : i32
    %158 = arith.cmpi ne, %157, %c0_i32_89 : i32
    scf.if %158 {
      %c0_90 = arith.constant 0 : index
      %c0_91 = arith.constant 0 : index
      %c0_92 = arith.constant 0 : index
      %159 = vector.load %arg18[%c0_90, %c0_91, %c0_92] : memref<4x8x1xf32, #tpu.memory_space<vmem>>, vector<1x8x1xf32>
      %160 = vector.shape_cast %159 : vector<1x8x1xf32> to vector<8x1xf32>
      %161 = tpu.reciprocal %160 {approx = true} : vector<8x1xf32> -> vector<8x1xf32>
      %c0_93 = arith.constant 0 : index
      %c0_94 = arith.constant 0 : index
      %162 = vector.load %arg19[%c0_93, %c0_94] : memref<8x32xf32, #tpu.memory_space<vmem>>, vector<8x8xf32>
      %163 = vector.broadcast %161 : vector<8x1xf32> to vector<8x8xf32>
      %164 = arith.mulf %162, %163 : vector<8x8xf32>
      %c0_95 = arith.constant 0 : index
      %c0_96 = arith.constant 0 : index
      %165 = vector.load %arg19[%c0_95, %c0_96] : memref<8x32xf32, #tpu.memory_space<vmem>>, vector<8x8xf32>
      tpu.vector_store %arg19[%c0_95, %c0_96], %164 {strides = array<i32>} : memref<8x32xf32, #tpu.memory_space<vmem>>, vector<8x8xf32>,
      %c1_97 = arith.constant 1 : index
      %c0_98 = arith.constant 0 : index
      %c0_99 = arith.constant 0 : index
      %166 = vector.load %arg18[%c1_97, %c0_98, %c0_99] : memref<4x8x1xf32, #tpu.memory_space<vmem>>, vector<1x8x1xf32>
      %167 = vector.shape_cast %166 : vector<1x8x1xf32> to vector<8x1xf32>
      %168 = tpu.reciprocal %167 {approx = true} : vector<8x1xf32> -> vector<8x1xf32>
      %c0_100 = arith.constant 0 : index
      %c8_101 = arith.constant 8 : index
      %169 = vector.load %arg19[%c0_100, %c8_101] : memref<8x32xf32, #tpu.memory_space<vmem>>, vector<8x8xf32>
      %170 = vector.broadcast %168 : vector<8x1xf32> to vector<8x8xf32>
      %171 = arith.mulf %169, %170 : vector<8x8xf32>
      %c0_102 = arith.constant 0 : index
      %c8_103 = arith.constant 8 : index
      %172 = vector.load %arg19[%c0_102, %c8_103] : memref<8x32xf32, #tpu.memory_space<vmem>>, vector<8x8xf32>
      tpu.vector_store %arg19[%c0_102, %c8_103], %171 {strides = array<i32>} : memref<8x32xf32, #tpu.memory_space<vmem>>, vector<8x8xf32>,
      %c2_104 = arith.constant 2 : index
      %c0_105 = arith.constant 0 : index
      %c0_106 = arith.constant 0 : index
      %173 = vector.load %arg18[%c2_104, %c0_105, %c0_106] : memref<4x8x1xf32, #tpu.memory_space<vmem>>, vector<1x8x1xf32>
      %174 = vector.shape_cast %173 : vector<1x8x1xf32> to vector<8x1xf32>
      %175 = tpu.reciprocal %174 {approx = true} : vector<8x1xf32> -> vector<8x1xf32>
      %c0_107 = arith.constant 0 : index
      %c16_108 = arith.constant 16 : index
      %176 = vector.load %arg19[%c0_107, %c16_108] : memref<8x32xf32, #tpu.memory_space<vmem>>, vector<8x8xf32>
      %177 = vector.broadcast %175 : vector<8x1xf32> to vector<8x8xf32>
      %178 = arith.mulf %176, %177 : vector<8x8xf32>
      %c0_109 = arith.constant 0 : index
      %c16_110 = arith.constant 16 : index
      %179 = vector.load %arg19[%c0_109, %c16_110] : memref<8x32xf32, #tpu.memory_space<vmem>>, vector<8x8xf32>
      tpu.vector_store %arg19[%c0_109, %c16_110], %178 {strides = array<i32>} : memref<8x32xf32, #tpu.memory_space<vmem>>, vector<8x8xf32>,
      %c3_111 = arith.constant 3 : index
      %c0_112 = arith.constant 0 : index
      %c0_113 = arith.constant 0 : index
      %180 = vector.load %arg18[%c3_111, %c0_112, %c0_113] : memref<4x8x1xf32, #tpu.memory_space<vmem>>, vector<1x8x1xf32>
      %181 = vector.shape_cast %180 : vector<1x8x1xf32> to vector<8x1xf32>
      %182 = tpu.reciprocal %181 {approx = true} : vector<8x1xf32> -> vector<8x1xf32>
      %c0_114 = arith.constant 0 : index
      %c24_115 = arith.constant 24 : index
      %183 = vector.load %arg19[%c0_114, %c24_115] : memref<8x32xf32, #tpu.memory_space<vmem>>, vector<8x8xf32>
      %184 = vector.broadcast %182 : vector<8x1xf32> to vector<8x8xf32>
      %185 = arith.mulf %183, %184 : vector<8x8xf32>
      %c0_116 = arith.constant 0 : index
      %c24_117 = arith.constant 24 : index
      %186 = vector.load %arg19[%c0_116, %c24_117] : memref<8x32xf32, #tpu.memory_space<vmem>>, vector<8x8xf32>
      tpu.vector_store %arg19[%c0_116, %c24_117], %185 {strides = array<i32>} : memref<8x32xf32, #tpu.memory_space<vmem>>, vector<8x8xf32>,
      %c0_118 = arith.constant 0 : index
      %c0_119 = arith.constant 0 : index
      %187 = vector.load %arg19[%c0_118, %c0_119] : memref<8x32xf32, #tpu.memory_space<vmem>>, vector<8x32xf32>
      %188 = arith.truncf %187 : vector<8x32xf32> to vector<8x32xbf16>
      %c0_120 = arith.constant 0 : index
      %c0_121 = arith.constant 0 : index
      %189 = vector.load %arg8[%c0_120, %c0_121] : memref<32x32xbf16, #tpu.memory_space<vmem>>, vector<32x32xbf16>
      %cst_122 = arith.constant dense<0.000000e+00> : vector<8x32xf32>
      %190 = tpu.matmul %188, %189, %cst_122 {dimension_numbers = #tpu.dot_dimension_numbers<[1], [0], [0], [1], [0, 0, 1, 1], [], []>} : vector<8x32xbf16>, vector<32x32xbf16>, vector<8x32xf32> -> vector<8x32xf32>
      %c0_123 = arith.constant 0 : index
      %c0_124 = arith.constant 0 : index
      %c0_125 = arith.constant 0 : index
      %191 = vector.load %arg3[%c0_123, %c0_124, %c0_125] : memref<1x8x32xf32, #tpu.memory_space<vmem>>, vector<1x8x32xf32>
      %192 = vector.shape_cast %191 : vector<1x8x32xf32> to vector<8x32xf32>
      %193 = arith.addf %192, %190 : vector<8x32xf32>
      %c0_126 = arith.constant 0 : index
      %c0_127 = arith.constant 0 : index
      %194 = vector.load %arg9[%c0_126, %c0_127] : memref<1x32xf32, #tpu.memory_space<vmem>>, vector<1x32xf32>
      %195 = vector.broadcast %194 : vector<1x32xf32> to vector<8x32xf32>
      %196 = arith.addf %193, %195 : vector<8x32xf32>
      %c0_128 = arith.constant 0 : index
      %c0_129 = arith.constant 0 : index
      %197 = vector.load %arg10[%c0_128, %c0_129] : memref<1x32xf32, #tpu.memory_space<vmem>>, vector<1x32xf32>
      %c0_130 = arith.constant 0 : index
      %c0_131 = arith.constant 0 : index
      %198 = vector.load %arg11[%c0_130, %c0_131] : memref<1x32xf32, #tpu.memory_space<vmem>>, vector<1x32xf32>
      %cst_132 = arith.constant dense<0.000000e+00> : vector<8xf32>
      %199 = vector.multi_reduction <add>, %196, %cst_132 [1] : vector<8x32xf32> to vector<8xf32>
      %200 = vector.shape_cast %199 : vector<8xf32> to vector<8x1xf32>
      %cst_133 = arith.constant 3.200000e+01 : f32
      %201 = vector.broadcast %cst_133 : f32 to vector<8x1xf32>
      %202 = arith.divf %200, %201 : vector<8x1xf32>
      %203 = vector.broadcast %202 : vector<8x1xf32> to vector<8x32xf32>
      %204 = arith.subf %196, %203 : vector<8x32xf32>
      %205 = arith.mulf %204, %204 : vector<8x32xf32>
      %cst_134 = arith.constant dense<0.000000e+00> : vector<8xf32>
      %206 = vector.multi_reduction <add>, %205, %cst_134 [1] : vector<8x32xf32> to vector<8xf32>
      %207 = vector.shape_cast %206 : vector<8xf32> to vector<8x1xf32>
      %cst_135 = arith.constant 3.200000e+01 : f32
      %208 = vector.broadcast %cst_135 : f32 to vector<8x1xf32>
      %209 = arith.divf %207, %208 : vector<8x1xf32>
      %210 = math.sqrt %209 : vector<8x1xf32>
      %cst_136 = arith.constant 9.99999997E-7 : f32
      %211 = vector.broadcast %cst_136 : f32 to vector<8x1xf32>
      %212 = arith.addf %210, %211 : vector<8x1xf32>
      %cst_137 = arith.constant 1.000000e+00 : f32
      %213 = vector.broadcast %cst_137 : f32 to vector<8x1xf32>
      %214 = arith.divf %213, %212 : vector<8x1xf32>
      %215 = vector.broadcast %202 : vector<8x1xf32> to vector<8x32xf32>
      %216 = arith.subf %196, %215 : vector<8x32xf32>
      %217 = vector.broadcast %197 : vector<1x32xf32> to vector<8x32xf32>
      %218 = arith.mulf %217, %216 : vector<8x32xf32>
      %219 = vector.broadcast %214 : vector<8x1xf32> to vector<8x32xf32>
      %220 = arith.mulf %218, %219 : vector<8x32xf32>
      %221 = vector.broadcast %198 : vector<1x32xf32> to vector<8x32xf32>
      %222 = arith.addf %220, %221 : vector<8x32xf32>
      %223 = arith.truncf %222 : vector<8x32xf32> to vector<8x32xbf16>
      %cst_138 = arith.constant 0.000000e+00 : f32
      %224 = vector.broadcast %cst_138 : f32 to vector<8x32xf32>
      %c0_i32_139 = arith.constant 0 : i32
      %225 = arith.index_cast %c0_i32_139 : i32 to index
      %c0_140 = arith.constant 0 : index
      %c0_141 = arith.constant 0 : index
      %226 = vector.load %arg12[%225, %c0_140, %c0_141] : memref<1x32x64xbf16, #tpu.memory_space<vmem>>, vector<1x32x64xbf16>
      %227 = vector.shape_cast %226 : vector<1x32x64xbf16> to vector<32x64xbf16>
      %cst_142 = arith.constant dense<0.000000e+00> : vector<8x64xf32>
      %228 = tpu.matmul %223, %227, %cst_142 {dimension_numbers = #tpu.dot_dimension_numbers<[1], [0], [0], [1], [0, 0, 1, 1], [], []>} : vector<8x32xbf16>, vector<32x64xbf16>, vector<8x64xf32> -> vector<8x64xf32>
      %229 = arith.index_cast %c0_i32_139 : i32 to index
      %c0_143 = arith.constant 0 : index
      %c0_144 = arith.constant 0 : index
      %230 = vector.load %arg13[%229, %c0_143, %c0_144] : memref<1x1x64xf32, #tpu.memory_space<vmem>>, vector<1x1x64xf32>
      %231 = vector.shape_cast %230 : vector<1x1x64xf32> to vector<1x64xf32>
      %232 = vector.broadcast %231 : vector<1x64xf32> to vector<8x64xf32>
      %233 = arith.addf %228, %232 : vector<8x64xf32>
      %cst_145 = arith.constant 0.000000e+00 : f32
      %234 = vector.broadcast %cst_145 : f32 to vector<8x64xf32>
      %235 = arith.maximumf %233, %234 : vector<8x64xf32>
      %236 = arith.truncf %235 : vector<8x64xf32> to vector<8x64xbf16>
      %237 = arith.index_cast %c0_i32_139 : i32 to index
      %c0_146 = arith.constant 0 : index
      %c0_147 = arith.constant 0 : index
      %238 = vector.load %arg14[%237, %c0_146, %c0_147] : memref<1x64x32xbf16, #tpu.memory_space<vmem>>, vector<1x64x32xbf16>
      %239 = vector.shape_cast %238 : vector<1x64x32xbf16> to vector<64x32xbf16>
      %cst_148 = arith.constant dense<0.000000e+00> : vector<8x32xf32>
      %240 = tpu.matmul %236, %239, %cst_148 {dimension_numbers = #tpu.dot_dimension_numbers<[1], [0], [0], [1], [0, 0, 1, 1], [], []>} : vector<8x64xbf16>, vector<64x32xbf16>, vector<8x32xf32> -> vector<8x32xf32>
      %241 = arith.addf %224, %240 : vector<8x32xf32>
      %c1_i32 = arith.constant 1 : i32
      %242 = arith.addf %196, %241 : vector<8x32xf32>
      %c0_149 = arith.constant 0 : index
      %c0_150 = arith.constant 0 : index
      %243 = vector.load %arg15[%c0_149, %c0_150] : memref<1x32xf32, #tpu.memory_space<vmem>>, vector<1x32xf32>
      %244 = vector.broadcast %243 : vector<1x32xf32> to vector<8x32xf32>
      %245 = arith.addf %242, %244 : vector<8x32xf32>
      %c0_151 = arith.constant 0 : index
      %c0_152 = arith.constant 0 : index
      %c0_153 = arith.constant 0 : index
      %246 = vector.load %arg16[%c0_151, %c0_152, %c0_153] : memref<1x8x32xf32, #tpu.memory_space<vmem>>, vector<1x8x32xf32>
      %247 = vector.shape_cast %246 : vector<1x8x32xf32> to vector<8x32xf32>
      %248 = vector.shape_cast %245 : vector<8x32xf32> to vector<1x8x32xf32>
      tpu.vector_store %arg16[%c0_151, %c0_152, %c0_153], %248 {strides = array<i32>} : memref<1x8x32xf32, #tpu.memory_space<vmem>>, vector<1x8x32xf32>,
    } else {
    }
    return
  }
  func.func @transform_0(%arg0: i32, %arg1: i32, %arg2: i32) -> (i32, i32, i32) {
    %c0_i32 = arith.constant 0 : i32
    %c0_i32_0 = arith.constant 0 : i32
    return %arg0, %arg1, %c0_i32 : i32, i32, i32
  }
  func.func @transform_1(%arg0: i32, %arg1: i32, %arg2: i32) -> (i32, i32, i32) {
    %c0_i32 = arith.constant 0 : i32
    %c0_i32_0 = arith.constant 0 : i32
    return %arg0, %arg1, %c0_i32 : i32, i32, i32
  }
  func.func @transform_2(%arg0: i32, %arg1: i32, %arg2: i32) -> (i32, i32, i32) {
    %c0_i32 = arith.constant 0 : i32
    %c0_i32_0 = arith.constant 0 : i32
    return %arg0, %arg2, %c0_i32 : i32, i32, i32
  }
  func.func @transform_3(%arg0: i32, %arg1: i32, %arg2: i32) -> (i32, i32, i32) {
    %c0_i32 = arith.constant 0 : i32
    %c0_i32_0 = arith.constant 0 : i32
    return %arg0, %arg2, %c0_i32 : i32, i32, i32
  }
  func.func @transform_4(%arg0: i32, %arg1: i32, %arg2: i32) -> (i32, i32, i32) {
    %c0_i32 = arith.constant 0 : i32
    %c0_i32_0 = arith.constant 0 : i32
    return %arg0, %c0_i32, %arg2 : i32, i32, i32
  }
  func.func @transform_5(%arg0: i32, %arg1: i32, %arg2: i32) -> (i32, i32) {
    %c0_i32 = arith.constant 0 : i32
    %c0_i32_0 = arith.constant 0 : i32
    %c0_i32_1 = arith.constant 0 : i32
    return %c0_i32, %c0_i32_0 : i32, i32
  }
  func.func @transform_6(%arg0: i32, %arg1: i32, %arg2: i32) -> (i32, i32) {
    %c0_i32 = arith.constant 0 : i32
    %c0_i32_0 = arith.constant 0 : i32
    %c0_i32_1 = arith.constant 0 : i32
    return %c0_i32, %c0_i32_0 : i32, i32
  }
  func.func @transform_7(%arg0: i32, %arg1: i32, %arg2: i32) -> (i32, i32) {
    %c0_i32 = arith.constant 0 : i32
    %c0_i32_0 = arith.constant 0 : i32
    %c0_i32_1 = arith.constant 0 : i32
    return %c0_i32, %c0_i32_0 : i32, i32
  }
  func.func @transform_8(%arg0: i32, %arg1: i32, %arg2: i32) -> (i32, i32) {
    %c0_i32 = arith.constant 0 : i32
    %c0_i32_0 = arith.constant 0 : i32
    %c0_i32_1 = arith.constant 0 : i32
    return %c0_i32, %c0_i32_0 : i32, i32
  }
  func.func @transform_9(%arg0: i32, %arg1: i32, %arg2: i32) -> (i32, i32, i32) {
    %c0_i32 = arith.constant 0 : i32
    %c0_i32_0 = arith.constant 0 : i32
    %c0_i32_1 = arith.constant 0 : i32
    %c0_i32_2 = arith.constant 0 : i32
    return %c0_i32, %c0_i32_0, %c0_i32_1 : i32, i32, i32
  }
  func.func @transform_10(%arg0: i32, %arg1: i32, %arg2: i32) -> (i32, i32, i32) {
    %c0_i32 = arith.constant 0 : i32
    %c0_i32_0 = arith.constant 0 : i32
    %c0_i32_1 = arith.constant 0 : i32
    %c0_i32_2 = arith.constant 0 : i32
    return %c0_i32, %c0_i32_0, %c0_i32_1 : i32, i32, i32
  }
  func.func @transform_11(%arg0: i32, %arg1: i32, %arg2: i32) -> (i32, i32, i32) {
    %c0_i32 = arith.constant 0 : i32
    %c0_i32_0 = arith.constant 0 : i32
    %c0_i32_1 = arith.constant 0 : i32
    %c0_i32_2 = arith.constant 0 : i32
    return %c0_i32, %c0_i32_0, %c0_i32_1 : i32, i32, i32
  }
  func.func @transform_12(%arg0: i32, %arg1: i32, %arg2: i32) -> (i32, i32) {
    %c0_i32 = arith.constant 0 : i32
    %c0_i32_0 = arith.constant 0 : i32
    %c0_i32_1 = arith.constant 0 : i32
    return %c0_i32, %c0_i32_0 : i32, i32
  }
  func.func @transform_13(%arg0: i32, %arg1: i32, %arg2: i32) -> (i32, i32, i32) {
    %c0_i32 = arith.constant 0 : i32
    %c0_i32_0 = arith.constant 0 : i32
    return %arg0, %arg1, %c0_i32 : i32, i32, i32
  }
}

module attributes {stable_mosaic.version = 11 : i64} {
  func.func @kernel(%arg0: i32, %arg1: i32, %arg2: memref<1x8x32xf32, #tpu.memory_space<vmem>>, %arg3: memref<1x32xf32, #tpu.memory_space<vmem>>, %arg4: memref<1x32xf32, #tpu.memory_space<vmem>>, %arg5: memref<32x96xbf16, #tpu.memory_space<vmem>>, %arg6: memref<1x96xf32, #tpu.memory_space<vmem>>, %arg7: memref<1x8x32xbf16, #tpu.memory_space<vmem>>, %arg8: memref<1x8x32xbf16, #tpu.memory_space<vmem>>, %arg9: memref<1x8x32xbf16, #tpu.memory_space<vmem>>) attributes {dimension_semantics = [#tpu.dimension_semantics<parallel>, #tpu.dimension_semantics<parallel>], iteration_bounds = array<i64: 2, 1>, scalar_prefetch = 0 : i64, scratch_operands = 0 : i64, tpu.core_type = #tpu.core_type<tc>, window_params = [{transform_indices = @transform_0, window_bounds = array<i64: 1, 8, 32>}, {pipeline_mode = #tpu.pipeline_mode<synchronous>, transform_indices = @transform_1, window_bounds = array<i64: 1, 32>}, {pipeline_mode = #tpu.pipeline_mode<synchronous>, transform_indices = @transform_2, window_bounds = array<i64: 1, 32>}, {pipeline_mode = #tpu.pipeline_mode<synchronous>, transform_indices = @transform_3, window_bounds = array<i64: 32, 96>}, {pipeline_mode = #tpu.pipeline_mode<synchronous>, transform_indices = @transform_4, window_bounds = array<i64: 1, 96>}, {transform_indices = @transform_5, window_bounds = array<i64: 1, 8, 32>}, {transform_indices = @transform_6, window_bounds = array<i64: 1, 8, 32>}, {transform_indices = @transform_7, window_bounds = array<i64: 1, 8, 32>}]} {
    %c0 = arith.constant 0 : index
    %c0_0 = arith.constant 0 : index
    %c0_1 = arith.constant 0 : index
    %0 = vector.load %arg2[%c0, %c0_0, %c0_1] : memref<1x8x32xf32, #tpu.memory_space<vmem>>, vector<1x8x32xf32>
    %1 = vector.shape_cast %0 : vector<1x8x32xf32> to vector<8x32xf32>
    %c0_2 = arith.constant 0 : index
    %c0_3 = arith.constant 0 : index
    %2 = vector.load %arg3[%c0_2, %c0_3] : memref<1x32xf32, #tpu.memory_space<vmem>>, vector<1x32xf32>
    %c0_4 = arith.constant 0 : index
    %c0_5 = arith.constant 0 : index
    %3 = vector.load %arg4[%c0_4, %c0_5] : memref<1x32xf32, #tpu.memory_space<vmem>>, vector<1x32xf32>
    %cst = arith.constant dense<0.000000e+00> : vector<8xf32>
    %4 = vector.multi_reduction <add>, %1, %cst [1] : vector<8x32xf32> to vector<8xf32>
    %5 = vector.shape_cast %4 : vector<8xf32> to vector<8x1xf32>
    %cst_6 = arith.constant 3.200000e+01 : f32
    %6 = vector.broadcast %cst_6 : f32 to vector<8x1xf32>
    %7 = arith.divf %5, %6 : vector<8x1xf32>
    %8 = vector.broadcast %7 : vector<8x1xf32> to vector<8x32xf32>
    %9 = arith.subf %1, %8 : vector<8x32xf32>
    %10 = arith.mulf %9, %9 : vector<8x32xf32>
    %cst_7 = arith.constant dense<0.000000e+00> : vector<8xf32>
    %11 = vector.multi_reduction <add>, %10, %cst_7 [1] : vector<8x32xf32> to vector<8xf32>
    %12 = vector.shape_cast %11 : vector<8xf32> to vector<8x1xf32>
    %cst_8 = arith.constant 3.200000e+01 : f32
    %13 = vector.broadcast %cst_8 : f32 to vector<8x1xf32>
    %14 = arith.divf %12, %13 : vector<8x1xf32>
    %15 = math.sqrt %14 : vector<8x1xf32>
    %cst_9 = arith.constant 9.99999997E-7 : f32
    %16 = vector.broadcast %cst_9 : f32 to vector<8x1xf32>
    %17 = arith.addf %15, %16 : vector<8x1xf32>
    %cst_10 = arith.constant 1.000000e+00 : f32
    %18 = vector.broadcast %cst_10 : f32 to vector<8x1xf32>
    %19 = arith.divf %18, %17 : vector<8x1xf32>
    %20 = vector.broadcast %7 : vector<8x1xf32> to vector<8x32xf32>
    %21 = arith.subf %1, %20 : vector<8x32xf32>
    %22 = vector.broadcast %2 : vector<1x32xf32> to vector<8x32xf32>
    %23 = arith.mulf %22, %21 : vector<8x32xf32>
    %24 = vector.broadcast %19 : vector<8x1xf32> to vector<8x32xf32>
    %25 = arith.mulf %23, %24 : vector<8x32xf32>
    %26 = vector.broadcast %3 : vector<1x32xf32> to vector<8x32xf32>
    %27 = arith.addf %25, %26 : vector<8x32xf32>
    %28 = arith.truncf %27 : vector<8x32xf32> to vector<8x32xbf16>
    %c0_11 = arith.constant 0 : index
    %c0_12 = arith.constant 0 : index
    %29 = vector.load %arg5[%c0_11, %c0_12] : memref<32x96xbf16, #tpu.memory_space<vmem>>, vector<32x96xbf16>
    %cst_13 = arith.constant dense<0.000000e+00> : vector<8x96xf32>
    %30 = tpu.matmul %28, %29, %cst_13 {dimension_numbers = #tpu.dot_dimension_numbers<[1], [0], [0], [1], [0, 0, 1, 1], [], []>} : vector<8x32xbf16>, vector<32x96xbf16>, vector<8x96xf32> -> vector<8x96xf32>
    %c0_14 = arith.constant 0 : index
    %c0_15 = arith.constant 0 : index
    %31 = vector.load %arg6[%c0_14, %c0_15] : memref<1x96xf32, #tpu.memory_space<vmem>>, vector<1x96xf32>
    %32 = vector.broadcast %31 : vector<1x96xf32> to vector<8x96xf32>
    %33 = arith.addf %30, %32 : vector<8x96xf32>
    %34 = arith.truncf %33 : vector<8x96xf32> to vector<8x96xbf16>
    %35 = vector.extract_strided_slice %34 {offsets = [0, 0], sizes = [8, 32], strides = [1, 1]} : vector<8x96xbf16> to vector<8x32xbf16>
    %c0_16 = arith.constant 0 : index
    %c0_17 = arith.constant 0 : index
    %c0_18 = arith.constant 0 : index
    %36 = vector.load %arg7[%c0_16, %c0_17, %c0_18] : memref<1x8x32xbf16, #tpu.memory_space<vmem>>, vector<1x8x32xbf16>
    %37 = vector.shape_cast %36 : vector<1x8x32xbf16> to vector<8x32xbf16>
    %38 = vector.shape_cast %35 : vector<8x32xbf16> to vector<1x8x32xbf16>
    tpu.vector_store %arg7[%c0_16, %c0_17, %c0_18], %38 {strides = array<i32>} : memref<1x8x32xbf16, #tpu.memory_space<vmem>>, vector<1x8x32xbf16>,
    %39 = vector.extract_strided_slice %34 {offsets = [0, 32], sizes = [8, 32], strides = [1, 1]} : vector<8x96xbf16> to vector<8x32xbf16>
    %c0_19 = arith.constant 0 : index
    %c0_20 = arith.constant 0 : index
    %c0_21 = arith.constant 0 : index
    %40 = vector.load %arg8[%c0_19, %c0_20, %c0_21] : memref<1x8x32xbf16, #tpu.memory_space<vmem>>, vector<1x8x32xbf16>
    %41 = vector.shape_cast %40 : vector<1x8x32xbf16> to vector<8x32xbf16>
    %42 = vector.shape_cast %39 : vector<8x32xbf16> to vector<1x8x32xbf16>
    tpu.vector_store %arg8[%c0_19, %c0_20, %c0_21], %42 {strides = array<i32>} : memref<1x8x32xbf16, #tpu.memory_space<vmem>>, vector<1x8x32xbf16>,
    %43 = vector.extract_strided_slice %34 {offsets = [0, 64], sizes = [8, 32], strides = [1, 1]} : vector<8x96xbf16> to vector<8x32xbf16>
    %c0_22 = arith.constant 0 : index
    %c0_23 = arith.constant 0 : index
    %c0_24 = arith.constant 0 : index
    %44 = vector.load %arg9[%c0_22, %c0_23, %c0_24] : memref<1x8x32xbf16, #tpu.memory_space<vmem>>, vector<1x8x32xbf16>
    %45 = vector.shape_cast %44 : vector<1x8x32xbf16> to vector<8x32xbf16>
    %46 = vector.shape_cast %43 : vector<8x32xbf16> to vector<1x8x32xbf16>
    tpu.vector_store %arg9[%c0_22, %c0_23, %c0_24], %46 {strides = array<i32>} : memref<1x8x32xbf16, #tpu.memory_space<vmem>>, vector<1x8x32xbf16>,
    return
  }
  func.func @transform_0(%arg0: i32, %arg1: i32) -> (i32, i32, i32) {
    %c0_i32 = arith.constant 0 : i32
    %c0_i32_0 = arith.constant 0 : i32
    return %arg0, %arg1, %c0_i32 : i32, i32, i32
  }
  func.func @transform_1(%arg0: i32, %arg1: i32) -> (i32, i32) {
    %c0_i32 = arith.constant 0 : i32
    %c0_i32_0 = arith.constant 0 : i32
    %c0_i32_1 = arith.constant 0 : i32
    return %c0_i32, %c0_i32_0 : i32, i32
  }
  func.func @transform_2(%arg0: i32, %arg1: i32) -> (i32, i32) {
    %c0_i32 = arith.constant 0 : i32
    %c0_i32_0 = arith.constant 0 : i32
    %c0_i32_1 = arith.constant 0 : i32
    return %c0_i32, %c0_i32_0 : i32, i32
  }
  func.func @transform_3(%arg0: i32, %arg1: i32) -> (i32, i32) {
    %c0_i32 = arith.constant 0 : i32
    %c0_i32_0 = arith.constant 0 : i32
    %c0_i32_1 = arith.constant 0 : i32
    return %c0_i32, %c0_i32_0 : i32, i32
  }
  func.func @transform_4(%arg0: i32, %arg1: i32) -> (i32, i32) {
    %c0_i32 = arith.constant 0 : i32
    %c0_i32_0 = arith.constant 0 : i32
    %c0_i32_1 = arith.constant 0 : i32
    return %c0_i32, %c0_i32_0 : i32, i32
  }
  func.func @transform_5(%arg0: i32, %arg1: i32) -> (i32, i32, i32) {
    %c0_i32 = arith.constant 0 : i32
    %c0_i32_0 = arith.constant 0 : i32
    return %arg0, %arg1, %c0_i32 : i32, i32, i32
  }
  func.func @transform_6(%arg0: i32, %arg1: i32) -> (i32, i32, i32) {
    %c0_i32 = arith.constant 0 : i32
    %c0_i32_0 = arith.constant 0 : i32
    return %arg0, %arg1, %c0_i32 : i32, i32, i32
  }
  func.func @transform_7(%arg0: i32, %arg1: i32) -> (i32, i32, i32) {
    %c0_i32 = arith.constant 0 : i32
    %c0_i32_0 = arith.constant 0 : i32
    return %arg0, %arg1, %c0_i32 : i32, i32, i32
  }
}

module attributes {stable_mosaic.version = 11 : i64} {
  func.func @kernel(%arg0: i32, %arg1: i32, %arg2: i32, %arg3: memref<1x8x32xf32, #tpu.memory_space<vmem>>, %arg4: memref<1x8x32xbf16, #tpu.memory_space<vmem>>, %arg5: memref<1x8x32xbf16, #tpu.memory_space<vmem>>, %arg6: memref<1x8x32xbf16, #tpu.memory_space<vmem>>, %arg7: memref<1x1x8xf32, #tpu.memory_space<vmem>>, %arg8: memref<32x32xbf16, #tpu.memory_space<vmem>>, %arg9: memref<1x32xf32, #tpu.memory_space<vmem>>, %arg10: memref<1x32xf32, #tpu.memory_space<vmem>>, %arg11: memref<1x32xf32, #tpu.memory_space<vmem>>, %arg12: memref<1x32x64xbf16, #tpu.memory_space<vmem>>, %arg13: memref<1x1x64xf32, #tpu.memory_space<vmem>>, %arg14: memref<1x64x32xbf16, #tpu.memory_space<vmem>>, %arg15: memref<1x32xf32, #tpu.memory_space<vmem>>, %arg16: memref<1x8x32xf32, #tpu.memory_space<vmem>>, %arg17: memref<4x8x1xf32, #tpu.memory_space<vmem>>, %arg18: memref<4x8x1xf32, #tpu.memory_space<vmem>>, %arg19: memref<8x32xf32, #tpu.memory_space<vmem>>) attributes {dimension_semantics = [#tpu.dimension_semantics<parallel>, #tpu.dimension_semantics<parallel>, #tpu.dimension_semantics<arbitrary>], iteration_bounds = array<i64: 2, 1, 1>, scalar_prefetch = 0 : i64, scratch_operands = 3 : i64, tpu.core_type = #tpu.core_type<tc>, window_params = [{transform_indices = @transform_0, window_bounds = array<i64: 1, 8, 32>}, {transform_indices = @transform_1, window_bounds = array<i64: 1, 8, 32>}, {transform_indices = @transform_2, window_bounds = array<i64: 1, 8, 32>}, {transform_indices = @transform_3, window_bounds = array<i64: 1, 8, 32>}, {transform_indices = @transform_4, window_bounds = array<i64: 1, 1, 8>}, {pipeline_mode = #tpu.pipeline_mode<synchronous>, transform_indices = @transform_5, window_bounds = array<i64: 32, 32>}, {pipeline_mode = #tpu.pipeline_mode<synchronous>, transform_indices = @transform_6, window_bounds = array<i64: 1, 32>}, {pipeline_mode = #tpu.pipeline_mode<synchronous>, transform_indices = @transform_7, window_bounds = array<i64: 1, 32>}, {pipeline_mode = #tpu.pipeline_mode<synchronous>, transform_indices = @transform_8, window_bounds = array<i64: 1, 32>}, {pipeline_mode = #tpu.pipeline_mode<synchronous>, transform_indices = @transform_9, window_bounds = array<i64: 1, 32, 64>}, {pipeline_mode = #tpu.pipeline_mode<synchronous>, transform_indices = @transform_10, window_bounds = array<i64: 1, 1, 64>}, {pipeline_mode = #tpu.pipeline_mode<synchronous>, transform_indices = @transform_11, window_bounds = array<i64: 1, 64, 32>}, {pipeline_mode = #tpu.pipeline_mode<synchronous>, transform_indices = @transform_12, window_bounds = array<i64: 1, 32>}, {transform_indices = @transform_13, window_bounds = array<i64: 1, 8, 32>}]} {
    %c0_i32 = arith.constant 0 : i32
    %0 = arith.cmpi eq, %arg2, %c0_i32 : i32
    %1 = arith.extui %0 : i1 to i32
    %c0_i32_0 = arith.constant 0 : i32
    %2 = arith.cmpi ne, %1, %c0_i32_0 : i32
    scf.if %2 {
      %cst_90 = arith.constant -1.000000e+30 : f32
      %159 = vector.broadcast %cst_90 : f32 to vector<4x8x1xf32>
      %c0_91 = arith.constant 0 : index
      %c0_92 = arith.constant 0 : index
      %c0_93 = arith.constant 0 : index
      %160 = vector.load %arg17[%c0_91, %c0_92, %c0_93] : memref<4x8x1xf32, #tpu.memory_space<vmem>>, vector<4x8x1xf32>
      tpu.vector_store %arg17[%c0_91, %c0_92, %c0_93], %159 {strides = array<i32>} : memref<4x8x1xf32, #tpu.memory_space<vmem>>, vector<4x8x1xf32>,
      %cst_94 = arith.constant 0.000000e+00 : f32
      %161 = vector.broadcast %cst_94 : f32 to vector<4x8x1xf32>
      %c0_95 = arith.constant 0 : index
      %c0_96 = arith.constant 0 : index
      %c0_97 = arith.constant 0 : index
      %162 = vector.load %arg18[%c0_95, %c0_96, %c0_97] : memref<4x8x1xf32, #tpu.memory_space<vmem>>, vector<4x8x1xf32>
      tpu.vector_store %arg18[%c0_95, %c0_96, %c0_97], %161 {strides = array<i32>} : memref<4x8x1xf32, #tpu.memory_space<vmem>>, vector<4x8x1xf32>,
      %cst_98 = arith.constant 0.000000e+00 : f32
      %163 = vector.broadcast %cst_98 : f32 to vector<8x32xf32>
      %c0_99 = arith.constant 0 : index
      %c0_100 = arith.constant 0 : index
      %164 = vector.load %arg19[%c0_99, %c0_100] : memref<8x32xf32, #tpu.memory_space<vmem>>, vector<8x32xf32>
      tpu.vector_store %arg19[%c0_99, %c0_100], %163 {strides = array<i32>} : memref<8x32xf32, #tpu.memory_space<vmem>>, vector<8x32xf32>,
    } else {
    }
    %c0 = arith.constant 0 : index
    %c0_1 = arith.constant 0 : index
    %c0_2 = arith.constant 0 : index
    %3 = vector.load %arg7[%c0, %c0_1, %c0_2] : memref<1x1x8xf32, #tpu.memory_space<vmem>>, vector<1x1x8xf32>
    %4 = vector.shape_cast %3 : vector<1x1x8xf32> to vector<1x8xf32>
    %cst = arith.constant 0.000000e+00 : f32
    %5 = vector.broadcast %cst : f32 to vector<1x8xf32>
    %6 = arith.cmpf ogt, %4, %5 : vector<1x8xf32>
    %cst_3 = arith.constant 0.000000e+00 : f32
    %cst_4 = arith.constant -1.000000e+09 : f32
    %7 = vector.broadcast %cst_3 : f32 to vector<1x8xf32>
    %8 = vector.broadcast %cst_4 : f32 to vector<1x8xf32>
    %9 = arith.select %6, %7, %8 : vector<1x8xi1>, vector<1x8xf32>
    %c0_5 = arith.constant 0 : index
    %c0_6 = arith.constant 0 : index
    %c0_7 = arith.constant 0 : index
    %10 = vector.load %arg4[%c0_5, %c0_6, %c0_7] : memref<1x8x32xbf16, #tpu.memory_space<vmem>>, vector<1x8x32xbf16>
    %11 = vector.shape_cast %10 : vector<1x8x32xbf16> to vector<8x32xbf16>
    %c0_8 = arith.constant 0 : index
    %c0_9 = arith.constant 0 : index
    %c0_10 = arith.constant 0 : index
    %12 = vector.load %arg5[%c0_8, %c0_9, %c0_10] : memref<1x8x32xbf16, #tpu.memory_space<vmem>>, vector<1x8x32xbf16>
    %13 = vector.shape_cast %12 : vector<1x8x32xbf16> to vector<8x32xbf16>
    %c0_11 = arith.constant 0 : index
    %c0_12 = arith.constant 0 : index
    %c0_13 = arith.constant 0 : index
    %14 = vector.load %arg6[%c0_11, %c0_12, %c0_13] : memref<1x8x32xbf16, #tpu.memory_space<vmem>>, vector<1x8x32xbf16>
    %15 = vector.shape_cast %14 : vector<1x8x32xbf16> to vector<8x32xbf16>
    %16 = vector.extract_strided_slice %11 {offsets = [0, 0], sizes = [8, 8], strides = [1, 1]} : vector<8x32xbf16> to vector<8x8xbf16>
    %17 = vector.extract_strided_slice %13 {offsets = [0, 0], sizes = [8, 8], strides = [1, 1]} : vector<8x32xbf16> to vector<8x8xbf16>
    %18 = vector.extract_strided_slice %15 {offsets = [0, 0], sizes = [8, 8], strides = [1, 1]} : vector<8x32xbf16> to vector<8x8xbf16>
    %cst_14 = arith.constant dense<0.000000e+00> : vector<8x8xf32>
    %19 = tpu.matmul %16, %17, %cst_14 {dimension_numbers = #tpu.dot_dimension_numbers<[1], [1], [0], [0], [0, 0, 1, 0], [], []>} : vector<8x8xbf16>, vector<8x8xbf16>, vector<8x8xf32> -> vector<8x8xf32>
    %20 = vector.broadcast %9 : vector<1x8xf32> to vector<8x8xf32>
    %21 = arith.addf %19, %20 : vector<8x8xf32>
    %c0_15 = arith.constant 0 : index
    %c0_16 = arith.constant 0 : index
    %c0_17 = arith.constant 0 : index
    %22 = vector.load %arg17[%c0_15, %c0_16, %c0_17] : memref<4x8x1xf32, #tpu.memory_space<vmem>>, vector<1x8x1xf32>
    %23 = vector.shape_cast %22 : vector<1x8x1xf32> to vector<8x1xf32>
    %cst_18 = arith.constant dense<0xFF800000> : vector<8xf32>
    %24 = vector.multi_reduction <maximumf>, %21, %cst_18 [1] : vector<8x8xf32> to vector<8xf32>
    %25 = vector.shape_cast %24 : vector<8xf32> to vector<8x1xf32>
    %26 = arith.maximumf %23, %25 : vector<8x1xf32>
    %27 = arith.subf %23, %26 : vector<8x1xf32>
    %28 = math.exp %27 : vector<8x1xf32>
    %29 = vector.broadcast %26 : vector<8x1xf32> to vector<8x8xf32>
    %30 = arith.subf %21, %29 : vector<8x8xf32>
    %31 = math.exp %30 : vector<8x8xf32>
    %c0_19 = arith.constant 0 : index
    %c0_20 = arith.constant 0 : index
    %c0_21 = arith.constant 0 : index
    %32 = vector.load %arg18[%c0_19, %c0_20, %c0_21] : memref<4x8x1xf32, #tpu.memory_space<vmem>>, vector<1x8x1xf32>
    %33 = vector.shape_cast %32 : vector<1x8x1xf32> to vector<8x1xf32>
    %34 = arith.mulf %28, %33 : vector<8x1xf32>
    %cst_22 = arith.constant dense<0.000000e+00> : vector<8xf32>
    %35 = vector.multi_reduction <add>, %31, %cst_22 [1] : vector<8x8xf32> to vector<8xf32>
    %36 = vector.shape_cast %35 : vector<8xf32> to vector<8x1xf32>
    %37 = arith.addf %34, %36 : vector<8x1xf32>
    %c0_23 = arith.constant 0 : index
    %c0_24 = arith.constant 0 : index
    %c0_25 = arith.constant 0 : index
    %38 = vector.load %arg18[%c0_23, %c0_24, %c0_25] : memref<4x8x1xf32, #tpu.memory_space<vmem>>, vector<1x8x1xf32>
    %39 = vector.shape_cast %38 : vector<1x8x1xf32> to vector<8x1xf32>
    %40 = vector.shape_cast %37 : vector<8x1xf32> to vector<1x8x1xf32>
    tpu.vector_store %arg18[%c0_23, %c0_24, %c0_25], %40 {strides = array<i32>} : memref<4x8x1xf32, #tpu.memory_space<vmem>>, vector<1x8x1xf32>,
    %c0_26 = arith.constant 0 : index
    %c0_27 = arith.constant 0 : index
    %41 = vector.load %arg19[%c0_26, %c0_27] : memref<8x32xf32, #tpu.memory_space<vmem>>, vector<8x8xf32>
    %42 = vector.broadcast %28 : vector<8x1xf32> to vector<8x8xf32>
    %43 = arith.mulf %42, %41 : vector<8x8xf32>
    %44 = arith.truncf %31 : vector<8x8xf32> to vector<8x8xbf16>
    %cst_28 = arith.constant dense<0.000000e+00> : vector<8x8xf32>
    %45 = tpu.matmul %44, %18, %cst_28 {dimension_numbers = #tpu.dot_dimension_numbers<[1], [0], [0], [1], [0, 0, 1, 1], [], []>} : vector<8x8xbf16>, vector<8x8xbf16>, vector<8x8xf32> -> vector<8x8xf32>
    %46 = arith.addf %43, %45 : vector<8x8xf32>
    %c0_29 = arith.constant 0 : index
    %c0_30 = arith.constant 0 : index
    %47 = vector.load %arg19[%c0_29, %c0_30] : memref<8x32xf32, #tpu.memory_space<vmem>>, vector<8x8xf32>
    tpu.vector_store %arg19[%c0_29, %c0_30], %46 {strides = array<i32>} : memref<8x32xf32, #tpu.memory_space<vmem>>, vector<8x8xf32>,
    %c0_31 = arith.constant 0 : index
    %c0_32 = arith.constant 0 : index
    %c0_33 = arith.constant 0 : index
    %48 = vector.load %arg17[%c0_31, %c0_32, %c0_33] : memref<4x8x1xf32, #tpu.memory_space<vmem>>, vector<1x8x1xf32>
    %49 = vector.shape_cast %48 : vector<1x8x1xf32> to vector<8x1xf32>
    %50 = vector.shape_cast %26 : vector<8x1xf32> to vector<1x8x1xf32>
    tpu.vector_store %arg17[%c0_31, %c0_32, %c0_33], %50 {strides = array<i32>} : memref<4x8x1xf32, #tpu.memory_space<vmem>>, vector<1x8x1xf32>,
    %51 = vector.extract_strided_slice %11 {offsets = [0, 8], sizes = [8, 8], strides = [1, 1]} : vector<8x32xbf16> to vector<8x8xbf16>
    %52 = vector.extract_strided_slice %13 {offsets = [0, 8], sizes = [8, 8], strides = [1, 1]} : vector<8x32xbf16> to vector<8x8xbf16>
    %53 = vector.extract_strided_slice %15 {offsets = [0, 8], sizes = [8, 8], strides = [1, 1]} : vector<8x32xbf16> to vector<8x8xbf16>
    %cst_34 = arith.constant dense<0.000000e+00> : vector<8x8xf32>
    %54 = tpu.matmul %51, %52, %cst_34 {dimension_numbers = #tpu.dot_dimension_numbers<[1], [1], [0], [0], [0, 0, 1, 0], [], []>} : vector<8x8xbf16>, vector<8x8xbf16>, vector<8x8xf32> -> vector<8x8xf32>
    %55 = vector.broadcast %9 : vector<1x8xf32> to vector<8x8xf32>
    %56 = arith.addf %54, %55 : vector<8x8xf32>
    %c1 = arith.constant 1 : index
    %c0_35 = arith.constant 0 : index
    %c0_36 = arith.constant 0 : index
    %57 = vector.load %arg17[%c1, %c0_35, %c0_36] : memref<4x8x1xf32, #tpu.memory_space<vmem>>, vector<1x8x1xf32>
    %58 = vector.shape_cast %57 : vector<1x8x1xf32> to vector<8x1xf32>
    %cst_37 = arith.constant dense<0xFF800000> : vector<8xf32>
    %59 = vector.multi_reduction <maximumf>, %56, %cst_37 [1] : vector<8x8xf32> to vector<8xf32>
    %60 = vector.shape_cast %59 : vector<8xf32> to vector<8x1xf32>
    %61 = arith.maximumf %58, %60 : vector<8x1xf32>
    %62 = arith.subf %58, %61 : vector<8x1xf32>
    %63 = math.exp %62 : vector<8x1xf32>
    %64 = vector.broadcast %61 : vector<8x1xf32> to vector<8x8xf32>
    %65 = arith.subf %56, %64 : vector<8x8xf32>
    %66 = math.exp %65 : vector<8x8xf32>
    %c1_38 = arith.constant 1 : index
    %c0_39 = arith.constant 0 : index
    %c0_40 = arith.constant 0 : index
    %67 = vector.load %arg18[%c1_38, %c0_39, %c0_40] : memref<4x8x1xf32, #tpu.memory_space<vmem>>, vector<1x8x1xf32>
    %68 = vector.shape_cast %67 : vector<1x8x1xf32> to vector<8x1xf32>
    %69 = arith.mulf %63, %68 : vector<8x1xf32>
    %cst_41 = arith.constant dense<0.000000e+00> : vector<8xf32>
    %70 = vector.multi_reduction <add>, %66, %cst_41 [1] : vector<8x8xf32> to vector<8xf32>
    %71 = vector.shape_cast %70 : vector<8xf32> to vector<8x1xf32>
    %72 = arith.addf %69, %71 : vector<8x1xf32>
    %c1_42 = arith.constant 1 : index
    %c0_43 = arith.constant 0 : index
    %c0_44 = arith.constant 0 : index
    %73 = vector.load %arg18[%c1_42, %c0_43, %c0_44] : memref<4x8x1xf32, #tpu.memory_space<vmem>>, vector<1x8x1xf32>
    %74 = vector.shape_cast %73 : vector<1x8x1xf32> to vector<8x1xf32>
    %75 = vector.shape_cast %72 : vector<8x1xf32> to vector<1x8x1xf32>
    tpu.vector_store %arg18[%c1_42, %c0_43, %c0_44], %75 {strides = array<i32>} : memref<4x8x1xf32, #tpu.memory_space<vmem>>, vector<1x8x1xf32>,
    %c0_45 = arith.constant 0 : index
    %c8 = arith.constant 8 : index
    %76 = vector.load %arg19[%c0_45, %c8] : memref<8x32xf32, #tpu.memory_space<vmem>>, vector<8x8xf32>
    %77 = vector.broadcast %63 : vector<8x1xf32> to vector<8x8xf32>
    %78 = arith.mulf %77, %76 : vector<8x8xf32>
    %79 = arith.truncf %66 : vector<8x8xf32> to vector<8x8xbf16>
    %cst_46 = arith.constant dense<0.000000e+00> : vector<8x8xf32>
    %80 = tpu.matmul %79, %53, %cst_46 {dimension_numbers = #tpu.dot_dimension_numbers<[1], [0], [0], [1], [0, 0, 1, 1], [], []>} : vector<8x8xbf16>, vector<8x8xbf16>, vector<8x8xf32> -> vector<8x8xf32>
    %81 = arith.addf %78, %80 : vector<8x8xf32>
    %c0_47 = arith.constant 0 : index
    %c8_48 = arith.constant 8 : index
    %82 = vector.load %arg19[%c0_47, %c8_48] : memref<8x32xf32, #tpu.memory_space<vmem>>, vector<8x8xf32>
    tpu.vector_store %arg19[%c0_47, %c8_48], %81 {strides = array<i32>} : memref<8x32xf32, #tpu.memory_space<vmem>>, vector<8x8xf32>,
    %c1_49 = arith.constant 1 : index
    %c0_50 = arith.constant 0 : index
    %c0_51 = arith.constant 0 : index
    %83 = vector.load %arg17[%c1_49, %c0_50, %c0_51] : memref<4x8x1xf32, #tpu.memory_space<vmem>>, vector<1x8x1xf32>
    %84 = vector.shape_cast %83 : vector<1x8x1xf32> to vector<8x1xf32>
    %85 = vector.shape_cast %61 : vector<8x1xf32> to vector<1x8x1xf32>
    tpu.vector_store %arg17[%c1_49, %c0_50, %c0_51], %85 {strides = array<i32>} : memref<4x8x1xf32, #tpu.memory_space<vmem>>, vector<1x8x1xf32>,
    %86 = vector.extract_strided_slice %11 {offsets = [0, 16], sizes = [8, 8], strides = [1, 1]} : vector<8x32xbf16> to vector<8x8xbf16>
    %87 = vector.extract_strided_slice %13 {offsets = [0, 16], sizes = [8, 8], strides = [1, 1]} : vector<8x32xbf16> to vector<8x8xbf16>
    %88 = vector.extract_strided_slice %15 {offsets = [0, 16], sizes = [8, 8], strides = [1, 1]} : vector<8x32xbf16> to vector<8x8xbf16>
    %cst_52 = arith.constant dense<0.000000e+00> : vector<8x8xf32>
    %89 = tpu.matmul %86, %87, %cst_52 {dimension_numbers = #tpu.dot_dimension_numbers<[1], [1], [0], [0], [0, 0, 1, 0], [], []>} : vector<8x8xbf16>, vector<8x8xbf16>, vector<8x8xf32> -> vector<8x8xf32>
    %90 = vector.broadcast %9 : vector<1x8xf32> to vector<8x8xf32>
    %91 = arith.addf %89, %90 : vector<8x8xf32>
    %c2 = arith.constant 2 : index
    %c0_53 = arith.constant 0 : index
    %c0_54 = arith.constant 0 : index
    %92 = vector.load %arg17[%c2, %c0_53, %c0_54] : memref<4x8x1xf32, #tpu.memory_space<vmem>>, vector<1x8x1xf32>
    %93 = vector.shape_cast %92 : vector<1x8x1xf32> to vector<8x1xf32>
    %cst_55 = arith.constant dense<0xFF800000> : vector<8xf32>
    %94 = vector.multi_reduction <maximumf>, %91, %cst_55 [1] : vector<8x8xf32> to vector<8xf32>
    %95 = vector.shape_cast %94 : vector<8xf32> to vector<8x1xf32>
    %96 = arith.maximumf %93, %95 : vector<8x1xf32>
    %97 = arith.subf %93, %96 : vector<8x1xf32>
    %98 = math.exp %97 : vector<8x1xf32>
    %99 = vector.broadcast %96 : vector<8x1xf32> to vector<8x8xf32>
    %100 = arith.subf %91, %99 : vector<8x8xf32>
    %101 = math.exp %100 : vector<8x8xf32>
    %c2_56 = arith.constant 2 : index
    %c0_57 = arith.constant 0 : index
    %c0_58 = arith.constant 0 : index
    %102 = vector.load %arg18[%c2_56, %c0_57, %c0_58] : memref<4x8x1xf32, #tpu.memory_space<vmem>>, vector<1x8x1xf32>
    %103 = vector.shape_cast %102 : vector<1x8x1xf32> to vector<8x1xf32>
    %104 = arith.mulf %98, %103 : vector<8x1xf32>
    %cst_59 = arith.constant dense<0.000000e+00> : vector<8xf32>
    %105 = vector.multi_reduction <add>, %101, %cst_59 [1] : vector<8x8xf32> to vector<8xf32>
    %106 = vector.shape_cast %105 : vector<8xf32> to vector<8x1xf32>
    %107 = arith.addf %104, %106 : vector<8x1xf32>
    %c2_60 = arith.constant 2 : index
    %c0_61 = arith.constant 0 : index
    %c0_62 = arith.constant 0 : index
    %108 = vector.load %arg18[%c2_60, %c0_61, %c0_62] : memref<4x8x1xf32, #tpu.memory_space<vmem>>, vector<1x8x1xf32>
    %109 = vector.shape_cast %108 : vector<1x8x1xf32> to vector<8x1xf32>
    %110 = vector.shape_cast %107 : vector<8x1xf32> to vector<1x8x1xf32>
    tpu.vector_store %arg18[%c2_60, %c0_61, %c0_62], %110 {strides = array<i32>} : memref<4x8x1xf32, #tpu.memory_space<vmem>>, vector<1x8x1xf32>,
    %c0_63 = arith.constant 0 : index
    %c16 = arith.constant 16 : index
    %111 = vector.load %arg19[%c0_63, %c16] : memref<8x32xf32, #tpu.memory_space<vmem>>, vector<8x8xf32>
    %112 = vector.broadcast %98 : vector<8x1xf32> to vector<8x8xf32>
    %113 = arith.mulf %112, %111 : vector<8x8xf32>
    %114 = arith.truncf %101 : vector<8x8xf32> to vector<8x8xbf16>
    %cst_64 = arith.constant dense<0.000000e+00> : vector<8x8xf32>
    %115 = tpu.matmul %114, %88, %cst_64 {dimension_numbers = #tpu.dot_dimension_numbers<[1], [0], [0], [1], [0, 0, 1, 1], [], []>} : vector<8x8xbf16>, vector<8x8xbf16>, vector<8x8xf32> -> vector<8x8xf32>
    %116 = arith.addf %113, %115 : vector<8x8xf32>
    %c0_65 = arith.constant 0 : index
    %c16_66 = arith.constant 16 : index
    %117 = vector.load %arg19[%c0_65, %c16_66] : memref<8x32xf32, #tpu.memory_space<vmem>>, vector<8x8xf32>
    tpu.vector_store %arg19[%c0_65, %c16_66], %116 {strides = array<i32>} : memref<8x32xf32, #tpu.memory_space<vmem>>, vector<8x8xf32>,
    %c2_67 = arith.constant 2 : index
    %c0_68 = arith.constant 0 : index
    %c0_69 = arith.constant 0 : index
    %118 = vector.load %arg17[%c2_67, %c0_68, %c0_69] : memref<4x8x1xf32, #tpu.memory_space<vmem>>, vector<1x8x1xf32>
    %119 = vector.shape_cast %118 : vector<1x8x1xf32> to vector<8x1xf32>
    %120 = vector.shape_cast %96 : vector<8x1xf32> to vector<1x8x1xf32>
    tpu.vector_store %arg17[%c2_67, %c0_68, %c0_69], %120 {strides = array<i32>} : memref<4x8x1xf32, #tpu.memory_space<vmem>>, vector<1x8x1xf32>,
    %121 = vector.extract_strided_slice %11 {offsets = [0, 24], sizes = [8, 8], strides = [1, 1]} : vector<8x32xbf16> to vector<8x8xbf16>
    %122 = vector.extract_strided_slice %13 {offsets = [0, 24], sizes = [8, 8], strides = [1, 1]} : vector<8x32xbf16> to vector<8x8xbf16>
    %123 = vector.extract_strided_slice %15 {offsets = [0, 24], sizes = [8, 8], strides = [1, 1]} : vector<8x32xbf16> to vector<8x8xbf16>
    %cst_70 = arith.constant dense<0.000000e+00> : vector<8x8xf32>
    %124 = tpu.matmul %121, %122, %cst_70 {dimension_numbers = #tpu.dot_dimension_numbers<[1], [1], [0], [0], [0, 0, 1, 0], [], []>} : vector<8x8xbf16>, vector<8x8xbf16>, vector<8x8xf32> -> vector<8x8xf32>
    %125 = vector.broadcast %9 : vector<1x8xf32> to vector<8x8xf32>
    %126 = arith.addf %124, %125 : vector<8x8xf32>
    %c3 = arith.constant 3 : index
    %c0_71 = arith.constant 0 : index
    %c0_72 = arith.constant 0 : index
    %127 = vector.load %arg17[%c3, %c0_71, %c0_72] : memref<4x8x1xf32, #tpu.memory_space<vmem>>, vector<1x8x1xf32>
    %128 = vector.shape_cast %127 : vector<1x8x1xf32> to vector<8x1xf32>
    %cst_73 = arith.constant dense<0xFF800000> : vector<8xf32>
    %129 = vector.multi_reduction <maximumf>, %126, %cst_73 [1] : vector<8x8xf32> to vector<8xf32>
    %130 = vector.shape_cast %129 : vector<8xf32> to vector<8x1xf32>
    %131 = arith.maximumf %128, %130 : vector<8x1xf32>
    %132 = arith.subf %128, %131 : vector<8x1xf32>
    %133 = math.exp %132 : vector<8x1xf32>
    %134 = vector.broadcast %131 : vector<8x1xf32> to vector<8x8xf32>
    %135 = arith.subf %126, %134 : vector<8x8xf32>
    %136 = math.exp %135 : vector<8x8xf32>
    %c3_74 = arith.constant 3 : index
    %c0_75 = arith.constant 0 : index
    %c0_76 = arith.constant 0 : index
    %137 = vector.load %arg18[%c3_74, %c0_75, %c0_76] : memref<4x8x1xf32, #tpu.memory_space<vmem>>, vector<1x8x1xf32>
    %138 = vector.shape_cast %137 : vector<1x8x1xf32> to vector<8x1xf32>
    %139 = arith.mulf %133, %138 : vector<8x1xf32>
    %cst_77 = arith.constant dense<0.000000e+00> : vector<8xf32>
    %140 = vector.multi_reduction <add>, %136, %cst_77 [1] : vector<8x8xf32> to vector<8xf32>
    %141 = vector.shape_cast %140 : vector<8xf32> to vector<8x1xf32>
    %142 = arith.addf %139, %141 : vector<8x1xf32>
    %c3_78 = arith.constant 3 : index
    %c0_79 = arith.constant 0 : index
    %c0_80 = arith.constant 0 : index
    %143 = vector.load %arg18[%c3_78, %c0_79, %c0_80] : memref<4x8x1xf32, #tpu.memory_space<vmem>>, vector<1x8x1xf32>
    %144 = vector.shape_cast %143 : vector<1x8x1xf32> to vector<8x1xf32>
    %145 = vector.shape_cast %142 : vector<8x1xf32> to vector<1x8x1xf32>
    tpu.vector_store %arg18[%c3_78, %c0_79, %c0_80], %145 {strides = array<i32>} : memref<4x8x1xf32, #tpu.memory_space<vmem>>, vector<1x8x1xf32>,
    %c0_81 = arith.constant 0 : index
    %c24 = arith.constant 24 : index
    %146 = vector.load %arg19[%c0_81, %c24] : memref<8x32xf32, #tpu.memory_space<vmem>>, vector<8x8xf32>
    %147 = vector.broadcast %133 : vector<8x1xf32> to vector<8x8xf32>
    %148 = arith.mulf %147, %146 : vector<8x8xf32>
    %149 = arith.truncf %136 : vector<8x8xf32> to vector<8x8xbf16>
    %cst_82 = arith.constant dense<0.000000e+00> : vector<8x8xf32>
    %150 = tpu.matmul %149, %123, %cst_82 {dimension_numbers = #tpu.dot_dimension_numbers<[1], [0], [0], [1], [0, 0, 1, 1], [], []>} : vector<8x8xbf16>, vector<8x8xbf16>, vector<8x8xf32> -> vector<8x8xf32>
    %151 = arith.addf %148, %150 : vector<8x8xf32>
    %c0_83 = arith.constant 0 : index
    %c24_84 = arith.constant 24 : index
    %152 = vector.load %arg19[%c0_83, %c24_84] : memref<8x32xf32, #tpu.memory_space<vmem>>, vector<8x8xf32>
    tpu.vector_store %arg19[%c0_83, %c24_84], %151 {strides = array<i32>} : memref<8x32xf32, #tpu.memory_space<vmem>>, vector<8x8xf32>,
    %c3_85 = arith.constant 3 : index
    %c0_86 = arith.constant 0 : index
    %c0_87 = arith.constant 0 : index
    %153 = vector.load %arg17[%c3_85, %c0_86, %c0_87] : memref<4x8x1xf32, #tpu.memory_space<vmem>>, vector<1x8x1xf32>
    %154 = vector.shape_cast %153 : vector<1x8x1xf32> to vector<8x1xf32>
    %155 = vector.shape_cast %131 : vector<8x1xf32> to vector<1x8x1xf32>
    tpu.vector_store %arg17[%c3_85, %c0_86, %c0_87], %155 {strides = array<i32>} : memref<4x8x1xf32, #tpu.memory_space<vmem>>, vector<1x8x1xf32>,
    %c0_i32_88 = arith.constant 0 : i32
    %156 = arith.cmpi eq, %arg2, %c0_i32_88 : i32
    %157 = arith.extui %156 : i1 to i32
    %c0_i32_89 = arith.constant 0 : i32
    %158 = arith.cmpi ne, %157, %c0_i32_89 : i32
    scf.if %158 {
      %c0_90 = arith.constant 0 : index
      %c0_91 = arith.constant 0 : index
      %c0_92 = arith.constant 0 : index
      %159 = vector.load %arg18[%c0_90, %c0_91, %c0_92] : memref<4x8x1xf32, #tpu.memory_space<vmem>>, vector<1x8x1xf32>
      %160 = vector.shape_cast %159 : vector<1x8x1xf32> to vector<8x1xf32>
      %161 = tpu.reciprocal %160 {approx = true} : vector<8x1xf32> -> vector<8x1xf32>
      %c0_93 = arith.constant 0 : index
      %c0_94 = arith.constant 0 : index
      %162 = vector.load %arg19[%c0_93, %c0_94] : memref<8x32xf32, #tpu.memory_space<vmem>>, vector<8x8xf32>
      %163 = vector.broadcast %161 : vector<8x1xf32> to vector<8x8xf32>
      %164 = arith.mulf %162, %163 : vector<8x8xf32>
      %c0_95 = arith.constant 0 : index
      %c0_96 = arith.constant 0 : index
      %165 = vector.load %arg19[%c0_95, %c0_96] : memref<8x32xf32, #tpu.memory_space<vmem>>, vector<8x8xf32>
      tpu.vector_store %arg19[%c0_95, %c0_96], %164 {strides = array<i32>} : memref<8x32xf32, #tpu.memory_space<vmem>>, vector<8x8xf32>,
      %c1_97 = arith.constant 1 : index
      %c0_98 = arith.constant 0 : index
      %c0_99 = arith.constant 0 : index
      %166 = vector.load %arg18[%c1_97, %c0_98, %c0_99] : memref<4x8x1xf32, #tpu.memory_space<vmem>>, vector<1x8x1xf32>
      %167 = vector.shape_cast %166 : vector<1x8x1xf32> to vector<8x1xf32>
      %168 = tpu.reciprocal %167 {approx = true} : vector<8x1xf32> -> vector<8x1xf32>
      %c0_100 = arith.constant 0 : index
      %c8_101 = arith.constant 8 : index
      %169 = vector.load %arg19[%c0_100, %c8_101] : memref<8x32xf32, #tpu.memory_space<vmem>>, vector<8x8xf32>
      %170 = vector.broadcast %168 : vector<8x1xf32> to vector<8x8xf32>
      %171 = arith.mulf %169, %170 : vector<8x8xf32>
      %c0_102 = arith.constant 0 : index
      %c8_103 = arith.constant 8 : index
      %172 = vector.load %arg19[%c0_102, %c8_103] : memref<8x32xf32, #tpu.memory_space<vmem>>, vector<8x8xf32>
      tpu.vector_store %arg19[%c0_102, %c8_103], %171 {strides = array<i32>} : memref<8x32xf32, #tpu.memory_space<vmem>>, vector<8x8xf32>,
      %c2_104 = arith.constant 2 : index
      %c0_105 = arith.constant 0 : index
      %c0_106 = arith.constant 0 : index
      %173 = vector.load %arg18[%c2_104, %c0_105, %c0_106] : memref<4x8x1xf32, #tpu.memory_space<vmem>>, vector<1x8x1xf32>
      %174 = vector.shape_cast %173 : vector<1x8x1xf32> to vector<8x1xf32>
      %175 = tpu.reciprocal %174 {approx = true} : vector<8x1xf32> -> vector<8x1xf32>
      %c0_107 = arith.constant 0 : index
      %c16_108 = arith.constant 16 : index
      %176 = vector.load %arg19[%c0_107, %c16_108] : memref<8x32xf32, #tpu.memory_space<vmem>>, vector<8x8xf32>
      %177 = vector.broadcast %175 : vector<8x1xf32> to vector<8x8xf32>
      %178 = arith.mulf %176, %177 : vector<8x8xf32>
      %c0_109 = arith.constant 0 : index
      %c16_110 = arith.constant 16 : index
      %179 = vector.load %arg19[%c0_109, %c16_110] : memref<8x32xf32, #tpu.memory_space<vmem>>, vector<8x8xf32>
      tpu.vector_store %arg19[%c0_109, %c16_110], %178 {strides = array<i32>} : memref<8x32xf32, #tpu.memory_space<vmem>>, vector<8x8xf32>,
      %c3_111 = arith.constant 3 : index
      %c0_112 = arith.constant 0 : index
      %c0_113 = arith.constant 0 : index
      %180 = vector.load %arg18[%c3_111, %c0_112, %c0_113] : memref<4x8x1xf32, #tpu.memory_space<vmem>>, vector<1x8x1xf32>
      %181 = vector.shape_cast %180 : vector<1x8x1xf32> to vector<8x1xf32>
      %182 = tpu.reciprocal %181 {approx = true} : vector<8x1xf32> -> vector<8x1xf32>
      %c0_114 = arith.constant 0 : index
      %c24_115 = arith.constant 24 : index
      %183 = vector.load %arg19[%c0_114, %c24_115] : memref<8x32xf32, #tpu.memory_space<vmem>>, vector<8x8xf32>
      %184 = vector.broadcast %182 : vector<8x1xf32> to vector<8x8xf32>
      %185 = arith.mulf %183, %184 : vector<8x8xf32>
      %c0_116 = arith.constant 0 : index
      %c24_117 = arith.constant 24 : index
      %186 = vector.load %arg19[%c0_116, %c24_117] : memref<8x32xf32, #tpu.memory_space<vmem>>, vector<8x8xf32>
      tpu.vector_store %arg19[%c0_116, %c24_117], %185 {strides = array<i32>} : memref<8x32xf32, #tpu.memory_space<vmem>>, vector<8x8xf32>,
      %c0_118 = arith.constant 0 : index
      %c0_119 = arith.constant 0 : index
      %187 = vector.load %arg19[%c0_118, %c0_119] : memref<8x32xf32, #tpu.memory_space<vmem>>, vector<8x32xf32>
      %188 = arith.truncf %187 : vector<8x32xf32> to vector<8x32xbf16>
      %c0_120 = arith.constant 0 : index
      %c0_121 = arith.constant 0 : index
      %189 = vector.load %arg8[%c0_120, %c0_121] : memref<32x32xbf16, #tpu.memory_space<vmem>>, vector<32x32xbf16>
      %cst_122 = arith.constant dense<0.000000e+00> : vector<8x32xf32>
      %190 = tpu.matmul %188, %189, %cst_122 {dimension_numbers = #tpu.dot_dimension_numbers<[1], [0], [0], [1], [0, 0, 1, 1], [], []>} : vector<8x32xbf16>, vector<32x32xbf16>, vector<8x32xf32> -> vector<8x32xf32>
      %c0_123 = arith.constant 0 : index
      %c0_124 = arith.constant 0 : index
      %c0_125 = arith.constant 0 : index
      %191 = vector.load %arg3[%c0_123, %c0_124, %c0_125] : memref<1x8x32xf32, #tpu.memory_space<vmem>>, vector<1x8x32xf32>
      %192 = vector.shape_cast %191 : vector<1x8x32xf32> to vector<8x32xf32>
      %193 = arith.addf %192, %190 : vector<8x32xf32>
      %c0_126 = arith.constant 0 : index
      %c0_127 = arith.constant 0 : index
      %194 = vector.load %arg9[%c0_126, %c0_127] : memref<1x32xf32, #tpu.memory_space<vmem>>, vector<1x32xf32>
      %195 = vector.broadcast %194 : vector<1x32xf32> to vector<8x32xf32>
      %196 = arith.addf %193, %195 : vector<8x32xf32>
      %c0_128 = arith.constant 0 : index
      %c0_129 = arith.constant 0 : index
      %197 = vector.load %arg10[%c0_128, %c0_129] : memref<1x32xf32, #tpu.memory_space<vmem>>, vector<1x32xf32>
      %c0_130 = arith.constant 0 : index
      %c0_131 = arith.constant 0 : index
      %198 = vector.load %arg11[%c0_130, %c0_131] : memref<1x32xf32, #tpu.memory_space<vmem>>, vector<1x32xf32>
      %cst_132 = arith.constant dense<0.000000e+00> : vector<8xf32>
      %199 = vector.multi_reduction <add>, %196, %cst_132 [1] : vector<8x32xf32> to vector<8xf32>
      %200 = vector.shape_cast %199 : vector<8xf32> to vector<8x1xf32>
      %cst_133 = arith.constant 3.200000e+01 : f32
      %201 = vector.broadcast %cst_133 : f32 to vector<8x1xf32>
      %202 = arith.divf %200, %201 : vector<8x1xf32>
      %203 = vector.broadcast %202 : vector<8x1xf32> to vector<8x32xf32>
      %204 = arith.subf %196, %203 : vector<8x32xf32>
      %205 = arith.mulf %204, %204 : vector<8x32xf32>
      %cst_134 = arith.constant dense<0.000000e+00> : vector<8xf32>
      %206 = vector.multi_reduction <add>, %205, %cst_134 [1] : vector<8x32xf32> to vector<8xf32>
      %207 = vector.shape_cast %206 : vector<8xf32> to vector<8x1xf32>
      %cst_135 = arith.constant 3.200000e+01 : f32
      %208 = vector.broadcast %cst_135 : f32 to vector<8x1xf32>
      %209 = arith.divf %207, %208 : vector<8x1xf32>
      %210 = math.sqrt %209 : vector<8x1xf32>
      %cst_136 = arith.constant 9.99999997E-7 : f32
      %211 = vector.broadcast %cst_136 : f32 to vector<8x1xf32>
      %212 = arith.addf %210, %211 : vector<8x1xf32>
      %cst_137 = arith.constant 1.000000e+00 : f32
      %213 = vector.broadcast %cst_137 : f32 to vector<8x1xf32>
      %214 = arith.divf %213, %212 : vector<8x1xf32>
      %215 = vector.broadcast %202 : vector<8x1xf32> to vector<8x32xf32>
      %216 = arith.subf %196, %215 : vector<8x32xf32>
      %217 = vector.broadcast %197 : vector<1x32xf32> to vector<8x32xf32>
      %218 = arith.mulf %217, %216 : vector<8x32xf32>
      %219 = vector.broadcast %214 : vector<8x1xf32> to vector<8x32xf32>
      %220 = arith.mulf %218, %219 : vector<8x32xf32>
      %221 = vector.broadcast %198 : vector<1x32xf32> to vector<8x32xf32>
      %222 = arith.addf %220, %221 : vector<8x32xf32>
      %223 = arith.truncf %222 : vector<8x32xf32> to vector<8x32xbf16>
      %cst_138 = arith.constant 0.000000e+00 : f32
      %224 = vector.broadcast %cst_138 : f32 to vector<8x32xf32>
      %c0_i32_139 = arith.constant 0 : i32
      %225 = arith.index_cast %c0_i32_139 : i32 to index
      %c0_140 = arith.constant 0 : index
      %c0_141 = arith.constant 0 : index
      %226 = vector.load %arg12[%225, %c0_140, %c0_141] : memref<1x32x64xbf16, #tpu.memory_space<vmem>>, vector<1x32x64xbf16>
      %227 = vector.shape_cast %226 : vector<1x32x64xbf16> to vector<32x64xbf16>
      %cst_142 = arith.constant dense<0.000000e+00> : vector<8x64xf32>
      %228 = tpu.matmul %223, %227, %cst_142 {dimension_numbers = #tpu.dot_dimension_numbers<[1], [0], [0], [1], [0, 0, 1, 1], [], []>} : vector<8x32xbf16>, vector<32x64xbf16>, vector<8x64xf32> -> vector<8x64xf32>
      %229 = arith.index_cast %c0_i32_139 : i32 to index
      %c0_143 = arith.constant 0 : index
      %c0_144 = arith.constant 0 : index
      %230 = vector.load %arg13[%229, %c0_143, %c0_144] : memref<1x1x64xf32, #tpu.memory_space<vmem>>, vector<1x1x64xf32>
      %231 = vector.shape_cast %230 : vector<1x1x64xf32> to vector<1x64xf32>
      %232 = vector.broadcast %231 : vector<1x64xf32> to vector<8x64xf32>
      %233 = arith.addf %228, %232 : vector<8x64xf32>
      %cst_145 = arith.constant 0.000000e+00 : f32
      %234 = vector.broadcast %cst_145 : f32 to vector<8x64xf32>
      %235 = arith.maximumf %233, %234 : vector<8x64xf32>
      %236 = arith.truncf %235 : vector<8x64xf32> to vector<8x64xbf16>
      %237 = arith.index_cast %c0_i32_139 : i32 to index
      %c0_146 = arith.constant 0 : index
      %c0_147 = arith.constant 0 : index
      %238 = vector.load %arg14[%237, %c0_146, %c0_147] : memref<1x64x32xbf16, #tpu.memory_space<vmem>>, vector<1x64x32xbf16>
      %239 = vector.shape_cast %238 : vector<1x64x32xbf16> to vector<64x32xbf16>
      %cst_148 = arith.constant dense<0.000000e+00> : vector<8x32xf32>
      %240 = tpu.matmul %236, %239, %cst_148 {dimension_numbers = #tpu.dot_dimension_numbers<[1], [0], [0], [1], [0, 0, 1, 1], [], []>} : vector<8x64xbf16>, vector<64x32xbf16>, vector<8x32xf32> -> vector<8x32xf32>
      %241 = arith.addf %224, %240 : vector<8x32xf32>
      %c1_i32 = arith.constant 1 : i32
      %242 = arith.addf %196, %241 : vector<8x32xf32>
      %c0_149 = arith.constant 0 : index
      %c0_150 = arith.constant 0 : index
      %243 = vector.load %arg15[%c0_149, %c0_150] : memref<1x32xf32, #tpu.memory_space<vmem>>, vector<1x32xf32>
      %244 = vector.broadcast %243 : vector<1x32xf32> to vector<8x32xf32>
      %245 = arith.addf %242, %244 : vector<8x32xf32>
      %c0_151 = arith.constant 0 : index
      %c0_152 = arith.constant 0 : index
      %c0_153 = arith.constant 0 : index
      %246 = vector.load %arg16[%c0_151, %c0_152, %c0_153] : memref<1x8x32xf32, #tpu.memory_space<vmem>>, vector<1x8x32xf32>
      %247 = vector.shape_cast %246 : vector<1x8x32xf32> to vector<8x32xf32>
      %248 = vector.shape_cast %245 : vector<8x32xf32> to vector<1x8x32xf32>
      tpu.vector_store %arg16[%c0_151, %c0_152, %c0_153], %248 {strides = array<i32>} : memref<1x8x32xf32, #tpu.memory_space<vmem>>, vector<1x8x32xf32>,
    } else {
    }
    return
  }
  func.func @transform_0(%arg0: i32, %arg1: i32, %arg2: i32) -> (i32, i32, i32) {
    %c0_i32 = arith.constant 0 : i32
    %c0_i32_0 = arith.constant 0 : i32
    return %arg0, %arg1, %c0_i32 : i32, i32, i32
  }
  func.func @transform_1(%arg0: i32, %arg1: i32, %arg2: i32) -> (i32, i32, i32) {
    %c0_i32 = arith.constant 0 : i32
    %c0_i32_0 = arith.constant 0 : i32
    return %arg0, %arg1, %c0_i32 : i32, i32, i32
  }
  func.func @transform_2(%arg0: i32, %arg1: i32, %arg2: i32) -> (i32, i32, i32) {
    %c0_i32 = arith.constant 0 : i32
    %c0_i32_0 = arith.constant 0 : i32
    return %arg0, %arg2, %c0_i32 : i32, i32, i32
  }
  func.func @transform_3(%arg0: i32, %arg1: i32, %arg2: i32) -> (i32, i32, i32) {
    %c0_i32 = arith.constant 0 : i32
    %c0_i32_0 = arith.constant 0 : i32
    return %arg0, %arg2, %c0_i32 : i32, i32, i32
  }
  func.func @transform_4(%arg0: i32, %arg1: i32, %arg2: i32) -> (i32, i32, i32) {
    %c0_i32 = arith.constant 0 : i32
    %c0_i32_0 = arith.constant 0 : i32
    return %arg0, %c0_i32, %arg2 : i32, i32, i32
  }
  func.func @transform_5(%arg0: i32, %arg1: i32, %arg2: i32) -> (i32, i32) {
    %c0_i32 = arith.constant 0 : i32
    %c0_i32_0 = arith.constant 0 : i32
    %c0_i32_1 = arith.constant 0 : i32
    return %c0_i32, %c0_i32_0 : i32, i32
  }
  func.func @transform_6(%arg0: i32, %arg1: i32, %arg2: i32) -> (i32, i32) {
    %c0_i32 = arith.constant 0 : i32
    %c0_i32_0 = arith.constant 0 : i32
    %c0_i32_1 = arith.constant 0 : i32
    return %c0_i32, %c0_i32_0 : i32, i32
  }
  func.func @transform_7(%arg0: i32, %arg1: i32, %arg2: i32) -> (i32, i32) {
    %c0_i32 = arith.constant 0 : i32
    %c0_i32_0 = arith.constant 0 : i32
    %c0_i32_1 = arith.constant 0 : i32
    return %c0_i32, %c0_i32_0 : i32, i32
  }
  func.func @transform_8(%arg0: i32, %arg1: i32, %arg2: i32) -> (i32, i32) {
    %c0_i32 = arith.constant 0 : i32
    %c0_i32_0 = arith.constant 0 : i32
    %c0_i32_1 = arith.constant 0 : i32
    return %c0_i32, %c0_i32_0 : i32, i32
  }
  func.func @transform_9(%arg0: i32, %arg1: i32, %arg2: i32) -> (i32, i32, i32) {
    %c0_i32 = arith.constant 0 : i32
    %c0_i32_0 = arith.constant 0 : i32
    %c0_i32_1 = arith.constant 0 : i32
    %c0_i32_2 = arith.constant 0 : i32
    return %c0_i32, %c0_i32_0, %c0_i32_1 : i32, i32, i32
  }
  func.func @transform_10(%arg0: i32, %arg1: i32, %arg2: i32) -> (i32, i32, i32) {
    %c0_i32 = arith.constant 0 : i32
    %c0_i32_0 = arith.constant 0 : i32
    %c0_i32_1 = arith.constant 0 : i32
    %c0_i32_2 = arith.constant 0 : i32
    return %c0_i32, %c0_i32_0, %c0_i32_1 : i32, i32, i32
  }
  func.func @transform_11(%arg0: i32, %arg1: i32, %arg2: i32) -> (i32, i32, i32) {
    %c0_i32 = arith.constant 0 : i32
    %c0_i32_0 = arith.constant 0 : i32
    %c0_i32_1 = arith.constant 0 : i32
    %c0_i32_2 = arith.constant 0 : i32
    return %c0_i32, %c0_i32_0, %c0_i32_1 : i32, i32, i32
  }
  func.func @transform_12(%arg0: i32, %arg1: i32, %arg2: i32) -> (i32, i32) {
    %c0_i32 = arith.constant 0 : i32
    %c0_i32_0 = arith.constant 0 : i32
    %c0_i32_1 = arith.constant 0 : i32
    return %c0_i32, %c0_i32_0 : i32, i32
  }
  func.func @transform_13(%arg0: i32, %arg1: i32, %arg2: i32) -> (i32, i32, i32) {
    %c0_i32 = arith.constant 0 : i32
    %c0_i32_0 = arith.constant 0 : i32
    return %arg0, %arg1, %c0_i32 : i32, i32, i32
  }
}

</mosaic_0001>

<bundles_post_ra>
// kernel: _lambda_.2
= control target key start
LH: loop header
LB: loop body
LE: loop exit
PB: predicated region body
PF: predicated region fallthrough
CT: control target
= control target key end

     0   :  { %s1633_s0 = inlined_call_operand.hbm [shape: f32[2,8,32], index: 0, kind: input, shape index: {}]   ;;  %s1634_s1 = inlined_call_operand.hbm [shape: f32[1,32], index: 1, kind: input, shape index: {}]   ;;  %s1635_s2 = inlined_call_operand.hbm [shape: f32[1,32], index: 2, kind: input, shape index: {}]   ;;  %s1636_s3 = inlined_call_operand.hbm [shape: bf16[32,96], index: 3, kind: input, shape index: {}]   ;;  %s1637_s4 = inlined_call_operand.hbm [shape: f32[1,96], index: 4, kind: input, shape index: {}]   ;;  %s1638_s5 = inlined_call_operand.hbm [shape: bf16[2,8,32], index: 5, kind: output, shape index: {0}]   ;;  %s1639_s6 = inlined_call_operand.hbm [shape: bf16[2,8,32], index: 6, kind: output, shape index: {1}]   ;;  %s1640_s7 = inlined_call_operand.hbm [shape: bf16[2,8,32], index: 7, kind: output, shape index: {2}]  }
   0x1   :  { %1645 = sst [smem:[#allocation20_spill]] %s1634_s1 }
   0x2   :  { %1646 = sst [smem:[#allocation21_spill]] %s1635_s2 }
   0x3   :  { %13 = vsyncpa [#allocation3], 0 }
   0x4   :  { %15 = vsyncpa [#allocation3 + $0x1], 0 }
   0x5   :  { %16 = vsyncpa [#allocation6], 0 }
   0x6   :  { %17 = vsyncpa [#allocation9], 0 }
   0x7   :  { %18 = vsyncpa [#allocation4], 0 }
   0x8   :  { %20 = vsyncpa [#allocation4 + $0x1], 0 }
   0x9   :  { %21 = vsyncpa [#allocation13], 0 }
   0xa   :  { %23 = vsyncpa [#allocation13 + $0x1], 0  ;;  %s1260_s24 = smov 0   ;;  %s1262_s25 = smov 0  }
   0xb   :  { %s1264_s26 = smov 0   ;;  %s1266_s27 = smov 0  }
   0xc   :  { %s1268_s28 = smov 0   ;;  %s1270_s29 = smov 0  }
   0xd LB: > { %s1291_s30 = sadd.s32 4294967295, %s1204_s29   ;;  %p743_p0 = scmp.ge.s32.totalorder %s1204_s29, 1  ;;  %s1204_s29 = sphi %s1270_s29, %s29_s29   ;;  %s1200_s28 = sphi %s1268_s28, %s1671_s28   ;;  %s1196_s27 = sphi %s1266_s27, %s1670_s27   ;;  %s1192_s26 = sphi %s1264_s26, %s1669_s26   ;;  %s1188_s25 = sphi %s1262_s25, %s1668_s25   ;;  %s1184_s24 = sphi %s1260_s24, %s1667_s24  }
   0xe   : > { %p1641_p1 = scmp.eq.s32.totalorder %s1291_s30, 0  ;;  %p242_p2 = scmp.lt.s32.totalorder %s1204_s29, 3 }
   0xf   : > { %s1206_s9 = smov [#allocation5]   ;;  %s1207_s11 = smov [#allocation8]  }
  0x10   : > { %p1296_p3 = pnand %p743_p0, %p242_p2  ;;  %s255_s10 = sshll.u32 %s1206_s9, 4  ;;  %s256_s10 = int_to_ptr.vmem [resolvable:$true] %s255_s10 }
  0x11   : > { %s276_s12 = sshll.u32 %s1207_s11, 4  ;;  %s1208_s14 = smov [#allocation7]   ;;  %s1309_s12 = int_to_ptr.vmem [resolvable:$true] %s276_s12 }
  0x12   : > { %s1647_s8 = scalar_select %p1296_p3, 1, 0 }
  0x13   : > { %p811_p5 = pneg %p1296_p3  ;;  %s1311_s15 = sshll.u32 %s1208_s14, 4  ;;  %s267_s15 = int_to_ptr.vmem [resolvable:$true] %s1311_s15 }
  0x14   : > { %s1649_s1 = sld [smem:[#allocation20_spill]] }
  0x15   : > { %p1305_p6 = pnand %p811_p5, %p1641_p1 }
  0x17   : > { %p1321_p8 = pneg %p1305_p6 }
  0x1a   : > { %s912_s18 = scalar_lea.hbm %s1649_s1, 16 }
  0x1b   : > { %p913_p7 = scmp.ne.s32.totalorder %s1649_s1, %s912_s18  ;;  %p919_p11 = scmp.lt.u32.totalorder %s912_s18, %s1649_s1 }
  0x1d   : > { %p915_p9 = pnand %p1321_p8, %p913_p7 }
  0x1f   : > { %p916_p10 = pneg %p915_p9 }
  0x21   : > { %p921_p12 = pnand %p919_p11, %p916_p10 }
  0x23   : > { %924 = shalt.err (!%p921_p12)
}
  0x24   : > { %s925_s9 = scalar_lea.vmem %s256_s10, 16  ;;  %s932_s11 = scalar_lea.vmem %s256_s10, 32 }
  0x25   : > { %p926_p13 = scmp.ne.s32.totalorder %s256_s10, %s925_s9  ;;  %p933_p5 = scmp.lt.s32.totalorder %s256_s10, %s256_s10 }
  0x26   : > { %p934_p4 = scmp.lt.s32.totalorder %s932_s11, %s925_s9 }
  0x27   : > { %p928_p0 = pnand %p926_p13, %p1321_p8 }
  0x28   : > { %p935_p1 = por %p934_p4, %p933_p5 }
  0x29   : > { %p929_p2 = pneg %p928_p0 }
  0x2b   : > { %p936_p3 = pnand %p935_p1, %p929_p2 }
  0x2d   : > { %939 = shalt.err (!%p936_p3)
}
  0x2e   : > { %814 = dma.hbm_to_vmem [thread:$0]  (!%p1305_p6), %s1649_s1, 16, %s256_s10, [#allocation6]  }
  0x2f   : > { %s940_s19 = scalar_lea.hbm %s1636_s3, 256 }
  0x30   : > { %p941_p7 = scmp.ne.s32.totalorder %s1636_s3, %s940_s19  ;;  %p947_p1 = scmp.lt.u32.totalorder %s940_s19, %s1636_s3 }
  0x32   : > { %p943_p9 = pnand %p941_p7, %p1321_p8 }
  0x34   : > { %p944_p4 = pneg %p943_p9 }
  0x36   : > { %p949_p3 = pnand %p947_p1, %p944_p4 }
  0x38   : > { %952 = shalt.err (!%p949_p3)
}
  0x39   : > { %s953_s10 = scalar_lea.vmem %s1309_s12, 256  ;;  %p961_p13 = scmp.lt.s32.totalorder %s1309_s12, %s1309_s12 }
  0x3a   : > { %p954_p10 = scmp.ne.s32.totalorder %s1309_s12, %s953_s10  ;;  %p962_p0 = scmp.lt.s32.totalorder %s953_s10, %s953_s10 }
  0x3c   : > { %p956_p11 = pnand %p954_p10, %p1321_p8  ;;  %p963_p2 = por %p962_p0, %p961_p13 }
  0x3e   : > { %p957_p12 = pneg %p956_p11 }
  0x40   : > { %p964_p5 = pnand %p963_p2, %p957_p12 }
  0x42   : > { %967 = shalt.err (!%p964_p5)
}
  0x43   : > { %s1209_s11 = smov 64   ;;  %s1210_s14 = smov 4  }
  0x44   : > { %820 = dma.hbm_to_vmem [thread:$0]  (!%p1305_p6), %s1636_s3, 256, %s1309_s12, [#allocation9], %s1209_s11, %s1209_s11, %s1210_s14  }
  0x45   : > { %s1651_s2 = sld [smem:[#allocation21_spill]] }
  0x4b   : > { %s968_s20 = scalar_lea.hbm %s1651_s2, 16 }
  0x4c   : > { %p969_p7 = scmp.ne.s32.totalorder %s1651_s2, %s968_s20  ;;  %p975_p1 = scmp.lt.u32.totalorder %s968_s20, %s1651_s2 }
  0x4e   : > { %p971_p9 = pnand %p969_p7, %p1321_p8 }
  0x50   : > { %p972_p4 = pneg %p971_p9 }
  0x52   : > { %p977_p3 = pnand %p975_p1, %p972_p4 }
  0x54   : > { %980 = shalt.err (!%p977_p3)
}
  0x55   : > { %s981_s16 = scalar_lea.vmem %s267_s15, 16  ;;  %s988_s12 = scalar_lea.vmem %s267_s15, 32 }
  0x56   : > { %p982_p10 = scmp.ne.s32.totalorder %s267_s15, %s981_s16  ;;  %p989_p13 = scmp.lt.s32.totalorder %s267_s15, %s267_s15 }
  0x57   : > { %p990_p0 = scmp.lt.s32.totalorder %s988_s12, %s981_s16 }
  0x58   : > { %p984_p11 = pnand %p982_p10, %p1321_p8 }
  0x59   : > { %p991_p2 = por %p990_p0, %p989_p13 }
  0x5a   : > { %p985_p12 = pneg %p984_p11 }
  0x5c   : > { %p992_p5 = pnand %p991_p2, %p985_p12 }
  0x5e   : > { %995 = shalt.err (!%p992_p5)
}
  0x5f   : > { %817 = dma.hbm_to_vmem [thread:$0]  (!%p1305_p6), %s1651_s2, 16, %s267_s15, [#allocation6]  }
  0x60   : > { %s1211_s17 = smov [#allocation10]   ;;  %s996_s22 = scalar_lea.hbm %s1637_s4, 16 }
  0x61   : > { %s290_s18 = sshll.u32 %s1211_s17, 4  ;;  %p997_p7 = scmp.ne.s32.totalorder %s1637_s4, %s996_s22  ;;  %s291_s18 = int_to_ptr.vmem [resolvable:$true] %s290_s18 }
  0x62   : > { %p1003_p1 = scmp.lt.u32.totalorder %s996_s22, %s1637_s4 }
  0x63   : > { %p999_p9 = pnand %p997_p7, %p1321_p8 }
  0x65   : > { %p1000_p4 = pneg %p999_p9 }
  0x67   : > { %p1005_p3 = pnand %p1003_p1, %p1000_p4 }
  0x69   : > { %1008 = shalt.err (!%p1005_p3)
}
  0x6a   : > { %s1009_s15 = scalar_lea.vmem %s291_s18, 16  ;;  %s1016_s12 = scalar_lea.vmem %s291_s18, 32 }
  0x6b   : > { %p1010_p10 = scmp.ne.s32.totalorder %s291_s18, %s1009_s15  ;;  %p1017_p13 = scmp.lt.s32.totalorder %s291_s18, %s291_s18 }
  0x6c   : > { %p1018_p0 = scmp.lt.s32.totalorder %s1016_s12, %s1009_s15 }
  0x6d   : > { %p1012_p11 = pnand %p1010_p10, %p1321_p8 }
  0x6e   : > { %p1019_p2 = por %p1018_p0, %p1017_p13 }
  0x6f   : > { %p1013_p12 = pneg %p1012_p11 }
  0x71   : > { %p1020_p5 = pnand %p1019_p2, %p1013_p12 }
  0x73   : > { %1023 = shalt.err (!%p1020_p5)
}
  0x74   : > { %823 = dma.hbm_to_vmem [thread:$0]  (!%p1305_p6), %s1637_s4, 16, %s291_s18, [#allocation9]  }
  0x75   : > { %s1643_s21 = sadd.s32 4294967294, %s1204_s29   ;;  %s41_s17 = sadd.s32 1, %s1200_s28 }
  0x76   : > { %p43_p8 = scmp.ge.s32.totalorder %s41_s17, 2  ;;  %s50_s13 = sadd.s32 1, %s1192_s26 }
  0x77   : > { %p57_p7 = scmp.ne.s32.totalorder %s1192_s26, %s1188_s25  ;;  %p58_p9 = scmp.eq.s32.totalorder %s1204_s29, 0 }
  0x78   : > { %s1673_s17 = smov (%p43_p8, %s41_s17), 0  ;;  %p63_p1 = scmp.ne.s32.totalorder %s1188_s25, %s1184_s24 }
  0x79   : > { %p1405_p4 = por %p58_p9, %p57_p7  ;;  %s45_s18 = ssub.s32 %s1200_s28, %s1673_s17 }
  0x7a   : > { %p173_p6 = scmp.eq.s32.totalorder %s1291_s30, 1  ;;  %p48_p3 = scmp.eq.s32.totalorder %s45_s18, 0 }
  0x7b   : > { %p1653_p10 = scmp.eq.s32.totalorder %s1291_s30, 0  ;;  %p179_p13 = scmp.eq.s32.totalorder %s1643_s21, 1 }
  0x7c   : > { %p1420_p12 = por %p173_p6, %p57_p7  ;;  %p842_p2 = scmp.lt.s32.totalorder %s1204_s29, 2 }
  0x7d   : > { %p1416_p11 = por %p1653_p10, %p63_p1  ;;  %p1429_p0 = por %p179_p13, %p63_p1 }
  0x7e   : > { %s1655_s22 = scalar_select %p1420_p12, 1, 0 }
  0x7f   : > { %s1427_s23 = scalar_select %p48_p3, %s1192_s26, %s50_s13  }
  0x80   : > { %s1656_s9 = scalar_select %p1429_p0, 1, 0 }
  0x81   : > { %s301_s10 = sand.u32 1, %s1192_s26   ;;  %s750_s16 = sshll.u32 %s1200_s28, 7 }
  0x82   : > { %s749_s15 = sshll.u32 %s301_s10, 3  ;;  %s1439_s14 = scalar_lea.hbm %s1633_s0, %s750_s16 }
  0x83   : > { %s305_s18 = scalar_lea.vmem [#allocation2], %s749_s15  ;;  %p1443_p5 = pnand %p842_p2, %p1405_p4 }
  0x84   : > { %s313_s13 = sshll.u32 %s305_s18, 4  ;;  %s302_s1 = scalar_lea.sflag [#allocation3], %s301_s10  ;;  %s1447_s13 = int_to_ptr.vmem [resolvable:$true] %s313_s13 }
  0x85   : > { %s1024_s2 = scalar_lea.hbm %s1439_s14, 128  ;;  %p1026_p7 = pneg %p1443_p5 }
  0x86   : > { %p1025_p8 = scmp.ne.s32.totalorder %s1439_s14, %s1024_s2  ;;  %s1029_s19 = scalar_lea.hbm %s1633_s0, 256 }
  0x87   : > { %p1030_p4 = scmp.lt.u32.totalorder %s1439_s14, %s1633_s0  ;;  %p1031_p6 = scmp.lt.u32.totalorder %s1029_s19, %s1024_s2 }
  0x88   : > { %p1027_p9 = pnand %p1026_p7, %p1025_p8  ;;  %p1033_p10 = scmp.lt.u32.totalorder %s1024_s2, %s1439_s14 }
  0x89   : > { %p1032_p3 = por %p1031_p6, %p1030_p4 }
  0x8a   : > { %p1028_p1 = pneg %p1027_p9 }
  0x8b   : > { %p1034_p13 = por %p1033_p10, %p1032_p3 }
  0x8d   : > { %p1035_p2 = pnand %p1034_p13, %p1028_p1 }
  0x8f   : > { %1038 = shalt.err (!%p1035_p2)
}
  0x90   : > { %s1039_s10 = scalar_lea.vmem %s1447_s13, 128  ;;  %s1212_s18 = smov [#allocation2]  }
  0x91   : > { %p1040_p8 = scmp.ne.s32.totalorder %s1447_s13, %s1039_s10  ;;  %s1044_s16 = sshll.u32 %s1212_s18, 4  ;;  %s1045_s16 = int_to_ptr.vmem [resolvable:$false] %s1044_s16 }
  0x92   : > { %s1046_s15 = scalar_lea.vmem %s1045_s16, 256  ;;  %p1047_p12 = scmp.lt.s32.totalorder %s1447_s13, %s1045_s16 }
  0x93   : > { %p1042_p9 = pnand %p1040_p8, %p1026_p7  ;;  %p1048_p4 = scmp.lt.s32.totalorder %s1046_s15, %s1039_s10 }
  0x95   : > { %p1043_p0 = pneg %p1042_p9  ;;  %p1049_p6 = por %p1048_p4, %p1047_p12 }
  0x97   : > { %p1050_p3 = pnand %p1049_p6, %p1043_p0 }
  0x99   : > { %1053 = shalt.err (!%p1050_p3)
}
  0x9a   : > { %827 = dma.hbm_to_vmem [thread:$0]  (!%p1443_p5), %s1439_s14, 128, %s1447_s13, %s302_s1  }
  0x9b   : > { %p1658_p1 = scmp.ne.s32.totalorder %s1647_s8, 0 }
  0x9c   : > { %s1477_s2 = sand.u32 (!%p1658_p1), 1, %s1188_s25  }
  0x9d   : > { %322 = sbr.rel (%p1658_p1) target bundleno = 869 (0x365), region = 40  ;;  %s752_s19 = sshll.u32 (!%p1658_p1), %s1477_s2, 3 }
  0x9e   : > { %s325_s12 = scalar_lea.sflag (!%p1658_p1), [#allocation3], %s1477_s2  ;;  %s328_s11 = scalar_lea.vmem (!%p1658_p1), [#allocation2], %s752_s19 }
  0xa4   : > { %1163 = dma.done.wait (%p1416_p11), %s325_s12, 128  }
  0xa5   : > { %1165 = vsyncadd (%p1416_p11), %s325_s12, 4294967168  ;;  %p1659_p12 = scmp.eq.s32.totalorder %s1291_s30, 0 }
  0xa7   : > { %1167 = dma.done.wait (%p1659_p12), [#allocation6], 32   ;;  %p1660_p0 = pmov %p1659_p12 }
  0xa9   : > { %1169 = vsyncadd (%p1660_p0), [#allocation6], 4294967264  ;;  %p1661_p5 = pmov %p1660_p0 }
  0xaa   : > { %p1662_p7 = pmov %p1660_p0 }
  0xab   : > { %1171 = dma.done.wait (%p1661_p5), [#allocation9], 272  }
  0xac   : > { %1173 = vsyncadd (%p1662_p7), [#allocation9], 4294967024  ;;  %vm389_vm0 = vcmask 261120   ;;  %v386_v0 = vld [vmem:[%s328_s11] sm:$0xff]  ;;  %v906_v7 = vld [vmem:[#allocation8] sm:$0xff]   ;;  %v1213_v8 = vmov 0.0  }
  0xad   : > { %v390_v1 = vsel %vm389_vm0, %v386_v0, 0.0  ;;  %779 = vmatprep.subr.bf16.mxu0 %v1213_v8  ;;  %vm1214_vm1 = vmmov 0   ;;  %v907_v9 = vld [vmem:[#allocation8 + $0x8] sm:$0xff]   ;;  %v760_v18 = vld [vmem:[#allocation5] ss:$0 sm:$0xff]  ;;  %s1497_s1 = sshll.u32 %s1477_s2, 2 }
  0xae   : > { %391 = vadd.xlane.f32.xlu0 %v390_v1  ;;  %783 = vmatprep.mubr.msk.bf16.mxu0 %vm1214_vm1, %v1213_v8  ;;  %v761_v21 = vld [vmem:[#allocation7] ss:$0 sm:$0xff]  ;;  %v762_v25 = vld [vmem:[#allocation10] ss:$0 sm:$0xff]  ;;  %s1500_s8 = sshll.u32 %s1196_s27, 6  ;;  %s370_s21 = scalar_lea.vmem [#allocation11], %s1497_s1 }
  0xaf   : > { %780 = vmatpush3.bf16.msra.mxu0 %v906_v7  ;;  %s532_s20 = sshll.u32 %s370_s21, 4  ;;  %vm494_vm4 = vcmask 257024   ;;  %s1507_s10 = scalar_lea.hbm %s1638_s5, %s1500_s8  ;;  %s1509_s20 = int_to_ptr.vmem [resolvable:$true] %s532_s20 }
  0xb0   : > { %781 = vmatprep.subr.bf16.mxu0 %v1213_v8  ;;  %s1215_s27 = smov 96   ;;  %s508_s18 = scalar_lea.sflag [#allocation4], %s1477_s2 }
  0xb1   : > { %s1054_s16 = scalar_lea.vmem %s1509_s20, 64  ;;  %p1663_p10 = scmp.ne.s32.totalorder %s1655_s22, 0 }
  0xb2   : > { %p1055_p11 = scmp.ne.s32.totalorder %s1509_s20, %s1054_s16  ;;  %s1216_s15 = smov [#allocation11]  }
  0xb3   : > { %782 = vmatpush3.bf16.msra.mxu0 %v907_v9  ;;  %s1058_s19 = sshll.u32 %s1216_s15, 4  ;;  %s1059_s19 = int_to_ptr.vmem [resolvable:$false] %s1058_s19 }
  0xb4   : > { %p1056_p13 = pnand %p1055_p11, %p1663_p10  ;;  %s1060_s12 = scalar_lea.vmem %s1059_s19, 128 }
  0xb5   : > { %p1061_p8 = scmp.lt.s32.totalorder %s1509_s20, %s1059_s19  ;;  %p1062_p9 = scmp.lt.s32.totalorder %s1060_s12, %s1054_s16 }
  0xb6   : > { %p1057_p2 = pneg %p1056_p13 }
  0xb7   : > { %p1063_p4 = por %p1062_p9, %p1061_p8 }
  0xb9   : > { %p1064_p6 = pnand %p1063_p4, %p1057_p2 }
 0x13b   : > { %v392_v2 = vpop.xlane.xlu0 %391 }
 0x13c   : > { %v394_v3 = vmul.f32 0.03125, %v392_v2 }
 0x13e   : > { %v395_v4 = vsub.f32 %v386_v0, %v394_v3 }
 0x140   : > { %v396_v5 = vmul.f32 %v395_v4, %v395_v4  ;;  %v417_v19 = vmul.f32 %v760_v18, %v395_v4 }
 0x142   : > { %v397_v6 = vsel %vm389_vm0, %v396_v5, 0.0 }
 0x143   : > { %398 = vadd.xlane.f32.xlu0 %v397_v6 }
 0x1d0   : > { %v399_v10 = vpop.xlane.xlu0 %398 }
 0x1d1   : > { %v400_v11 = vmul.f32 0.03125, %v399_v10 }
 0x1d3   : > { %908 = vrsqrt.f32 %v400_v11  ;;  %vm403_vm2 = vcmp.eq.f32.partialorder %v400_v11, inf  ;;  %v406_v14 = vand.u32 2147483648, %v400_v11  ;;  %vm405_vm3 = vcmp.eq.f32.partialorder %v400_v11, 0.0 }
 0x1dd   : > { %v909_v12 = vpop.eup %908 }
 0x1de   : > { %v402_v13 = vmul.f32 %v909_v12, %v400_v11 }
 0x1e0   : > { %v404_v15 = vsel %vm403_vm2, %v400_v11, %v402_v13 }
 0x1e1   : > { %v407_v16 = vsel %vm405_vm3, %v406_v14, %v404_v15 }
 0x1e2   : > { %v408_v17 = vadd.f32 1e-06, %v407_v16 }
 0x1e4   : > { %910 = vrcp.f32 %v408_v17 }
 0x1ee   : > { %v911_v20 = vpop.eup %910 }
 0x1ef   : > { %v418_v22 = vmul.f32 %v911_v20, %v417_v19 }
 0x1f1   : > { %v425_v23 = vadd.f32 %v761_v21, %v418_v22 }
 0x1f3   : > { %v426_v24 = vpack.c.bf16 %v425_v23, %v425_v23 }
 0x1f5   : > { %784 = vmatmul.mubr.msk.bf16.vlgmr.msra.gmra.mrb[0].mxu0 %vm389_vm0, %v426_v24 }
 0x2c8   : > { %v487_v26 = vpop.f32.mrb[0].mxu0 }
 0x2c9   : > { %v488_v27 = vadd.f32 %v762_v25, %v487_v26  ;;  %v785_v28 = vpop.f32.mrb[1].mxu0 }
 0x2ca   : > { %v490_v29 = vpop.f32.mrb[2].mxu0 }
 0x2cb   : > { %v493_v30 = vpack.c.bf16 %v488_v27, %v488_v27  ;;  %v786_v31 = vpop.f32.mrb[3].mxu0 }
 0x2cd   : > { %499 = vrot.lane.b32.xlu1 %v493_v30, %s1215_s27  ;;  %495 = vst.msk [vmem:[%s370_s21] sm:$0xf] %vm494_vm4, %v493_v30 }
 0x2ce   : > { %1067 = shalt.err (!%p1064_p6)
}
 0x2cf   : > { %s1068_s2 = scalar_lea.hbm %s1507_s10, 64  ;;  %s1072_s14 = scalar_lea.hbm %s1638_s5, 128 }
 0x2d0   : > { %p1069_p3 = scmp.ne.s32.totalorder %s1507_s10, %s1068_s2  ;;  %p1073_p0 = scmp.lt.u32.totalorder %s1507_s10, %s1638_s5 }
 0x2d1   : > { %p1074_p5 = scmp.lt.u32.totalorder %s1072_s14, %s1068_s2  ;;  %p1076_p11 = scmp.lt.u32.totalorder %s1068_s2, %s1507_s10 }
 0x2d2   : > { %p1070_p1 = pnand %p1069_p3, %p1663_p10 }
 0x2d3   : > { %p1075_p7 = por %p1074_p5, %p1073_p0 }
 0x2d4   : > { %p1071_p12 = pneg %p1070_p1 }
 0x2d5   : > { %p1077_p13 = por %p1076_p11, %p1075_p7 }
 0x2d7   : > { %p1078_p2 = pnand %p1077_p13, %p1071_p12 }
 0x2d9   : > { %1081 = shalt.err (!%p1078_p2)
}
 0x2da   : > { %805 = dma.vmem_to_hbm [thread:$0]  (%p1663_p10), %s1509_s20, 64, %s1507_s10, %s508_s18  }
 0x2db   : > { %s1217_s16 = smov 64   ;;  %s512_s15 = sand.u32 1, %s1291_s30  }
 0x2dc   : > { %503 = vrot.lane.b32.xlu1 %v493_v30, %s1217_s16  ;;  %s377_s19 = scalar_lea.vmem [#allocation12], %s1497_s1  ;;  %s1540_s21 = scalar_lea.hbm %s1639_s6, %s1500_s8 }
 0x2dd   : > { %s546_s12 = sshll.u32 %s377_s19, 4  ;;  %s384_s14 = scalar_lea.vmem [#allocation14], %s1497_s1  ;;  %s1542_s12 = int_to_ptr.vmem [resolvable:$true] %s546_s12 }
 0x2de   : > { %s1547_s13 = sshll.u32 %s384_s14, 4  ;;  %s1550_s30 = scalar_lea.sflag [#allocation13], %s512_s15  ;;  %s1581_s13 = int_to_ptr.vmem [resolvable:$true] %s1547_s13 }
 0x2df   : > { %s1082_s20 = scalar_lea.vmem %s1542_s12, 64  ;;  %s1218_s10 = smov [#allocation12]  }
 0x2e0   : > { %p1083_p8 = scmp.ne.s32.totalorder %s1542_s12, %s1082_s20  ;;  %s1086_s18 = sshll.u32 %s1218_s10, 4  ;;  %s1087_s18 = int_to_ptr.vmem [resolvable:$false] %s1086_s18 }
 0x2e1   : > { %s1088_s27 = scalar_lea.vmem %s1087_s18, 128  ;;  %p1089_p6 = scmp.lt.s32.totalorder %s1542_s12, %s1087_s18 }
 0x2e2   : > { %p1084_p9 = pnand %p1083_p8, %p1663_p10  ;;  %p1090_p3 = scmp.lt.s32.totalorder %s1088_s27, %s1082_s20 }
 0x2e4   : > { %p1085_p4 = pneg %p1084_p9  ;;  %p1091_p1 = por %p1090_p3, %p1089_p6 }
 0x2e6   : > { %p1092_p12 = pnand %p1091_p1, %p1085_p4 }
 0x33f   : > { %v500_v32 = vpop.permute.xlu1 %499 }
 0x340   : > { %502 = vst.msk [vmem:[%s377_s19] sm:$0xf] %vm494_vm4, %v500_v32 }
 0x341   : > { %1095 = shalt.err (!%p1092_p12)
}
 0x342   : > { %s1096_s16 = scalar_lea.hbm %s1540_s21, 64  ;;  %s1100_s2 = scalar_lea.hbm %s1639_s6, 128 }
 0x343   : > { %p1097_p0 = scmp.ne.s32.totalorder %s1540_s21, %s1096_s16  ;;  %p1101_p11 = scmp.lt.u32.totalorder %s1540_s21, %s1639_s6 }
 0x344   : > { %p1102_p13 = scmp.lt.u32.totalorder %s1100_s2, %s1096_s16  ;;  %p1104_p8 = scmp.lt.u32.totalorder %s1096_s16, %s1540_s21 }
 0x345   : > { %p1098_p5 = pnand %p1097_p0, %p1663_p10 }
 0x346   : > { %p1103_p2 = por %p1102_p13, %p1101_p11 }
 0x347   : > { %p1099_p7 = pneg %p1098_p5 }
 0x348   : > { %p1105_p9 = por %p1104_p8, %p1103_p2 }
 0x34a   : > { %p1106_p4 = pnand %p1105_p9, %p1099_p7 }
 0x34c   : > { %1109 = shalt.err (!%p1106_p4)
}
 0x34d   : > { %806 = dma.vmem_to_hbm [thread:$0]  (%p1663_p10), %s1542_s12, 64, %s1540_s21, %s1550_s30  }
 0x34e   : > { %s1578_s27 = scalar_lea.hbm %s1640_s7, %s1500_s8  ;;  %v504_v33 = vpop.permute.xlu1 %503  ;;  %s1110_s16 = scalar_lea.vmem %s1581_s13, 64 }
 0x34f   : > { %506 = vst.msk [vmem:[%s384_s14] sm:$0xf] %vm494_vm4, %v504_v33  ;;  %p1111_p6 = scmp.ne.s32.totalorder %s1581_s13, %s1110_s16  ;;  %s1219_s12 = smov [#allocation14]  }
 0x350   : > { %s1114_s21 = sshll.u32 %s1219_s12, 4  ;;  %s1115_s21 = int_to_ptr.vmem [resolvable:$false] %s1114_s21 }
 0x351   : > { %p1112_p3 = pnand %p1111_p6, %p1663_p10  ;;  %s1116_s15 = scalar_lea.vmem %s1115_s21, 128 }
 0x352   : > { %p1117_p12 = scmp.lt.s32.totalorder %s1581_s13, %s1115_s21  ;;  %p1118_p0 = scmp.lt.s32.totalorder %s1116_s15, %s1110_s16 }
 0x353   : > { %p1113_p1 = pneg %p1112_p3 }
 0x354   : > { %p1119_p5 = por %p1118_p0, %p1117_p12 }
 0x356   : > { %p1120_p7 = pnand %p1119_p5, %p1113_p1 }
 0x358   : > { %1123 = shalt.err (!%p1120_p7)
}
 0x359   : > { %s1124_s1 = scalar_lea.hbm %s1578_s27, 64  ;;  %s1128_s19 = scalar_lea.hbm %s1640_s7, 128 }
 0x35a   : > { %p1125_p11 = scmp.ne.s32.totalorder %s1578_s27, %s1124_s1  ;;  %p1129_p8 = scmp.lt.u32.totalorder %s1578_s27, %s1640_s7 }
 0x35b   : > { %p1130_p9 = scmp.lt.u32.totalorder %s1128_s19, %s1124_s1  ;;  %p1132_p6 = scmp.lt.u32.totalorder %s1124_s1, %s1578_s27 }
 0x35c   : > { %p1126_p13 = pnand %p1125_p11, %p1663_p10 }
 0x35d   : > { %p1131_p4 = por %p1130_p9, %p1129_p8 }
 0x35e   : > { %p1127_p2 = pneg %p1126_p13 }
 0x35f   : > { %p1133_p3 = por %p1132_p6, %p1131_p4 }
 0x361   : > { %p1134_p1 = pnand %p1133_p3, %p1127_p2 }
 0x363   : > { %1137 = shalt.err (!%p1134_p1)
}
 0x364   : > { %807 = dma.vmem_to_hbm [thread:$0]  (%p1663_p10), %s1581_s13, 64, %s1578_s27, %s1550_s30  }
 0x365 PF: > { %s572_s10 = sand.u32 1, %s1184_s24   ;;  %p1664_p12 = scmp.ne.s32.totalorder %s1656_s9, 0 }
 0x366   : > { %p1665_p0 = scmp.ge.s32.totalorder %s1204_s29, 2  ;;  %s573_s20 = scalar_lea.sflag [#allocation4], %s572_s10 }
 0x368   : > { %p829_p5 = pnand %p1665_p0, %p1664_p12 }
 0x36a   : > { %1175 = dma.done.wait (!%p829_p5), %s573_s20, 64  }
 0x36b   : > { %1177 = vsyncadd (!%p829_p5), %s573_s20, 4294967232  ;;  %s1666_s18 = sadd.s32 4294967294, %s1204_s29  }
 0x36c   : > { %s581_s16 = sand.u32 1, %s1666_s18  }
 0x36d   : > { %s582_s12 = scalar_lea.sflag [#allocation13], %s581_s16 }
 0x36e   : > { %1179 = dma.done.wait (!%p829_p5), %s582_s12, 128  }
 0x36f   : > { %1181 = vsyncadd (!%p829_p5), %s582_s12, 4294967168  ;;  %s29_s29 = sadd.s32 1, %s1204_s29   ;;  %s1667_s24 = smov %s1188_s25 }
 0x370   : > { %p26_p10 = scmp.ge.s32.totalorder %s29_s29, 4   ;;  %s1668_s25 = smov %s1192_s26 }
 0x371   : > { %s1669_s26 = smov %s1427_s23  ;;  %s1670_s27 = smov %s1200_s28 }
 0x372   : > { %s1671_s28 = smov %s1673_s17  ;;  %28 = sbr.rel (!%p26_p10) target bundleno = 13 (0xd), region = 133 }
 0x379   :  { %596 = vsyncpa [#allocation3], 1 }
 0x37a   :  { %598 = vsyncpa [#allocation3 + $0x1], 1 }
 0x37b   :  { %599 = vsyncpa [#allocation6], 1 }
 0x37c   :  { %600 = vsyncpa [#allocation9], 1 }
 0x37d   :  { %601 = vsyncpa [#allocation4], 1 }
 0x37e   :  { %603 = vsyncpa [#allocation4 + $0x1], 1 }
 0x37f   :  { %604 = vsyncpa [#allocation13], 1 }
 0x380   :  { %606 = vsyncpa [#allocation13 + $0x1], 1 }

// kernel: _lambda_.3
= control target key start
LH: loop header
LB: loop body
LE: loop exit
PB: predicated region body
PF: predicated region fallthrough
CT: control target
= control target key end

     0   :  { %s3531_s0 = inlined_call_operand.hbm [shape: f32[2,8,32], index: 0, kind: input, shape index: {}]   ;;  %s3532_s1 = inlined_call_operand.hbm [shape: bf16[2,8,32], index: 1, kind: input, shape index: {}]   ;;  %s3533_s2 = inlined_call_operand.hbm [shape: bf16[2,8,32], index: 2, kind: input, shape index: {}]   ;;  %s3534_s3 = inlined_call_operand.hbm [shape: bf16[2,8,32], index: 3, kind: input, shape index: {}]   ;;  %s3535_s4 = inlined_call_operand.hbm [shape: f32[2,1,8], index: 4, kind: input, shape index: {}]   ;;  %s3536_s5 = inlined_call_operand.hbm [shape: bf16[32,32], index: 5, kind: input, shape index: {}]   ;;  %s3537_s6 = inlined_call_operand.hbm [shape: f32[1,32], index: 6, kind: input, shape index: {}]   ;;  %s3538_s7 = inlined_call_operand.hbm [shape: f32[1,32], index: 7, kind: input, shape index: {}]   ;;  %s3539_s8 = inlined_call_operand.hbm [shape: f32[1,32], index: 8, kind: input, shape index: {}]   ;;  %s3540_s9 = inlined_call_operand.hbm [shape: bf16[1,32,64], index: 9, kind: input, shape index: {}]   ;;  %s3541_s10 = inlined_call_operand.hbm [shape: f32[1,1,64], index: 10, kind: input, shape index: {}]   ;;  %s3542_s11 = inlined_call_operand.hbm [shape: bf16[1,64,32], index: 11, kind: input, shape index: {}]   ;;  %s3543_s12 = inlined_call_operand.hbm [shape: f32[1,32], index: 12, kind: input, shape index: {}]   ;;  %s3544_s13 = inlined_call_operand.hbm [shape: f32[2,8,32], index: 13, kind: output, shape index: {}]  }
   0x1   :  { %3568 = sst [smem:[#allocation42_spill]] %s3531_s0 }
   0x2   :  { %3569 = sst [smem:[#allocation43_spill]] %s3532_s1 }
   0x3   :  { %3570 = sst [smem:[#allocation44_spill]] %s3533_s2 }
   0x4   :  { %3571 = sst [smem:[#allocation45_spill]] %s3534_s3 }
   0x5   :  { %3572 = sst [smem:[#allocation46_spill]] %s3535_s4 }
   0x6   :  { %3573 = sst [smem:[#allocation47_spill]] %s3536_s5 }
   0x7   :  { %3574 = sst [smem:[#allocation48_spill]] %s3538_s7 }
   0x8   :  { %3575 = sst [smem:[#allocation49_spill]] %s3540_s9 }
   0x9   :  { %3576 = sst [smem:[#allocation50_spill]] %s3542_s11 }
   0xa   :  { %3577 = sst [smem:[#allocation51_spill]] %s3543_s12 }
   0xb   :  { %3578 = sst [smem:[#allocation52_spill]] %s3544_s13 }
   0xc   :  { %18 = vsyncpa [#allocation6], 0 }
   0xd   :  { %20 = vsyncpa [#allocation6 + $0x1], 0 }
   0xe   :  { %21 = vsyncpa [#allocation9], 0 }
   0xf   :  { %23 = vsyncpa [#allocation9 + $0x1], 0 }
  0x10   :  { %24 = vsyncpa [#allocation12], 0 }
  0x11   :  { %26 = vsyncpa [#allocation12 + $0x1], 0 }
  0x12   :  { %27 = vsyncpa [#allocation15], 0 }
  0x13   :  { %28 = vsyncpa [#allocation18], 0 }
  0x14   :  { %29 = vsyncpa [#allocation21], 0 }
  0x15   :  { %30 = vsyncpa [#allocation24], 0 }
  0x16   :  { %31 = vsyncpa [#allocation7], 0 }
  0x17   :  { %33 = vsyncpa [#allocation7 + $0x1], 0  ;;  %s2854_s25 = smov 0   ;;  %s2856_s26 = smov 0  }
  0x18   :  { %s2858_s27 = smov 0   ;;  %s2860_s28 = smov 0  }
  0x19   :  { %s2862_s29 = smov 0   ;;  %s2864_s30 = smov 0  }
  0x1a LB: > { %3579 = sst [smem:[#allocation35_spill]] %s2735_s25  ;;  %s2885_s14 = sadd.s32 4294967295, %s2755_s30   ;;  %s2755_s30 = sphi %s2864_s30, %s39_s30   ;;  %s2751_s29 = sphi %s2862_s29, %s3638_s29   ;;  %s2747_s28 = sphi %s2860_s28, %s3637_s28   ;;  %s2743_s27 = sphi %s2858_s27, %s3633_s27   ;;  %s2739_s26 = sphi %s2856_s26, %s3636_s26   ;;  %s2735_s25 = sphi %s2854_s25, %s3635_s25  }
  0x1b   : > { %3580 = sst [smem:[#allocation36_spill]] %s2743_s27  ;;  %p1891_p0 = scmp.ge.s32.totalorder %s2755_s30, 1 }
  0x1c   : > { %3581 = sst [smem:[#allocation37_spill]] %s2747_s28  ;;  %p3551_p1 = scmp.eq.s32.totalorder %s2885_s14, 0 }
  0x1d   : > { %p399_p2 = scmp.lt.s32.totalorder %s2755_s30, 3  ;;  %s2757_s16 = smov [#allocation14]  }
  0x1e   : > { %s411_s17 = sshll.u32 %s2757_s16, 4  ;;  %s2758_s19 = smov [#allocation17]   ;;  %s2894_s17 = int_to_ptr.vmem [resolvable:$true] %s411_s17 }
  0x1f   : > { %p2890_p3 = pnand %p1891_p0, %p399_p2  ;;  %s436_s20 = sshll.u32 %s2758_s19, 4  ;;  %s2905_s20 = int_to_ptr.vmem [resolvable:$true] %s436_s20 }
  0x20   : > { %s2759_s21 = smov [#allocation20]   ;;  %s3585_s5 = sld [smem:[#allocation47_spill]] }
  0x21   : > { %s3582_s15 = scalar_select %p2890_p3, 1, 0 }
  0x22   : > { %p2102_p4 = pneg %p2890_p3  ;;  %s2907_s22 = sshll.u32 %s2759_s21, 4  ;;  %s458_s22 = int_to_ptr.vmem [resolvable:$true] %s2907_s22 }
  0x23   : > { %3583 = sst [smem:[#allocation38_spill]] %s3582_s15 }
  0x24   : > { %p2901_p6 = pnand %p2102_p4, %p3551_p1 }
  0x26   : > { %s3584_s18 = scalar_select %p2901_p6, 1, 0 }
  0x27   : > { %s2275_s16 = scalar_lea.hbm %s3585_s5, 256  ;;  %p2917_p8 = pneg %p2901_p6 }
  0x28   : > { %p2276_p7 = scmp.ne.s32.totalorder %s3585_s5, %s2275_s16  ;;  %p2282_p11 = scmp.lt.u32.totalorder %s2275_s16, %s3585_s5 }
  0x29   : > { %s3586_s15 = scalar_select %p2917_p8, 1, 0 }
  0x2a   : > { %p2278_p9 = pnand %p2917_p8, %p2276_p7 }
  0x2c   : > { %p2279_p10 = pneg %p2278_p9 }
  0x2e   : > { %p2284_p12 = pnand %p2282_p11, %p2279_p10 }
  0x30   : > { %2287 = shalt.err (!%p2284_p12)
}
  0x31   : > { %s2288_s13 = scalar_lea.vmem %s2894_s17, 256  ;;  %p2296_p4 = scmp.lt.s32.totalorder %s2894_s17, %s2894_s17 }
  0x32   : > { %p2289_p13 = scmp.ne.s32.totalorder %s2894_s17, %s2288_s13  ;;  %p2297_p5 = scmp.lt.s32.totalorder %s2288_s13, %s2288_s13 }
  0x34   : > { %p2291_p0 = pnand %p2289_p13, %p2917_p8  ;;  %p2298_p7 = por %p2297_p5, %p2296_p4 }
  0x36   : > { %p2292_p2 = pneg %p2291_p0 }
  0x38   : > { %p2299_p9 = pnand %p2298_p7, %p2292_p2 }
  0x3a   : > { %2302 = shalt.err (!%p2299_p9)
}
  0x3b   : > { %s2760_s28 = smov 64   ;;  %s2761_s23 = smov 4  }
  0x3c   : > { %2105 = dma.hbm_to_vmem [thread:$0]  (!%p2901_p6), %s3585_s5, 256, %s2894_s17, [#allocation15], %s2760_s28, %s2760_s28, %s2761_s23  }
  0x3d   : > { %s3587_s7 = sld [smem:[#allocation48_spill]] }
  0x43   : > { %s2303_s13 = scalar_lea.hbm %s3587_s7, 16 }
  0x44   : > { %p2304_p5 = scmp.ne.s32.totalorder %s3587_s7, %s2303_s13  ;;  %p2310_p12 = scmp.lt.u32.totalorder %s2303_s13, %s3587_s7 }
  0x46   : > { %p2306_p10 = pnand %p2304_p5, %p2917_p8 }
  0x48   : > { %p2307_p11 = pneg %p2306_p10 }
  0x4a   : > { %p2312_p13 = pnand %p2310_p12, %p2307_p11 }
  0x4c   : > { %2315 = shalt.err (!%p2312_p13)
}
  0x4d   : > { %s2316_s17 = scalar_lea.vmem %s2905_s20, 16  ;;  %s2323_s2 = scalar_lea.vmem %s2905_s20, 32 }
  0x4e   : > { %p2317_p0 = scmp.ne.s32.totalorder %s2905_s20, %s2316_s17  ;;  %p2324_p7 = scmp.lt.s32.totalorder %s2905_s20, %s2905_s20 }
  0x4f   : > { %p2325_p9 = scmp.lt.s32.totalorder %s2323_s2, %s2316_s17 }
  0x50   : > { %p2319_p2 = pnand %p2317_p0, %p2917_p8 }
  0x51   : > { %p2326_p5 = por %p2325_p9, %p2324_p7 }
  0x52   : > { %p2320_p4 = pneg %p2319_p2 }
  0x54   : > { %p2327_p10 = pnand %p2326_p5, %p2320_p4 }
  0x56   : > { %2330 = shalt.err (!%p2327_p10)
}
  0x57   : > { %2111 = dma.hbm_to_vmem [thread:$0]  (!%p2901_p6), %s3587_s7, 16, %s2905_s20, [#allocation18]  }
  0x58   : > { %s3588_s9 = sld [smem:[#allocation49_spill]] }
  0x5e   : > { %s2331_s16 = scalar_lea.hbm %s3588_s9, 256 }
  0x5f   : > { %p2332_p11 = scmp.ne.s32.totalorder %s3588_s9, %s2331_s16  ;;  %p2338_p0 = scmp.lt.u32.totalorder %s2331_s16, %s3588_s9 }
  0x61   : > { %p2334_p12 = pnand %p2332_p11, %p2917_p8 }
  0x63   : > { %p2335_p13 = pneg %p2334_p12 }
  0x65   : > { %p2340_p2 = pnand %p2338_p0, %p2335_p13 }
  0x67   : > { %2343 = shalt.err (!%p2340_p2)
}
  0x68   : > { %s2344_s2 = scalar_lea.vmem %s458_s22, 256  ;;  %p2352_p5 = scmp.lt.s32.totalorder %s458_s22, %s458_s22 }
  0x69   : > { %p2345_p4 = scmp.ne.s32.totalorder %s458_s22, %s2344_s2  ;;  %p2353_p10 = scmp.lt.s32.totalorder %s2344_s2, %s2344_s2 }
  0x6b   : > { %p2347_p7 = pnand %p2345_p4, %p2917_p8  ;;  %p2354_p1 = por %p2353_p10, %p2352_p5 }
  0x6d   : > { %p2348_p9 = pneg %p2347_p7 }
  0x6f   : > { %p2355_p3 = pnand %p2354_p1, %p2348_p9 }
  0x71   : > { %2358 = shalt.err (!%p2355_p3)
}
  0x72   : > { %2117 = dma.hbm_to_vmem [thread:$0]  (!%p2901_p6), %s3588_s9, 256, %s458_s22, [#allocation21], %s2760_s28, %s2760_s28, %s2761_s23  }
  0x73   : > { %s2762_s4 = smov [#allocation23]   ;;  %s3589_s11 = sld [smem:[#allocation50_spill]] }
  0x74   : > { %s481_s12 = sshll.u32 %s2762_s4, 4  ;;  %s482_s12 = int_to_ptr.vmem [resolvable:$true] %s481_s12 }
  0x79   : > { %s2359_s19 = scalar_lea.hbm %s3589_s11, 512 }
  0x7a   : > { %p2360_p1 = scmp.ne.s32.totalorder %s3589_s11, %s2359_s19  ;;  %p2366_p12 = scmp.lt.u32.totalorder %s2359_s19, %s3589_s11 }
  0x7c   : > { %p2362_p3 = pnand %p2360_p1, %p2917_p8 }
  0x7e   : > { %p2363_p11 = pneg %p2362_p3 }
  0x80   : > { %p2368_p13 = pnand %p2366_p12, %p2363_p11 }
  0x82   : > { %2371 = shalt.err (!%p2368_p13)
}
  0x83   : > { %s2372_s22 = scalar_lea.vmem %s482_s12, 512  ;;  %p2380_p7 = scmp.lt.s32.totalorder %s482_s12, %s482_s12 }
  0x84   : > { %p2373_p0 = scmp.ne.s32.totalorder %s482_s12, %s2372_s22  ;;  %p2381_p9 = scmp.lt.s32.totalorder %s2372_s22, %s2372_s22 }
  0x86   : > { %p2375_p2 = pnand %p2373_p0, %p2917_p8  ;;  %p2382_p5 = por %p2381_p9, %p2380_p7 }
  0x88   : > { %p2376_p4 = pneg %p2375_p2 }
  0x8a   : > { %p2383_p10 = pnand %p2382_p5, %p2376_p4 }
  0x8c   : > { %2386 = shalt.err (!%p2383_p10)
}
  0x8d   : > { %2123 = dma.hbm_to_vmem [thread:$0]  (!%p2901_p6), %s3589_s11, 512, %s482_s12, [#allocation24], %s2760_s28, %s2760_s28, %s2761_s23  }
  0x8e   : > { %s1890_s4 = sadd.s32 4294967294, %s2755_s30   ;;  %s58_s24 = sadd.s32 1, %s2751_s29 }
  0x8f   : > { %p60_p1 = scmp.ge.s32.totalorder %s58_s24, 2  ;;  %s67_s16 = sadd.s32 1, %s2743_s27 }
  0x90   : > { %p74_p3 = scmp.ne.s32.totalorder %s2743_s27, %s2739_s26  ;;  %p75_p11 = scmp.eq.s32.totalorder %s2755_s30, 0 }
  0x91   : > { %s3640_s24 = smov (%p60_p1, %s58_s24), 0  ;;  %p80_p13 = scmp.ne.s32.totalorder %s2739_s26, %s2735_s25 }
  0x92   : > { %3590 = sst [smem:[#allocation39_spill]] %s3640_s24  ;;  %p3016_p12 = por %p75_p11, %p74_p3 }
  0x93   : > { %s62_s28 = ssub.s32 %s2751_s29, %s3640_s24  ;;  %p386_p0 = scmp.eq.s32.totalorder %s2885_s14, 1 }
  0x94   : > { %p65_p2 = scmp.eq.s32.totalorder %s62_s28, 0  ;;  %p3592_p4 = scmp.eq.s32.totalorder %s2885_s14, 0 }
  0x95   : > { %p3031_p9 = por %p386_p0, %p74_p3  ;;  %p392_p5 = scmp.eq.s32.totalorder %s1890_s4, 1 }
  0x96   : > { %p3027_p7 = por %p3592_p4, %p80_p13  ;;  %p2155_p1 = scmp.lt.s32.totalorder %s2755_s30, 2 }
  0x97   : > { %s3594_s12 = scalar_select %p3031_p9, 1, 0 }
  0x98   : > { %s3593_s23 = scalar_select %p3027_p7, 1, 0 }
  0x99   : > { %s3036_s21 = scalar_select %p65_p2, %s2743_s27, %s67_s16  }
  0x9a   : > { %p3038_p10 = por %p392_p5, %p80_p13  ;;  %s3044_s17 = sand.u32 1, %s2743_s27  }
  0x9b   : > { %3595 = sst [smem:[#allocation40_spill]] %s3036_s21  ;;  %p3049_p11 = pnand %p2155_p1, %p3016_p12 }
  0x9c   : > { %s3596_s13 = scalar_select %p3038_p10, 1, 0 }
  0x9d   : > { %s3598_s22 = scalar_select %p3049_p11, 1, 0 }
  0x9e   : > { %3597 = sst [smem:[#allocation41_spill]] %s3596_s13  ;;  %s3054_s20 = sshll.u32 %s3044_s17, 2 }
  0x9f   : > { %s3057_s0 = sshll.u32 %s2751_s29, 6  ;;  %s3599_s1 = sld [smem:[#allocation43_spill]] }
  0xa0   : > { %s529_s19 = scalar_lea.vmem [#allocation8], %s3054_s20  ;;  %s3600_s5 = sand.u32 1, %s2755_s30  }
  0xa1   : > { %s537_s2 = sshll.u32 %s529_s19, 4  ;;  %s3070_s7 = scalar_lea.sflag [#allocation9], %s3600_s5  ;;  %s3066_s2 = int_to_ptr.vmem [resolvable:$true] %s537_s2 }
  0xa2   : > { %p3076_p12 = pneg %p3049_p11 }
  0xa4   : > { %s3601_s11 = scalar_select %p3076_p12, 1, 0 }
  0xa5   : > { %s3063_s28 = scalar_lea.hbm %s3599_s1, %s3057_s0  ;;  %s2392_s19 = scalar_lea.hbm %s3599_s1, 128 }
  0xa6   : > { %s2387_s9 = scalar_lea.hbm %s3063_s28, 64  ;;  %p2393_p2 = scmp.lt.u32.totalorder %s3063_s28, %s3599_s1 }
  0xa7   : > { %p2388_p3 = scmp.ne.s32.totalorder %s3063_s28, %s2387_s9  ;;  %p2394_p4 = scmp.lt.u32.totalorder %s2392_s19, %s2387_s9 }
  0xa8   : > { %p2396_p1 = scmp.lt.u32.totalorder %s2387_s9, %s3063_s28 }
  0xa9   : > { %p2390_p13 = pnand %p3076_p12, %p2388_p3  ;;  %p2395_p5 = por %p2394_p4, %p2393_p2 }
  0xab   : > { %p2391_p0 = pneg %p2390_p13  ;;  %p2397_p10 = por %p2396_p1, %p2395_p5 }
  0xad   : > { %p2398_p9 = pnand %p2397_p10, %p2391_p0 }
  0xaf   : > { %2401 = shalt.err (!%p2398_p9)
}
  0xb0   : > { %s2402_s5 = scalar_lea.vmem %s3066_s2, 64  ;;  %s2763_s4 = smov [#allocation8]  }
  0xb1   : > { %p2403_p3 = scmp.ne.s32.totalorder %s3066_s2, %s2402_s5  ;;  %s2407_s16 = sshll.u32 %s2763_s4, 4  ;;  %s2408_s16 = int_to_ptr.vmem [resolvable:$false] %s2407_s16 }
  0xb2   : > { %s2409_s24 = scalar_lea.vmem %s2408_s16, 128  ;;  %p2410_p6 = scmp.lt.s32.totalorder %s3066_s2, %s2408_s16 }
  0xb3   : > { %p2405_p13 = pnand %p2403_p3, %p3076_p12  ;;  %p2411_p8 = scmp.lt.s32.totalorder %s2409_s24, %s2402_s5 }
  0xb5   : > { %p2406_p7 = pneg %p2405_p13  ;;  %p2412_p2 = por %p2411_p8, %p2410_p6 }
  0xb7   : > { %p2413_p4 = pnand %p2412_p2, %p2406_p7 }
  0xb9   : > { %2416 = shalt.err (!%p2413_p4)
}
  0xba   : > { %2133 = dma.hbm_to_vmem [thread:$0]  (!%p3049_p11), %s3063_s28, 64, %s3066_s2, %s3070_s7  }
  0xbb   : > { %s3602_s3 = sld [smem:[#allocation45_spill]]  ;;  %s567_s5 = scalar_lea.vmem [#allocation11], %s3054_s20 }
  0xbc   : > { %s575_s4 = sshll.u32 %s567_s5, 4  ;;  %s2764_s16 = smov [#allocation16]   ;;  %s3107_s4 = int_to_ptr.vmem [resolvable:$true] %s575_s4 }
  0xbd   : > { %s3109_s24 = sshll.u32 %s2764_s16, 4  ;;  %s3603_s1 = sand.u32 1, %s2755_s30   ;;  %s426_s24 = int_to_ptr.vmem [resolvable:$true] %s3109_s24 }
  0xbe   : > { %s3113_s27 = scalar_lea.sflag [#allocation12], %s3603_s1 }
  0xc1   : > { %s3104_s19 = scalar_lea.hbm %s3602_s3, %s3057_s0  ;;  %s2422_s21 = scalar_lea.hbm %s3602_s3, 128 }
  0xc2   : > { %s2417_s2 = scalar_lea.hbm %s3104_s19, 64  ;;  %p2423_p9 = scmp.lt.u32.totalorder %s3104_s19, %s3602_s3 }
  0xc3   : > { %p2418_p6 = scmp.ne.s32.totalorder %s3104_s19, %s2417_s2  ;;  %p2424_p10 = scmp.lt.u32.totalorder %s2422_s21, %s2417_s2 }
  0xc4   : > { %p2426_p5 = scmp.lt.u32.totalorder %s2417_s2, %s3104_s19 }
  0xc5   : > { %p2420_p8 = pnand %p2418_p6, %p3076_p12  ;;  %p2425_p0 = por %p2424_p10, %p2423_p9 }
  0xc7   : > { %p2421_p7 = pneg %p2420_p8  ;;  %p2427_p1 = por %p2426_p5, %p2425_p0 }
  0xc9   : > { %p2428_p3 = pnand %p2427_p1, %p2421_p7 }
  0xcb   : > { %2431 = shalt.err (!%p2428_p3)
}
  0xcc   : > { %s2432_s1 = scalar_lea.vmem %s3107_s4, 64  ;;  %s2765_s5 = smov [#allocation11]  }
  0xcd   : > { %p2433_p13 = scmp.ne.s32.totalorder %s3107_s4, %s2432_s1  ;;  %s2437_s16 = sshll.u32 %s2765_s5, 4  ;;  %s2438_s16 = int_to_ptr.vmem [resolvable:$false] %s2437_s16 }
  0xce   : > { %s2439_s25 = scalar_lea.vmem %s2438_s16, 128  ;;  %p2440_p6 = scmp.lt.s32.totalorder %s3107_s4, %s2438_s16 }
  0xcf   : > { %p2435_p2 = pnand %p2433_p13, %p3076_p12  ;;  %p2441_p8 = scmp.lt.s32.totalorder %s2439_s25, %s2432_s1 }
  0xd1   : > { %p2436_p4 = pneg %p2435_p2  ;;  %p2442_p9 = por %p2441_p8, %p2440_p6 }
  0xd3   : > { %p2443_p10 = pnand %p2442_p9, %p2436_p4 }
  0xd5   : > { %2446 = shalt.err (!%p2443_p10)
}
  0xd6   : > { %2139 = dma.hbm_to_vmem [thread:$0]  (!%p3049_p11), %s3104_s19, 64, %s3107_s4, %s3113_s27  }
  0xd7   : > { %s2447_s28 = scalar_lea.hbm %s3537_s6, 16  ;;  %p3604_p0 = scmp.ne.s32.totalorder %s3586_s15, 0 }
  0xd8   : > { %p2448_p7 = scmp.ne.s32.totalorder %s3537_s6, %s2447_s28  ;;  %p2454_p3 = scmp.lt.u32.totalorder %s2447_s28, %s3537_s6 }
  0xda   : > { %p2450_p5 = pnand %p2448_p7, %p3604_p0 }
  0xdc   : > { %p2451_p1 = pneg %p2450_p5 }
  0xde   : > { %p2456_p13 = pnand %p2454_p3, %p2451_p1 }
  0xe0   : > { %2459 = shalt.err (!%p2456_p13)
}
  0xe1   : > { %s2460_s16 = scalar_lea.vmem %s426_s24, 16  ;;  %s2467_s19 = scalar_lea.vmem %s426_s24, 32 }
  0xe2   : > { %p2461_p2 = scmp.ne.s32.totalorder %s426_s24, %s2460_s16  ;;  %p2468_p8 = scmp.lt.s32.totalorder %s426_s24, %s426_s24 }
  0xe3   : > { %p2469_p9 = scmp.lt.s32.totalorder %s2467_s19, %s2460_s16 }
  0xe4   : > { %p2463_p4 = pnand %p2461_p2, %p3604_p0 }
  0xe5   : > { %p2470_p10 = por %p2469_p9, %p2468_p8 }
  0xe6   : > { %p2464_p6 = pneg %p2463_p4 }
  0xe8   : > { %p2471_p11 = pnand %p2470_p10, %p2464_p6 }
  0xea   : > { %2474 = shalt.err (!%p2471_p11)
}
  0xeb   : > { %p3605_p7 = scmp.ne.s32.totalorder %s3584_s18, 0  ;;  %s2766_s13 = smov [#allocation19]  }
  0xec   : > { %s447_s2 = sshll.u32 %s2766_s13, 4  ;;  %s2767_s28 = smov [#allocation22]   ;;  %s448_s2 = int_to_ptr.vmem [resolvable:$true] %s447_s2 }
  0xed   : > { %2108 = dma.hbm_to_vmem [thread:$0]  (!%p3605_p7), %s3537_s6, 16, %s426_s24, [#allocation15]  }
  0xee   : > { %s471_s9 = sshll.u32 %s2767_s28, 4  ;;  %s2475_s5 = scalar_lea.hbm %s3539_s8, 16  ;;  %s472_s9 = int_to_ptr.vmem [resolvable:$true] %s471_s9 }
  0xef   : > { %p2476_p11 = scmp.ne.s32.totalorder %s3539_s8, %s2475_s5  ;;  %p2482_p3 = scmp.lt.u32.totalorder %s2475_s5, %s3539_s8 }
  0xf1   : > { %p2478_p5 = pnand %p2476_p11, %p3604_p0 }
  0xf3   : > { %p2479_p1 = pneg %p2478_p5 }
  0xf5   : > { %p2484_p13 = pnand %p2482_p3, %p2479_p1 }
  0xf7   : > { %2487 = shalt.err (!%p2484_p13)
}
  0xf8   : > { %s2488_s24 = scalar_lea.vmem %s448_s2, 16  ;;  %s2495_s25 = scalar_lea.vmem %s448_s2, 32 }
  0xf9   : > { %p2489_p2 = scmp.ne.s32.totalorder %s448_s2, %s2488_s24  ;;  %p2496_p8 = scmp.lt.s32.totalorder %s448_s2, %s448_s2 }
  0xfa   : > { %p2497_p9 = scmp.lt.s32.totalorder %s2495_s25, %s2488_s24 }
  0xfb   : > { %p2491_p4 = pnand %p2489_p2, %p3604_p0 }
  0xfc   : > { %p2498_p10 = por %p2497_p9, %p2496_p8 }
  0xfd   : > { %p2492_p6 = pneg %p2491_p4 }
  0xff   : > { %p2499_p12 = pnand %p2498_p10, %p2492_p6 }
 0x101   : > { %2502 = shalt.err (!%p2499_p12)
}
 0x102   : > { %2114 = dma.hbm_to_vmem [thread:$0]  (!%p3605_p7), %s3539_s8, 16, %s448_s2, [#allocation18]  }
 0x103   : > { %s2503_s1 = scalar_lea.hbm %s3541_s10, 16 }
 0x104   : > { %p2504_p11 = scmp.ne.s32.totalorder %s3541_s10, %s2503_s1  ;;  %p2510_p12 = scmp.lt.u32.totalorder %s2503_s1, %s3541_s10 }
 0x106   : > { %p2506_p5 = pnand %p2504_p11, %p3604_p0 }
 0x108   : > { %p2507_p1 = pneg %p2506_p5 }
 0x10a   : > { %p2512_p3 = pnand %p2510_p12, %p2507_p1 }
 0x10c   : > { %2515 = shalt.err (!%p2512_p3)
}
 0x10d   : > { %s2516_s24 = scalar_lea.vmem %s472_s9, 16  ;;  %s2523_s2 = scalar_lea.vmem %s472_s9, 32 }
 0x10e   : > { %p2517_p13 = scmp.ne.s32.totalorder %s472_s9, %s2516_s24  ;;  %p2524_p6 = scmp.lt.s32.totalorder %s472_s9, %s472_s9 }
 0x10f   : > { %p2525_p8 = scmp.lt.s32.totalorder %s2523_s2, %s2516_s24 }
 0x110   : > { %p2519_p2 = pnand %p2517_p13, %p3604_p0 }
 0x111   : > { %p2526_p9 = por %p2525_p8, %p2524_p6 }
 0x112   : > { %p2520_p4 = pneg %p2519_p2 }
 0x114   : > { %p2527_p10 = pnand %p2526_p9, %p2520_p4 }
 0x116   : > { %2530 = shalt.err (!%p2527_p10)
}
 0x117   : > { %2120 = dma.hbm_to_vmem [thread:$0]  (!%p3605_p7), %s3541_s10, 16, %s472_s9, [#allocation21]  }
 0x118   : > { %s2768_s28 = smov [#allocation25]   ;;  %s1901_s21 = sshll.u32 %s3044_s17, 3 }
 0x119   : > { %s495_s3 = sshll.u32 %s2768_s28, 4  ;;  %s3606_s16 = sld [smem:[#allocation51_spill]]  ;;  %s496_s3 = int_to_ptr.vmem [resolvable:$true] %s495_s3 }
 0x11f   : > { %s2531_s19 = scalar_lea.hbm %s3606_s16, 16 }
 0x120   : > { %p2532_p11 = scmp.ne.s32.totalorder %s3606_s16, %s2531_s19  ;;  %p2538_p12 = scmp.lt.u32.totalorder %s2531_s19, %s3606_s16 }
 0x122   : > { %p2534_p5 = pnand %p2532_p11, %p3604_p0 }
 0x124   : > { %p2535_p1 = pneg %p2534_p5 }
 0x126   : > { %p2540_p3 = pnand %p2538_p12, %p2535_p1 }
 0x128   : > { %2543 = shalt.err (!%p2540_p3)
}
 0x129   : > { %s2544_s9 = scalar_lea.vmem %s496_s3, 16  ;;  %s2551_s13 = scalar_lea.vmem %s496_s3, 32 }
 0x12a   : > { %p2545_p13 = scmp.ne.s32.totalorder %s496_s3, %s2544_s9  ;;  %p2552_p6 = scmp.lt.s32.totalorder %s496_s3, %s496_s3 }
 0x12b   : > { %p2553_p8 = scmp.lt.s32.totalorder %s2551_s13, %s2544_s9 }
 0x12c   : > { %p2547_p2 = pnand %p2545_p13, %p3604_p0 }
 0x12d   : > { %p2554_p9 = por %p2553_p8, %p2552_p6 }
 0x12e   : > { %p2548_p4 = pneg %p2547_p2 }
 0x130   : > { %p2555_p10 = pnand %p2554_p9, %p2548_p4 }
 0x132   : > { %2558 = shalt.err (!%p2555_p10)
}
 0x133   : > { %2126 = dma.hbm_to_vmem [thread:$0]  (!%p3605_p7), %s3606_s16, 16, %s496_s3, [#allocation24]  }
 0x134   : > { %s1902_s5 = sshll.u32 %s2751_s29, 7  ;;  %s3607_s4 = sld [smem:[#allocation42_spill]] }
 0x135   : > { %s510_s2 = scalar_lea.vmem [#allocation5], %s1901_s21  ;;  %s507_s18 = scalar_lea.sflag [#allocation6], %s3044_s17 }
 0x136   : > { %s518_s25 = sshll.u32 %s510_s2, 4  ;;  %p3608_p11 = scmp.ne.s32.totalorder %s3601_s11, 0  ;;  %s519_s25 = int_to_ptr.vmem [resolvable:$true] %s518_s25 }
 0x13a   : > { %s3215_s24 = scalar_lea.hbm %s3607_s4, %s1902_s5  ;;  %s2564_s28 = scalar_lea.hbm %s3607_s4, 256 }
 0x13b   : > { %s2559_s9 = scalar_lea.hbm %s3215_s24, 128  ;;  %p2565_p7 = scmp.lt.u32.totalorder %s3215_s24, %s3607_s4 }
 0x13c   : > { %p2560_p0 = scmp.ne.s32.totalorder %s3215_s24, %s2559_s9  ;;  %p2566_p12 = scmp.lt.u32.totalorder %s2564_s28, %s2559_s9 }
 0x13d   : > { %p2568_p13 = scmp.lt.u32.totalorder %s2559_s9, %s3215_s24 }
 0x13e   : > { %p2562_p5 = pnand %p2560_p0, %p3608_p11  ;;  %p2567_p3 = por %p2566_p12, %p2565_p7 }
 0x140   : > { %p2563_p1 = pneg %p2562_p5  ;;  %p2569_p2 = por %p2568_p13, %p2567_p3 }
 0x142   : > { %p2570_p4 = pnand %p2569_p2, %p2563_p1 }
 0x144   : > { %2573 = shalt.err (!%p2570_p4)
}
 0x145   : > { %s2574_s21 = scalar_lea.vmem %s519_s25, 128  ;;  %s2769_s19 = smov [#allocation5]  }
 0x146   : > { %p2575_p6 = scmp.ne.s32.totalorder %s519_s25, %s2574_s21  ;;  %s2579_s15 = sshll.u32 %s2769_s19, 4  ;;  %s2580_s15 = int_to_ptr.vmem [resolvable:$false] %s2579_s15 }
 0x147   : > { %s2581_s2 = scalar_lea.vmem %s2580_s15, 256  ;;  %p2582_p10 = scmp.lt.s32.totalorder %s519_s25, %s2580_s15 }
 0x148   : > { %p2577_p8 = pnand %p2575_p6, %p3608_p11  ;;  %p2583_p0 = scmp.lt.s32.totalorder %s2581_s2, %s2574_s21 }
 0x14a   : > { %p2578_p9 = pneg %p2577_p8  ;;  %p2584_p5 = por %p2583_p0, %p2582_p10 }
 0x14c   : > { %p2585_p7 = pnand %p2584_p5, %p2578_p9 }
 0x14e   : > { %2588 = shalt.err (!%p2585_p7)
}
 0x14f   : > { %p3609_p12 = scmp.ne.s32.totalorder %s3598_s22, 0  ;;  %s3610_s13 = sld [smem:[#allocation44_spill]] }
 0x150   : > { %s548_s1 = scalar_lea.vmem [#allocation10], %s3054_s20 }
 0x151   : > { %2130 = dma.hbm_to_vmem [thread:$0]  (!%p3609_p12), %s3215_s24, 128, %s519_s25, %s507_s18  }
 0x152   : > { %s556_s5 = sshll.u32 %s548_s1, 4  ;;  %s557_s5 = int_to_ptr.vmem [resolvable:$true] %s556_s5 }
 0x155   : > { %s3239_s28 = scalar_lea.hbm %s3610_s13, %s3057_s0  ;;  %s2594_s24 = scalar_lea.hbm %s3610_s13, 128 }
 0x156   : > { %s2589_s21 = scalar_lea.hbm %s3239_s28, 64  ;;  %p2595_p2 = scmp.lt.u32.totalorder %s3239_s28, %s3610_s13 }
 0x157   : > { %p2590_p1 = scmp.ne.s32.totalorder %s3239_s28, %s2589_s21  ;;  %p2596_p4 = scmp.lt.u32.totalorder %s2594_s24, %s2589_s21 }
 0x158   : > { %p2598_p8 = scmp.lt.u32.totalorder %s2589_s21, %s3239_s28 }
 0x159   : > { %p2592_p3 = pnand %p2590_p1, %p3608_p11  ;;  %p2597_p6 = por %p2596_p4, %p2595_p2 }
 0x15b   : > { %p2593_p13 = pneg %p2592_p3  ;;  %p2599_p9 = por %p2598_p8, %p2597_p6 }
 0x15d   : > { %p2600_p10 = pnand %p2599_p9, %p2593_p13 }
 0x15f   : > { %2603 = shalt.err (!%p2600_p10)
}
 0x160   : > { %s2604_s20 = scalar_lea.vmem %s557_s5, 64  ;;  %s2770_s0 = smov [#allocation10]  }
 0x161   : > { %p2605_p0 = scmp.ne.s32.totalorder %s557_s5, %s2604_s20  ;;  %s2609_s2 = sshll.u32 %s2770_s0, 4  ;;  %s2610_s2 = int_to_ptr.vmem [resolvable:$false] %s2609_s2 }
 0x162   : > { %s2611_s9 = scalar_lea.vmem %s2610_s2, 128  ;;  %p2612_p1 = scmp.lt.s32.totalorder %s557_s5, %s2610_s2 }
 0x163   : > { %p2607_p5 = pnand %p2605_p0, %p3608_p11  ;;  %p2613_p3 = scmp.lt.s32.totalorder %s2611_s9, %s2604_s20 }
 0x165   : > { %p2608_p7 = pneg %p2607_p5  ;;  %p2614_p12 = por %p2613_p3, %p2612_p1 }
 0x167   : > { %p2615_p2 = pnand %p2614_p12, %p2608_p7 }
 0x169   : > { %2618 = shalt.err (!%p2615_p2)
}
 0x16a   : > { %p3611_p4 = scmp.ne.s32.totalorder %s3598_s22, 0  ;;  %s1909_s3 = sshll.u32 %s2751_s29, 4 }
 0x16b   : > { %s585_s1 = scalar_lea.vmem [#allocation13], %s3044_s17  ;;  %s3612_s24 = sld [smem:[#allocation46_spill]] }
 0x16c   : > { %2136 = dma.hbm_to_vmem [thread:$0]  (!%p3611_p4), %s3239_s28, 64, %s557_s5, %s3070_s7  }
 0x16d   : > { %s593_s21 = sshll.u32 %s585_s1, 4  ;;  %s594_s21 = int_to_ptr.vmem [resolvable:$true] %s593_s21 }
 0x171   : > { %s591_s25 = scalar_lea.hbm %s3612_s24, %s1909_s3  ;;  %s2624_s2 = scalar_lea.hbm %s3612_s24, 32 }
 0x172   : > { %s2619_s18 = scalar_lea.hbm %s591_s25, 16  ;;  %p2625_p8 = scmp.lt.u32.totalorder %s591_s25, %s3612_s24 }
 0x173   : > { %p2620_p13 = scmp.ne.s32.totalorder %s591_s25, %s2619_s18  ;;  %p2626_p9 = scmp.lt.u32.totalorder %s2624_s2, %s2619_s18 }
 0x174   : > { %p2628_p0 = scmp.lt.u32.totalorder %s2619_s18, %s591_s25 }
 0x175   : > { %p2622_p12 = pnand %p2620_p13, %p3608_p11  ;;  %p2627_p10 = por %p2626_p9, %p2625_p8 }
 0x177   : > { %p2623_p6 = pneg %p2622_p12  ;;  %p2629_p5 = por %p2628_p0, %p2627_p10 }
 0x179   : > { %p2630_p7 = pnand %p2629_p5, %p2623_p6 }
 0x17b   : > { %2633 = shalt.err (!%p2630_p7)
}
 0x17c   : > { %s2634_s7 = scalar_lea.vmem %s594_s21, 16  ;;  %s2771_s17 = smov [#allocation13]  }
 0x17d   : > { %p2635_p1 = scmp.ne.s32.totalorder %s594_s21, %s2634_s7  ;;  %s2639_s28 = sshll.u32 %s2771_s17, 4  ;;  %s2640_s28 = int_to_ptr.vmem [resolvable:$false] %s2639_s28 }
 0x17e   : > { %s2641_s5 = scalar_lea.vmem %s2640_s28, 32  ;;  %p2642_p13 = scmp.lt.s32.totalorder %s594_s21, %s2640_s28 }
 0x17f   : > { %p2637_p3 = pnand %p2635_p1, %p3608_p11  ;;  %p2643_p12 = scmp.lt.s32.totalorder %s2641_s5, %s2634_s7 }
 0x181   : > { %p2638_p2 = pneg %p2637_p3  ;;  %p2644_p4 = por %p2643_p12, %p2642_p13 }
 0x183   : > { %p2645_p8 = pnand %p2644_p4, %p2638_p2 }
 0x185   : > { %2648 = shalt.err (!%p2645_p8)
}
 0x186   : > { %p3613_p9 = scmp.ne.s32.totalorder %s3598_s22, 0  ;;  %s3614_s4 = sld [smem:[#allocation38_spill]] }
 0x188   : > { %2142 = dma.hbm_to_vmem [thread:$0]  (!%p3613_p9), %s591_s25, 16, %s594_s21, %s3113_s27  }
 0x18c   : > { %p3615_p6 = scmp.ne.s32.totalorder %s3614_s4, 0 }
 0x18d   : > { %s3281_s11 = sand.u32 (!%p3615_p6), 1, %s2739_s26   ;;  %p3616_p11 = scmp.ne.s32.totalorder (!%p3615_p6), %s3593_s23, 0 }
 0x18e   : > { %602 = sbr.rel (%p3615_p6) target bundleno = 2449 (0x991), region = 72  ;;  %s1911_s3 = sshll.u32 (!%p3615_p6), %s3281_s11, 3 }
 0x18f   : > { %s605_s1 = scalar_lea.sflag (!%p3615_p6), [#allocation6], %s3281_s11  ;;  %s3287_s19 = scalar_lea.vmem (!%p3615_p6), [#allocation5], %s1911_s3 }
 0x195   : > { %2702 = dma.done.wait (%p3616_p11), %s605_s1, 128  }
 0x196   : > { %2704 = vsyncadd (%p3616_p11), %s605_s1, 4294967168  ;;  %s613_s27 = sand.u32 1, %s2885_s14   ;;  %s3295_s22 = sshll.u32 %s3281_s11, 2 }
 0x197   : > { %s614_s21 = scalar_lea.sflag [#allocation9], %s613_s27  ;;  %s617_s15 = scalar_lea.vmem [#allocation8], %s3295_s22 }
 0x198   : > { %2706 = dma.done.wait (%p3616_p11), %s614_s21, 128  }
 0x199   : > { %2708 = vsyncadd (%p3616_p11), %s614_s21, 4294967168  ;;  %s626_s25 = scalar_lea.vmem [#allocation10], %s3295_s22  ;;  %s632_s18 = scalar_lea.sflag [#allocation12], %s613_s27 }
 0x19a   : > { %s635_s20 = scalar_lea.vmem [#allocation11], %s3295_s22 }
 0x19b   : > { %2710 = dma.done.wait (%p3616_p11), %s632_s18, 80  }
 0x19c   : > { %2712 = vsyncadd (%p3616_p11), %s632_s18, 4294967216  ;;  %s643_s0 = scalar_lea.vmem [#allocation13], %s3281_s11  ;;  %p3617_p4 = scmp.eq.s32.totalorder %s2885_s14, 0 }
 0x19e   : > { %2714 = dma.done.wait (%p3617_p4), [#allocation15], 272   ;;  %p3618_p10 = pmov %p3617_p4 }
 0x19f   : > { %p3619_p0 = pmov %p3617_p4 }
 0x1a0   : > { %2716 = vsyncadd (%p3618_p10), [#allocation15], 4294967024 }
 0x1a1   : > { %2718 = dma.done.wait (%p3619_p0), [#allocation18], 32   ;;  %p3620_p5 = pmov %p3619_p0 }
 0x1a2   : > { %p3621_p7 = pmov %p3619_p0 }
 0x1a3   : > { %2720 = vsyncadd (%p3620_p5), [#allocation18], 4294967264 }
 0x1a4   : > { %2722 = dma.done.wait (%p3621_p7), [#allocation21], 272   ;;  %p3622_p1 = pmov %p3619_p0 }
 0x1a5   : > { %p3623_p3 = pmov %p3619_p0 }
 0x1a6   : > { %2724 = vsyncadd (%p3622_p1), [#allocation21], 4294967024 }
 0x1a7   : > { %2726 = dma.done.wait (%p3623_p3), [#allocation24], 528   ;;  %p3624_p2 = pmov %p3619_p0 }
 0x1a8   : > { %v2772_v0 = vmov 0.0   ;;  %vm2773_vm0 = vmmov 0   ;;  %vm765_vm1 = vcmask 64512   ;;  %v757_v1 = vld [vmem:[%s626_s25] sm:$0xf]  ;;  %s2774_s14 = smov 120   ;;  %v760_v15 = vlaneseq }
 0x1a9   : > { %2728 = vsyncadd (%p3624_p2), [#allocation24], 4294966768  ;;  %1982 = vmatprep.subr.bf16.mxu0 %v2772_v0  ;;  %1984 = vmatprep.mubr.msk.bf16.mxu0 %vm2773_vm0, %v2772_v0  ;;  %v756_v2 = vld [vmem:[%s617_s15] sm:$0xf]  ;;  %v770_v3 = vsel %vm765_vm1, %v757_v1, 0  ;;  %v1927_v4 = vcombine.low %v757_v1, %v757_v1  ;;  %s2775_s23 = smov 112  }
 0x1aa   : > { %1994 = vmatprep.subr.bf16.mxu1 %v2772_v0  ;;  %1996 = vmatprep.mubr.msk.bf16.mxu1 %vm2773_vm0, %v2772_v0  ;;  %v1926_v5 = vcombine.low %v756_v2, %v756_v2  ;;  %s2776_s2 = smov 104   ;;  %v753_v16 = vld [vmem:[%s643_s0] sm:$0x1]  ;;  %v761_v17 = vshrl.u32 %v760_v15, 7  ;;  %v2777_v19 = vmov -1e+09  }
 0x1ab   : > { %1983 = vmatpush3.bf16.xpose.msra.mxu0 %v770_v3  ;;  %902 = vrot.lane.b32.xlu0 %v1927_v4, %s2774_s14  ;;  %vm754_vm2 = vcmp.gt.f32.partialorder %v753_v16, 0.0  ;;  %vm742_vm3 = vcmask 7168   ;;  %v2778_v28 = vmov -1e+30   ;;  %v2779_v29 = vmov 0   ;;  %s2780_s9 = smov 8  }
 0x1ac   : > { %1044 = vrot.lane.b32.xlu1 %v1927_v4, %s2775_s23  ;;  %1988 = vmatprep.subr.bf16.mxu0 %v2772_v0  ;;  %v762_v18 = vsub.s32 0, %v761_v17  ;;  %v755_v20 = vsel %vm754_vm2, 0.0, %v2777_v19  ;;  %743 = vst.msk [vmem:[#allocation2] sm:$0xff] %vm742_vm3, %v2778_v28  ;;  %744 = vst.msk [vmem:[#allocation2 + $0x8] sm:$0xff] %vm742_vm3, %v2778_v28  ;;  %v758_v52 = vld [vmem:[%s635_s20] sm:$0xf] }
 0x1ad   : > { %745 = vst.msk [vmem:[#allocation2 + $0x10] sm:$0xff] %vm742_vm3, %v2778_v28  ;;  %746 = vst.msk [vmem:[#allocation2 + $0x18] sm:$0xff] %vm742_vm3, %v2778_v28  ;;  %2234 = vset.pattern.permute.xlu1 %v2779_v29  ;;  %2235 = vset.pattern.permute.xlu0 %v2779_v29  ;;  %vm847_vm4 = vcmask 1043456   ;;  %v1929_v62 = vcombine.low %v758_v52, %v758_v52  ;;  %vm751_vm5 = vcmask 261120   ;;  %s2781_s7 = smov 16   ;;  %s2782_s17 = smov 24  }
 0x1ae   : > { %v763_v21 = vrot.slane %v755_v20, %v762_v18  ;;  %747 = vst.msk [vmem:[#allocation3] sm:$0xff] %vm742_vm3, %v2772_v0  ;;  %748 = vst.msk [vmem:[#allocation3 + $0x8] sm:$0xff] %vm742_vm3, %v2772_v0  ;;  %v849_v53 = vsel %vm847_vm4, %v758_v52, 0  ;;  %vm1039_vm6 = vcmask 130112   ;;  %vm1178_vm7 = vcmask 195712   ;;  %s3625_s28 = sld [smem:[#allocation37_spill]] }
 0x1af   : > { %897 = vrot.lane.b32.xlu0 %v1926_v5, %s2774_s14  ;;  %749 = vst.msk [vmem:[#allocation3 + $0x10] sm:$0xff] %vm742_vm3, %v2772_v0  ;;  %750 = vst.msk [vmem:[#allocation3 + $0x18] sm:$0xff] %vm742_vm3, %v2772_v0  ;;  %vm1317_vm8 = vcmask 261312   ;;  %vm1574_vm11 = vcmask 523264   ;;  %s736_s4 = scalar_lea.vmem [#allocation26], %s1911_s3  ;;  %s3626_s22 = sld [smem:[#allocation52_spill]] }
 0x1b0   : > { %1042 = vrot.lane.b32.xlu1 %v1926_v5, %s2775_s23  ;;  %752 = vst.msk [vmem:[#allocation4] sm:$0xff] %vm751_vm5, %v2772_v0  ;;  %s1643_s1 = sshll.u32 %s736_s4, 4  ;;  %s1629_s15 = scalar_lea.sflag [#allocation7], %s3281_s11  ;;  %s3483_s1 = int_to_ptr.vmem [resolvable:$true] %s1643_s1 }
 0x1b1   : > { %s2649_s3 = scalar_lea.vmem %s3483_s1, 128  ;;  %p3627_p12 = scmp.ne.s32.totalorder %s3594_s12, 0 }
 0x1b2   : > { %1985 = vmatmul.mubr.msk.bf16.vlgmr.msra.gmra.mrb[0].mxu0 %vm765_vm1, %v756_v2  ;;  %p2650_p13 = scmp.ne.s32.totalorder %s3483_s1, %s2649_s3  ;;  %s2783_s25 = smov [#allocation26]  }
 0x1b3   : > { %1990 = vmatprep.mubr.msk.bf16.mxu0 %vm2773_vm0, %v2772_v0  ;;  %1183 = vrot.lane.b32.xlu0 %v1927_v4, %s2776_s2  ;;  %v3384_v48 = vld [vmem:[#allocation2] sm:$0xff]  ;;  %v3398_v54 = vld [vmem:[#allocation2 + $0x8] sm:$0xff]  ;;  %s2653_s18 = sshll.u32 %s2783_s25, 4  ;;  %s2654_s18 = int_to_ptr.vmem [resolvable:$false] %s2653_s18 }
 0x1b4   : > { %1181 = vrot.lane.b32.xlu1 %v1926_v5, %s2776_s2  ;;  %1989 = vmatpush3.bf16.msra.mxu0 %v849_v53  ;;  %v3408_v58 = vld [vmem:[#allocation2 + $0x10] sm:$0xff]  ;;  %v1232_v2 = vld [vmem:[#allocation2 + $0x18] sm:$0xff]  ;;  %s1952_s5 = sshll.u32 %s3625_s28, 7  ;;  %p2651_p8 = pnand %p2650_p13, %p3627_p12 }
 0x1b5   : > { %2000 = vmatprep.subr.bf16.mxu0 %v2772_v0  ;;  %v968_v52 = vld [vmem:[#allocation3 + $0x8] sm:$0xff]  ;;  %s3481_s21 = scalar_lea.hbm %s3626_s22, %s1952_s5  ;;  %s2655_s20 = scalar_lea.vmem %s2654_s18, 256 }
 0x1b6   : > { %p2652_p9 = pneg %p2651_p8  ;;  %p2656_p6 = scmp.lt.s32.totalorder %s3483_s1, %s2654_s18 }
 0x1b7   : > { %p2657_p11 = scmp.lt.s32.totalorder %s2655_s20, %s2649_s3 }
 0x1b9   : > { %p2658_p4 = por %p2657_p11, %p2656_p6 }
 0x1bb   : > { %p2659_p10 = pnand %p2658_p4, %p2652_p9 }
 0x21d   : > { %v903_v6 = vpop.permute.xlu0 %902 }
 0x21e   : > { %v908_v7 = vsel %vm765_vm1, %v903_v6, 0  ;;  %v1045_v8 = vpop.permute.xlu1 %1044 }
 0x21f   : > { %1995 = vmatpush3.bf16.xpose.msra.mxu1 %v908_v7  ;;  %v1050_v10 = vsel %vm765_vm1, %v1045_v8, 0 }
 0x220   : > { %2006 = vmatprep.subr.bf16.mxu1 %v2772_v0 }
 0x221   : > { %v898_v9 = vpop.permute.xlu0 %897 }
 0x222   : > { %v1043_v12 = vpop.permute.xlu1 %1042 }
 0x225   : > { %v1184_v11 = vpop.permute.xlu0 %1183 }
 0x226   : > { %1997 = vmatmul.mubr.msk.bf16.vlgmr.msra.gmra.mrb[0].mxu1 %vm765_vm1, %v898_v9  ;;  %v1189_v13 = vsel %vm765_vm1, %v1184_v11, 0  ;;  %v1182_v14 = vpop.permute.xlu1 %1181 }
 0x227   : > { %2007 = vmatpush3.bf16.xpose.msra.mxu1 %v1050_v10  ;;  %2008 = vmatprep.mubr.msk.bf16.mxu1 %vm2773_vm0, %v2772_v0 }
 0x228   : > { %2018 = vmatprep.subr.bf16.mxu1 %v2772_v0 }
 0x22e   : > { %2009 = vmatmul.mubr.msk.bf16.vlgmr.msra.gmra.mrb[4].mxu1 %vm765_vm1, %v1043_v12 }
 0x22f   : > { %2019 = vmatpush3.bf16.xpose.msra.mxu1 %v1189_v13  ;;  %2020 = vmatprep.mubr.msk.bf16.mxu1 %vm2773_vm0, %v2772_v0 }
 0x230   : > { %2030 = vmatprep.subr.bf16.mxu1 %v2772_v0 }
 0x236   : > { %2021 = vmatmul.mubr.msk.bf16.vlgmr.msra.gmra.mrb[8].mxu1 %vm765_vm1, %v1182_v14 }
 0x237   : > { %2034 = vmatprep.mubr.msk.bf16.mxu1 %vm2773_vm0, %v2772_v0 }
 0x285   : > { %v806_v22 = vpop.f32.mrb[0].mxu0 }
 0x286   : > { %v3359_v23 = vadd.f32 %v806_v22, %v763_v21  ;;  %v1986_v24 = vpop.f32.mrb[1].mxu0 }
 0x287   : > { %v809_v25 = vpop.f32.mrb[2].mxu0 }
 0x288   : > { %v813_v26 = vsel %vm765_vm1, %v3359_v23, -inf  ;;  %v1987_v27 = vpop.f32.mrb[3].mxu0 }
 0x289   : > { %814 = vmax.xlane.f32.xlu0 %v813_v26 }
 0x2f9   : > { %v944_v30 = vpop.f32.mrb[0].mxu1 }
 0x2fa   : > { %v3375_v31 = vadd.f32 %v944_v30, %v763_v21  ;;  %v1998_v32 = vpop.f32.mrb[1].mxu1 }
 0x2fb   : > { %v947_v33 = vpop.f32.mrb[2].mxu1 }
 0x2fc   : > { %v1999_v34 = vpop.f32.mrb[3].mxu1  ;;  %v952_v35 = vsel %vm765_vm1, %v3375_v31, -inf }
 0x2fd   : > { %953 = vmax.xlane.f32.xlu1 %v952_v35 }
 0x301   : > { %v1086_v36 = vpop.f32.mrb[4].mxu1 }
 0x302   : > { %v1087_v37 = vadd.f32 %v1086_v36, %v763_v21  ;;  %v2010_v38 = vpop.f32.mrb[5].mxu1 }
 0x303   : > { %v1089_v39 = vpop.f32.mrb[6].mxu1 }
 0x304   : > { %v2011_v40 = vpop.f32.mrb[7].mxu1  ;;  %v1094_v41 = vsel %vm765_vm1, %v1087_v37, -inf }
 0x305   : > { %1095 = vmax.xlane.f32.xlu0 %v1094_v41  ;;  %v828_v41 = vld [vmem:[#allocation3] sm:$0xff] }
 0x309   : > { %v1225_v42 = vpop.f32.mrb[8].mxu1 }
 0x30a   : > { %v3380_v43 = vadd.f32 %v1225_v42, %v763_v21  ;;  %v2022_v44 = vpop.f32.mrb[9].mxu1 }
 0x30b   : > { %v1228_v45 = vpop.f32.mrb[10].mxu1 }
 0x30c   : > { %v2023_v46 = vpop.f32.mrb[11].mxu1  ;;  %v1233_v47 = vsel %vm765_vm1, %v3380_v43, -inf }
 0x30d   : > { %1234 = vmax.xlane.f32.xlu0 %v1233_v47 }
 0x316   : > { %v815_v49 = vpop.xlane.xlu0 %814 }
 0x317   : > { %v3387_v50 = vmax.f32 %v3384_v48, %v815_v49 }
 0x319   : > { %v817_v51 = vsub.f32 %v3384_v48, %v3387_v50  ;;  %893 = vst.msk [vmem:[#allocation2] sm:$0xff] %vm742_vm3, %v3387_v50  ;;  %822 = vperm.xlu1 %2234, %v3387_v50  }
 0x31b   : > { %v818_v27 = vmul.f32 1.442695, %v817_v51 }
 0x38a   : > { %v954_v55 = vpop.xlane.xlu1 %953 }
 0x38b   : > { %v3401_v56 = vmax.f32 %v3398_v54, %v954_v55 }
 0x38d   : > { %v956_v57 = vsub.f32 %v3398_v54, %v3401_v56  ;;  %1041 = vst.msk [vmem:[#allocation2 + $0x8] sm:$0xff] %vm742_vm3, %v3401_v56  ;;  %961 = vperm.xlu0 %2235, %v3401_v56   ;;  %v1110_v56 = vld [vmem:[#allocation3 + $0x10] sm:$0xff] }
 0x38f   : > { %v957_v32 = vmul.f32 1.442695, %v956_v57  ;;  %v836_v57 = vld [vmem:[#allocation4] sm:$0xff] }
 0x392   : > { %v1096_v59 = vpop.xlane.xlu0 %1095 }
 0x393   : > { %v1097_v60 = vmax.f32 %v3408_v58, %v1096_v59 }
 0x395   : > { %v1098_v61 = vsub.f32 %v3408_v58, %v1097_v60  ;;  %1180 = vst.msk [vmem:[#allocation2 + $0x10] sm:$0xff] %vm742_vm3, %v1097_v60  ;;  %1103 = vperm.xlu1 %2234, %v1097_v60  }
 0x397   : > { %v1099_v33 = vmul.f32 1.442695, %v1098_v61 }
 0x398   : > { %v823_v63 = vpop.permute.xlu1 %822 }
 0x399   : > { %v825_v1 = vsub.f32 %v3359_v23, %v823_v63  ;;  %986 = vrot.lane.b32.xlu1 %v1929_v62, %s2774_s14 }
 0x39a   : > { %v1235_v4 = vpop.xlane.xlu0 %1234 }
 0x39b   : > { %v826_v3 = vmul.f32 1.442695, %v825_v1  ;;  %v1236_v5 = vmax.f32 %v1232_v2, %v1235_v4  ;;  %v1249_v4 = vld [vmem:[#allocation3 + $0x18] sm:$0xff] }
 0x39d   : > { %2247 = vpow2.f32 %v826_v3  ;;  %v1237_v6 = vsub.f32 %v1232_v2, %v1236_v5  ;;  %1319 = vst.msk [vmem:[#allocation2 + $0x18] sm:$0xff] %vm742_vm3, %v1236_v5  ;;  %1242 = vperm.xlu1 %2234, %v1236_v5  }
 0x39f   : > { %v1238_v35 = vmul.f32 1.442695, %v1237_v6 }
 0x3a1   : > { %1125 = vrot.lane.b32.xlu1 %v1929_v62, %s2775_s23 }
 0x3a5   : > { %1264 = vrot.lane.b32.xlu1 %v1929_v62, %s2776_s2 }
 0x3a7   : > { %v2248_v7 = vpop.eup %2247 }
 0x3a8   : > { %v843_v8 = vpack.c.bf16 %v2248_v7, %v2248_v7  ;;  %v830_v9 = vsel %vm765_vm1, %v2248_v7, 0.0 }
 0x3aa   : > { %1991 = vmatmul.mubr.msk.bf16.vlgmr.msra.gmra.mrb[4].mxu0 %vm765_vm1, %v843_v8 }
 0x3ab   : > { %2002 = vmatprep.mubr.msk.bf16.mxu0 %vm2773_vm0, %v2772_v0 }
 0x3c9   : > { %831 = vadd.xlane.f32.xlu1 %v830_v9 }
 0x40c   : > { %v962_v10 = vpop.permute.xlu0 %961 }
 0x40d   : > { %v964_v11 = vsub.f32 %v3375_v31, %v962_v10 }
 0x40f   : > { %v965_v12 = vmul.f32 1.442695, %v964_v11 }
 0x411   : > { %2249 = vpow2.f32 %v965_v12 }
 0x414   : > { %v1104_v13 = vpop.permute.xlu1 %1103 }
 0x415   : > { %v1106_v14 = vsub.f32 %v1087_v37, %v1104_v13 }
 0x417   : > { %v1107_v15 = vmul.f32 1.442695, %v1106_v14 }
 0x418   : > { %v987_v16 = vpop.permute.xlu1 %986 }
 0x419   : > { %2251 = vpow2.f32 %v1107_v15  ;;  %v992_v17 = vsel %vm847_vm4, %v987_v16, 0 }
 0x41a   : > { %2001 = vmatpush3.bf16.msra.mxu0 %v992_v17 }
 0x41b   : > { %v2250_v18 = vpop.eup %2249  ;;  %2012 = vmatprep.subr.bf16.mxu0 %v2772_v0 }
 0x41c   : > { %v1243_v19 = vpop.permute.xlu1 %1242  ;;  %v970_v20 = vsel %vm765_vm1, %v2250_v18, 0.0  ;;  %v982_v21 = vpack.c.bf16 %v2250_v18, %v2250_v18 }
 0x41d   : > { %v1245_v22 = vsub.f32 %v3380_v43, %v1243_v19  ;;  %971 = vadd.xlane.f32.xlu0 %v970_v20 }
 0x41e   : > { %2003 = vmatmul.mubr.msk.bf16.vlgmr.msra.gmra.mrb[8].mxu0 %vm765_vm1, %v982_v21 }
 0x41f   : > { %v1246_v23 = vmul.f32 1.442695, %v1245_v22  ;;  %2014 = vmatprep.mubr.msk.bf16.mxu0 %vm2773_vm0, %v2772_v0 }
 0x420   : > { %v1126_v24 = vpop.permute.xlu1 %1125 }
 0x421   : > { %2253 = vpow2.f32 %v1246_v23  ;;  %v1131_v25 = vsel %vm847_vm4, %v1126_v24, 0  ;;  %v2239_v24 = vld [vmem:[#allocation14] sm:$0xff]  }
 0x422   : > { %2013 = vmatpush3.bf16.msra.mxu0 %v1131_v25  ;;  %2255 = vpow2.f32 %v818_v27  ;;  %2031 = vmatpush3.bf16.msra.mxu1 %v2239_v24  ;;  %v2240_v25 = vld [vmem:[#allocation14 + $0x8] sm:$0xff]   ;;  %v2245_v24 = vld [vmem:[#allocation23 + $0x10] sm:$0xff]  }
 0x423   : > { %v2252_v26 = vpop.eup %2251  ;;  %2024 = vmatprep.subr.bf16.mxu0 %v2772_v0  ;;  %2257 = vpow2.f32 %v957_v32  ;;  %2032 = vmatprep.subr.bf16.mxu1 %v2772_v0 }
 0x424   : > { %v1112_v28 = vsel %vm765_vm1, %v2252_v26, 0.0  ;;  %v1124_v29 = vpack.c.bf16 %v2252_v26, %v2252_v26  ;;  %v1265_v30 = vpop.permute.xlu1 %1264  ;;  %2259 = vpow2.f32 %v1099_v33 }
 0x425   : > { %1113 = vadd.xlane.f32.xlu1 %v1112_v28  ;;  %v1270_v31 = vsel %vm847_vm4, %v1265_v30, 0  ;;  %2261 = vpow2.f32 %v1238_v35 }
 0x426   : > { %2015 = vmatmul.mubr.msk.bf16.vlgmr.msra.gmra.mrb[12].mxu0 %vm765_vm1, %v1124_v29  ;;  %2033 = vmatpush3.bf16.msra.mxu1 %v2240_v25  ;;  %v2246_v25 = vld [vmem:[#allocation23 + $0x18] sm:$0xff]  }
 0x427   : > { %2025 = vmatpush3.bf16.msra.mxu0 %v1270_v31  ;;  %2026 = vmatprep.mubr.msk.bf16.mxu0 %vm2773_vm0, %v2772_v0 }
 0x428   : > { %2038 = vmatprep.subr.bf16.mxu0 %v2772_v0  ;;  %2046 = vmatprep.subr.bf16.mxu1 %v2772_v0 }
 0x42b   : > { %v2254_v34 = vpop.eup %2253 }
 0x42c   : > { %v1263_v36 = vpack.c.bf16 %v2254_v34, %v2254_v34  ;;  %v2256_v37 = vpop.eup %2255  ;;  %v1251_v45 = vsel %vm765_vm1, %v2254_v34, 0.0 }
 0x42d   : > { %v2258_v38 = vpop.eup %2257  ;;  %v829_v42 = vmul.f32 %v2256_v37, %v828_v41 }
 0x42e   : > { %2027 = vmatmul.mubr.msk.bf16.vlgmr.msra.gmra.mrb[16].mxu0 %vm765_vm1, %v1263_v36  ;;  %v2260_v39 = vpop.eup %2259  ;;  %v969_v53 = vmul.f32 %v2258_v38, %v968_v52 }
 0x42f   : > { %2042 = vmatprep.mubr.msk.bf16.mxu0 %vm2773_vm0, %v2772_v0  ;;  %v2262_v40 = vpop.eup %2261  ;;  %v1111_v58 = vmul.f32 %v2260_v39, %v1110_v56  ;;  %v1938_v56 = vld [vmem:[#allocation16] ss:$0 sm:$0xff] }
 0x430   : > { %v1250_v5 = vmul.f32 %v2262_v40, %v1249_v4 }
 0x433   : > { %839 = vperm.xlu0 %2235, %v2256_v37  }
 0x436   : > { %978 = vperm.xlu1 %2234, %v2258_v38  }
 0x437   : > { %1120 = vperm.xlu0 %2235, %v2260_v39  }
 0x43b   : > { %1259 = vperm.xlu0 %2235, %v2262_v40  }
 0x456   : > { %v832_v43 = vpop.xlane.xlu1 %831 }
 0x457   : > { %v833_v44 = vadd.f32 %v832_v43, %v829_v42 }
 0x459   : > { %835 = vst.msk [vmem:[#allocation3] sm:$0xff] %vm742_vm3, %v833_v44 }
 0x45a   : > { %1252 = vadd.xlane.f32.xlu1 %v1251_v45 }
 0x460   : > { %v1323_v46 = vld [vmem:[#allocation3] sm:$0xff] }
 0x461   : > { %2263 = vrcp.f32 %v1323_v46 }
 0x46b   : > { %v2264_v47 = vpop.eup %2263 }
 0x46c   : > { %1328 = vperm.xlu0 %2235, %v2264_v47  }
 0x47d   : > { %v885_v48 = vpop.f32.mrb[4].mxu0 }
 0x47e   : > { %v1992_v49 = vpop.f32.mrb[5].mxu0 }
 0x47f   : > { %v888_v50 = vpop.f32.mrb[6].mxu0 }
 0x480   : > { %v1993_v51 = vpop.f32.mrb[7].mxu0 }
 0x4aa   : > { %v972_v54 = vpop.xlane.xlu0 %971 }
 0x4ab   : > { %v973_v55 = vadd.f32 %v972_v54, %v969_v53  ;;  %v1425_v54 = vld [vmem:[%s3287_s19] sm:$0xff] }
 0x4ad   : > { %974 = vst.msk [vmem:[#allocation3 + $0x8] sm:$0xff] %vm742_vm3, %v973_v55 }
 0x4b2   : > { %v1114_v59 = vpop.xlane.xlu1 %1113  ;;  %v840_v60 = vpop.permute.xlu0 %839 }
 0x4b3   : > { %v1115_v61 = vadd.f32 %v1114_v59, %v1111_v58  ;;  %v842_v62 = vmul.f32 %v840_v60, %v836_v57 }
 0x4b4   : > { %v1333_v12 = vld [vmem:[#allocation3 + $0x8] sm:$0xff] }
 0x4b5   : > { %1116 = vst.msk [vmem:[#allocation3 + $0x10] sm:$0xff] %vm742_vm3, %v1115_v61  ;;  %v891_v63 = vadd.f32 %v885_v48, %v842_v62 }
 0x4b6   : > { %v979_v3 = vpop.permute.xlu1 %978  ;;  %v1121_v30 = vpop.permute.xlu0 %1120 }
 0x4b7   : > { %892 = vst.msk [vmem:[#allocation4] sm:$0xff] %vm765_vm1, %v891_v63 }
 0x4ba   : > { %v1260_v35 = vpop.permute.xlu0 %1259 }
 0x4bc   : > { %v1343_v1 = vld [vmem:[#allocation3 + $0x10] sm:$0xff] }
 0x4bd   : > { %2265 = vrcp.f32 %v1343_v1 }
 0x4be   : > { %2267 = vrcp.f32 %v1333_v12  ;;  %v975_v26 = vld [vmem:[#allocation4] sm:$0xff] }
 0x4bf   : > { %v981_v27 = vmul.f32 %v979_v3, %v975_v26  ;;  %v1941_v26 = vld [vmem:[#allocation22] ss:$0 sm:$0xff] }
 0x4c7   : > { %v2266_v2 = vpop.eup %2265 }
 0x4c8   : > { %1348 = vperm.xlu0 %2235, %v2266_v2   ;;  %v2268_v22 = vpop.eup %2267 }
 0x4e7   : > { %v1253_v6 = vpop.xlane.xlu1 %1252 }
 0x4e8   : > { %v1254_v7 = vadd.f32 %v1253_v6, %v1250_v5  ;;  %v2241_v5 = vld [vmem:[#allocation20] sm:$0xff]   ;;  %v2242_v6 = vld [vmem:[#allocation20 + $0x8] sm:$0xff]  }
 0x4e9   : > { %2039 = vmatpush3.bf16.msra.mxu0 %v2241_v5 }
 0x4ea   : > { %1255 = vst.msk [vmem:[#allocation3 + $0x18] sm:$0xff] %vm742_vm3, %v1254_v7  ;;  %2040 = vmatprep.subr.bf16.mxu0 %v2772_v0  ;;  %v2243_v7 = vld [vmem:[#allocation23] sm:$0xff]  }
 0x4eb   : > { %v1329_v40 = vpop.permute.xlu0 %1328 }
 0x4ed   : > { %2041 = vmatpush3.bf16.msra.mxu0 %v2242_v6 }
 0x4f1   : > { %v1028_v8 = vpop.f32.mrb[8].mxu0  ;;  %v1353_v17 = vld [vmem:[#allocation3 + $0x18] sm:$0xff] }
 0x4f2   : > { %v2004_v9 = vpop.f32.mrb[9].mxu0  ;;  %1035 = vrot.lane.b32.xlu1 %v1028_v8, %s2780_s9  ;;  %2269 = vrcp.f32 %v1353_v17  ;;  %v2244_v8 = vld [vmem:[#allocation23 + $0x8] sm:$0xff]  }
 0x4f3   : > { %v1031_v10 = vpop.f32.mrb[10].mxu0  ;;  %v1939_v17 = vld [vmem:[#allocation17] ss:$0 sm:$0xff] }
 0x4f4   : > { %v2005_v11 = vpop.f32.mrb[11].mxu0 }
 0x4f9   : > { %v1167_v13 = vpop.f32.mrb[12].mxu0 }
 0x4fa   : > { %1174 = vrot.lane.b32.xlu1 %v1167_v13, %s2781_s7  ;;  %v2016_v14 = vpop.f32.mrb[13].mxu0 }
 0x4fb   : > { %v1170_v15 = vpop.f32.mrb[14].mxu0 }
 0x4fc   : > { %v2017_v16 = vpop.f32.mrb[15].mxu0  ;;  %v2270_v23 = vpop.eup %2269 }
 0x501   : > { %v1306_v18 = vpop.f32.mrb[16].mxu0 }
 0x502   : > { %1313 = vrot.lane.b32.xlu1 %v1306_v18, %s2782_s17  ;;  %v2028_v19 = vpop.f32.mrb[17].mxu0 }
 0x503   : > { %v1309_v20 = vpop.f32.mrb[18].mxu0 }
 0x504   : > { %v2029_v21 = vpop.f32.mrb[19].mxu0  ;;  %v1940_v20 = vld [vmem:[#allocation19] ss:$0 sm:$0xff] }
 0x506   : > { %1338 = vperm.xlu1 %2234, %v2268_v22  }
 0x50a   : > { %1358 = vperm.xlu1 %2234, %v2270_v23  }
 0x547   : > { %v1349_v46 = vpop.permute.xlu0 %1348 }
 0x564   : > { %v1036_v28 = vpop.permute.xlu1 %1035 }
 0x565   : > { %v1038_v29 = vadd.f32 %v1036_v28, %v981_v27 }
 0x567   : > { %1040 = vst.msk [vmem:[#allocation4] sm:$0xff] %vm1039_vm6, %v1038_v29 }
 0x56c   : > { %v1175_v33 = vpop.permute.xlu1 %1174 }
 0x56e   : > { %v1117_v31 = vld [vmem:[#allocation4] sm:$0xff] }
 0x56f   : > { %v1123_v32 = vmul.f32 %v1121_v30, %v1117_v31 }
 0x571   : > { %v1177_v34 = vadd.f32 %v1175_v33, %v1123_v32 }
 0x573   : > { %1179 = vst.msk [vmem:[#allocation4] sm:$0xff] %vm1178_vm7, %v1177_v34 }
 0x574   : > { %v1314_v38 = vpop.permute.xlu1 %1313 }
 0x57a   : > { %v1256_v36 = vld [vmem:[#allocation4] sm:$0xff] }
 0x57b   : > { %v1262_v37 = vmul.f32 %v1260_v35, %v1256_v36  ;;  %v1950_v35 = vld [vmem:[#allocation25] ss:$0 sm:$0xff] }
 0x57d   : > { %v1316_v39 = vadd.f32 %v1314_v38, %v1262_v37 }
 0x57f   : > { %1318 = vst.msk [vmem:[#allocation4] sm:$0xff] %vm1317_vm8, %v1316_v39 }
 0x585   : > { %v1339_v43 = vpop.permute.xlu1 %1338 }
 0x586   : > { %v1325_v41 = vld [vmem:[#allocation4] sm:$0xff] }
 0x587   : > { %v1331_v42 = vmul.f32 %v1329_v40, %v1325_v41 }
 0x589   : > { %1332 = vst.msk [vmem:[#allocation4] sm:$0xff] %vm765_vm1, %v1331_v42  ;;  %v1359_v49 = vpop.permute.xlu1 %1358 }
 0x590   : > { %v1335_v44 = vld [vmem:[#allocation4] sm:$0xff] }
 0x591   : > { %v1341_v45 = vmul.f32 %v1339_v43, %v1335_v44 }
 0x593   : > { %1342 = vst.msk [vmem:[#allocation4] sm:$0xff] %vm1039_vm6, %v1341_v45 }
 0x59a   : > { %v1345_v47 = vld [vmem:[#allocation4] sm:$0xff] }
 0x59b   : > { %v1351_v48 = vmul.f32 %v1349_v46, %v1345_v47 }
 0x59d   : > { %1352 = vst.msk [vmem:[#allocation4] sm:$0xff] %vm1178_vm7, %v1351_v48 }
 0x5a4   : > { %v1355_v50 = vld [vmem:[#allocation4] sm:$0xff] }
 0x5a5   : > { %v1361_v51 = vmul.f32 %v1359_v49, %v1355_v50 }
 0x5a7   : > { %1362 = vst.msk [vmem:[#allocation4] sm:$0xff] %vm1317_vm8, %v1361_v51 }
 0x5ae   : > { %v1363_v52 = vld [vmem:[#allocation4] sm:$0xff] }
 0x5af   : > { %v1364_v53 = vpack.c.bf16 %v1363_v52, %v1363_v52 }
 0x5b1   : > { %2035 = vmatmul.mubr.msk.bf16.vlgmr.msra.gmra.mrb[12].mxu1 %vm751_vm5, %v1364_v53 }
 0x5b2   : > { %2054 = vmatprep.mubr.msk.bf16.mxu1 %vm2773_vm0, %v2772_v0  ;;  %2047 = vmatpush3.bf16.msra.mxu1 %v2243_v7 }
 0x5b3   : > { %2048 = vmatprep.subr.bf16.mxu1 %v2772_v0 }
 0x5b6   : > { %2049 = vmatpush3.bf16.msra.mxu1 %v2244_v8 }
 0x5b7   : > { %2050 = vmatprep.subr.bf16.mxu1 %v2772_v0 }
 0x5ba   : > { %2051 = vmatpush3.bf16.msra.mxu1 %v2245_v24 }
 0x5bb   : > { %2052 = vmatprep.subr.bf16.mxu1 %v2772_v0 }
 0x5be   : > { %2053 = vmatpush3.bf16.msra.mxu1 %v2246_v25 }
 0x684   : > { %v1419_v55 = vpop.f32.mrb[12].mxu1 }
 0x685   : > { %v1426_v57 = vadd.f32 %v1425_v54, %v1419_v55  ;;  %v2036_v58 = vpop.f32.mrb[13].mxu1 }
 0x686   : > { %v1422_v59 = vpop.f32.mrb[14].mxu1 }
 0x687   : > { %v1434_v60 = vadd.f32 %v1938_v56, %v1426_v57  ;;  %v2037_v61 = vpop.f32.mrb[15].mxu1 }
 0x689   : > { %v1437_v62 = vsel %vm751_vm5, %v1434_v60, 0.0 }
 0x68a   : > { %1438 = vadd.xlane.f32.xlu0 %v1437_v62 }
 0x717   : > { %v1439_v63 = vpop.xlane.xlu0 %1438 }
 0x718   : > { %v1441_v1 = vmul.f32 0.03125, %v1439_v63 }
 0x71a   : > { %v1442_v2 = vsub.f32 %v1434_v60, %v1441_v1 }
 0x71c   : > { %v1443_v3 = vmul.f32 %v1442_v2, %v1442_v2  ;;  %v1464_v18 = vmul.f32 %v1939_v17, %v1442_v2 }
 0x71e   : > { %v1444_v4 = vsel %vm751_vm5, %v1443_v3, 0.0 }
 0x71f   : > { %1445 = vadd.xlane.f32.xlu1 %v1444_v4 }
 0x7ac   : > { %v1446_v9 = vpop.xlane.xlu1 %1445 }
 0x7ad   : > { %v1447_v10 = vmul.f32 0.03125, %v1446_v9 }
 0x7af   : > { %2271 = vrsqrt.f32 %v1447_v10  ;;  %vm1450_vm9 = vcmp.eq.f32.partialorder %v1447_v10, inf  ;;  %v1453_v13 = vand.u32 2147483648, %v1447_v10  ;;  %vm1452_vm10 = vcmp.eq.f32.partialorder %v1447_v10, 0.0 }
 0x7b9   : > { %v2272_v11 = vpop.eup %2271 }
 0x7ba   : > { %v1449_v12 = vmul.f32 %v2272_v11, %v1447_v10 }
 0x7bc   : > { %v1451_v14 = vsel %vm1450_vm9, %v1447_v10, %v1449_v12 }
 0x7bd   : > { %v1454_v15 = vsel %vm1452_vm10, %v1453_v13, %v1451_v14 }
 0x7be   : > { %v1455_v16 = vadd.f32 1e-06, %v1454_v15 }
 0x7c0   : > { %2273 = vrcp.f32 %v1455_v16 }
 0x7ca   : > { %v2274_v19 = vpop.eup %2273 }
 0x7cb   : > { %v1465_v21 = vmul.f32 %v2274_v19, %v1464_v18 }
 0x7cd   : > { %v1472_v22 = vadd.f32 %v1940_v20, %v1465_v21 }
 0x7cf   : > { %v1473_v23 = vpack.c.bf16 %v1472_v22, %v1472_v22 }
 0x7d1   : > { %2043 = vmatmul.mubr.msk.bf16.vlgmr.msra.gmra.mrb[20].mxu0 %vm751_vm5, %v1473_v23 }
 0x8a4   : > { %v1534_v27 = vpop.f32.mrb[20].mxu0 }
 0x8a5   : > { %v1535_v28 = vadd.f32 %v1941_v26, %v1534_v27  ;;  %v2044_v29 = vpop.f32.mrb[21].mxu0 }
 0x8a6   : > { %v1537_v30 = vpop.f32.mrb[22].mxu0 }
 0x8a7   : > { %v1540_v31 = vmax.f32 %v1535_v28, 0.0  ;;  %v2045_v32 = vpop.f32.mrb[23].mxu0 }
 0x8a9   : > { %v1541_v33 = vpack.c.bf16 %v1540_v31, %v1540_v31 }
 0x8ab   : > { %2055 = vmatmul.mubr.msk.bf16.vlgmr.msra.gmra.mrb[16].mxu1 %vm1574_vm11, %v1541_v33 }
 0x97e   : > { %v1612_v34 = vpop.f32.mrb[16].mxu1 }
 0x97f   : > { %v1618_v0 = vadd.f32 %v1612_v34, %v1434_v60  ;;  %v2056_v36 = vpop.f32.mrb[17].mxu1 }
 0x980   : > { %v1615_v37 = vpop.f32.mrb[18].mxu1 }
 0x981   : > { %v1626_v38 = vadd.f32 %v1950_v35, %v1618_v0  ;;  %v2057_v39 = vpop.f32.mrb[19].mxu1 }
 0x983   : > { %1627 = vst.msk [vmem:[%s736_s4] sm:$0xff] %vm751_vm5, %v1626_v38 }
 0x984   : > { %2662 = shalt.err (!%p2659_p10)
}
 0x985   : > { %s2663_s11 = scalar_lea.hbm %s3481_s21, 128  ;;  %s2667_s23 = scalar_lea.hbm %s3626_s22, 256 }
 0x986   : > { %p2664_p0 = scmp.ne.s32.totalorder %s3481_s21, %s2663_s11  ;;  %p2668_p1 = scmp.lt.u32.totalorder %s3481_s21, %s3626_s22 }
 0x987   : > { %p2669_p3 = scmp.lt.u32.totalorder %s2667_s23, %s2663_s11  ;;  %p2671_p13 = scmp.lt.u32.totalorder %s2663_s11, %s3481_s21 }
 0x988   : > { %p2665_p5 = pnand %p2664_p0, %p3627_p12 }
 0x989   : > { %p2670_p2 = por %p2669_p3, %p2668_p1 }
 0x98a   : > { %p2666_p7 = pneg %p2665_p5 }
 0x98b   : > { %p2672_p8 = por %p2671_p13, %p2670_p2 }
 0x98d   : > { %p2673_p9 = pnand %p2672_p8, %p2666_p7 }
 0x98f   : > { %2676 = shalt.err (!%p2673_p9)
}
 0x990   : > { %2100 = dma.vmem_to_hbm [thread:$0]  (%p3627_p12), %s3483_s1, 128, %s3481_s21, %s1629_s15  }
 0x991 PF: > { %s3628_s7 = sld [smem:[#allocation35_spill]]  ;;  %s3629_s17 = sld [smem:[#allocation41_spill]] }
 0x992   : > { %p3631_p11 = scmp.ge.s32.totalorder %s2755_s30, 2 }
 0x997   : > { %s1655_s28 = sand.u32 1, %s3628_s7   ;;  %p3630_p6 = scmp.ne.s32.totalorder %s3629_s17, 0 }
 0x998   : > { %s1656_s5 = scalar_lea.sflag [#allocation7], %s1655_s28 }
 0x999   : > { %p2144_p4 = pnand %p3631_p11, %p3630_p6 }
 0x99b   : > { %2730 = dma.done.wait (!%p2144_p4), %s1656_s5, 128  }
 0x99c   : > { %2732 = vsyncadd (!%p2144_p4), %s1656_s5, 4294967168  ;;  %s39_s30 = sadd.s32 1, %s2755_s30   ;;  %s3632_s4 = sld [smem:[#allocation36_spill]] }
 0x99d   : > { %p36_p10 = scmp.ge.s32.totalorder %s39_s30, 4   ;;  %s3633_s27 = sld [smem:[#allocation40_spill]] }
 0x99e   : > { %s3634_s12 = sld [smem:[#allocation39_spill]]  ;;  %s3635_s25 = smov %s2739_s26 }
 0x99f   : > { %s3637_s28 = smov %s2751_s29  ;;  %38 = sbr.rel (!%p36_p10) target bundleno = 26 (0x1a), region = 211 }
 0x9a2   : > { %s3636_s26 = smov %s3632_s4 }
 0x9a4   : > { %s3638_s29 = smov %s3634_s12 }
 0x9a6   :  { %1661 = vsyncpa [#allocation6], 1 }
 0x9a7   :  { %1663 = vsyncpa [#allocation6 + $0x1], 1 }
 0x9a8   :  { %1664 = vsyncpa [#allocation9], 1 }
 0x9a9   :  { %1666 = vsyncpa [#allocation9 + $0x1], 1 }
 0x9aa   :  { %1667 = vsyncpa [#allocation12], 1 }
 0x9ab   :  { %1669 = vsyncpa [#allocation12 + $0x1], 1 }
 0x9ac   :  { %1670 = vsyncpa [#allocation15], 1 }
 0x9ad   :  { %1671 = vsyncpa [#allocation18], 1 }
 0x9ae   :  { %1672 = vsyncpa [#allocation21], 1 }
 0x9af   :  { %1673 = vsyncpa [#allocation24], 1 }
 0x9b0   :  { %1674 = vsyncpa [#allocation7], 1 }
 0x9b1   :  { %1676 = vsyncpa [#allocation7 + $0x1], 1 }

// kernel: _lambda_.2
= control target key start
LH: loop header
LB: loop body
LE: loop exit
PB: predicated region body
PF: predicated region fallthrough
CT: control target
= control target key end

     0   :  { %s1633_s0 = inlined_call_operand.hbm [shape: f32[2,8,32], index: 0, kind: input, shape index: {}]   ;;  %s1634_s1 = inlined_call_operand.hbm [shape: f32[1,32], index: 1, kind: input, shape index: {}]   ;;  %s1635_s2 = inlined_call_operand.hbm [shape: f32[1,32], index: 2, kind: input, shape index: {}]   ;;  %s1636_s3 = inlined_call_operand.hbm [shape: bf16[32,96], index: 3, kind: input, shape index: {}]   ;;  %s1637_s4 = inlined_call_operand.hbm [shape: f32[1,96], index: 4, kind: input, shape index: {}]   ;;  %s1638_s5 = inlined_call_operand.hbm [shape: bf16[2,8,32], index: 5, kind: output, shape index: {0}]   ;;  %s1639_s6 = inlined_call_operand.hbm [shape: bf16[2,8,32], index: 6, kind: output, shape index: {1}]   ;;  %s1640_s7 = inlined_call_operand.hbm [shape: bf16[2,8,32], index: 7, kind: output, shape index: {2}]  }
   0x1   :  { %1645 = sst [smem:[#allocation20_spill]] %s1634_s1 }
   0x2   :  { %1646 = sst [smem:[#allocation21_spill]] %s1635_s2 }
   0x3   :  { %13 = vsyncpa [#allocation3], 0 }
   0x4   :  { %15 = vsyncpa [#allocation3 + $0x1], 0 }
   0x5   :  { %16 = vsyncpa [#allocation6], 0 }
   0x6   :  { %17 = vsyncpa [#allocation9], 0 }
   0x7   :  { %18 = vsyncpa [#allocation4], 0 }
   0x8   :  { %20 = vsyncpa [#allocation4 + $0x1], 0 }
   0x9   :  { %21 = vsyncpa [#allocation13], 0 }
   0xa   :  { %23 = vsyncpa [#allocation13 + $0x1], 0  ;;  %s1260_s24 = smov 0   ;;  %s1262_s25 = smov 0  }
   0xb   :  { %s1264_s26 = smov 0   ;;  %s1266_s27 = smov 0  }
   0xc   :  { %s1268_s28 = smov 0   ;;  %s1270_s29 = smov 0  }
   0xd LB: > { %s1291_s30 = sadd.s32 4294967295, %s1204_s29   ;;  %p743_p0 = scmp.ge.s32.totalorder %s1204_s29, 1  ;;  %s1204_s29 = sphi %s1270_s29, %s29_s29   ;;  %s1200_s28 = sphi %s1268_s28, %s1671_s28   ;;  %s1196_s27 = sphi %s1266_s27, %s1670_s27   ;;  %s1192_s26 = sphi %s1264_s26, %s1669_s26   ;;  %s1188_s25 = sphi %s1262_s25, %s1668_s25   ;;  %s1184_s24 = sphi %s1260_s24, %s1667_s24  }
   0xe   : > { %p1641_p1 = scmp.eq.s32.totalorder %s1291_s30, 0  ;;  %p242_p2 = scmp.lt.s32.totalorder %s1204_s29, 3 }
   0xf   : > { %s1206_s9 = smov [#allocation5]   ;;  %s1207_s11 = smov [#allocation8]  }
  0x10   : > { %p1296_p3 = pnand %p743_p0, %p242_p2  ;;  %s255_s10 = sshll.u32 %s1206_s9, 4  ;;  %s256_s10 = int_to_ptr.vmem [resolvable:$true] %s255_s10 }
  0x11   : > { %s276_s12 = sshll.u32 %s1207_s11, 4  ;;  %s1208_s14 = smov [#allocation7]   ;;  %s1309_s12 = int_to_ptr.vmem [resolvable:$true] %s276_s12 }
  0x12   : > { %s1647_s8 = scalar_select %p1296_p3, 1, 0 }
  0x13   : > { %p811_p5 = pneg %p1296_p3  ;;  %s1311_s15 = sshll.u32 %s1208_s14, 4  ;;  %s267_s15 = int_to_ptr.vmem [resolvable:$true] %s1311_s15 }
  0x14   : > { %s1649_s1 = sld [smem:[#allocation20_spill]] }
  0x15   : > { %p1305_p6 = pnand %p811_p5, %p1641_p1 }
  0x17   : > { %p1321_p8 = pneg %p1305_p6 }
  0x1a   : > { %s912_s18 = scalar_lea.hbm %s1649_s1, 16 }
  0x1b   : > { %p913_p7 = scmp.ne.s32.totalorder %s1649_s1, %s912_s18  ;;  %p919_p11 = scmp.lt.u32.totalorder %s912_s18, %s1649_s1 }
  0x1d   : > { %p915_p9 = pnand %p1321_p8, %p913_p7 }
  0x1f   : > { %p916_p10 = pneg %p915_p9 }
  0x21   : > { %p921_p12 = pnand %p919_p11, %p916_p10 }
  0x23   : > { %924 = shalt.err (!%p921_p12)
}
  0x24   : > { %s925_s9 = scalar_lea.vmem %s256_s10, 16  ;;  %s932_s11 = scalar_lea.vmem %s256_s10, 32 }
  0x25   : > { %p926_p13 = scmp.ne.s32.totalorder %s256_s10, %s925_s9  ;;  %p933_p5 = scmp.lt.s32.totalorder %s256_s10, %s256_s10 }
  0x26   : > { %p934_p4 = scmp.lt.s32.totalorder %s932_s11, %s925_s9 }
  0x27   : > { %p928_p0 = pnand %p926_p13, %p1321_p8 }
  0x28   : > { %p935_p1 = por %p934_p4, %p933_p5 }
  0x29   : > { %p929_p2 = pneg %p928_p0 }
  0x2b   : > { %p936_p3 = pnand %p935_p1, %p929_p2 }
  0x2d   : > { %939 = shalt.err (!%p936_p3)
}
  0x2e   : > { %814 = dma.hbm_to_vmem [thread:$0]  (!%p1305_p6), %s1649_s1, 16, %s256_s10, [#allocation6]  }
  0x2f   : > { %s940_s19 = scalar_lea.hbm %s1636_s3, 256 }
  0x30   : > { %p941_p7 = scmp.ne.s32.totalorder %s1636_s3, %s940_s19  ;;  %p947_p1 = scmp.lt.u32.totalorder %s940_s19, %s1636_s3 }
  0x32   : > { %p943_p9 = pnand %p941_p7, %p1321_p8 }
  0x34   : > { %p944_p4 = pneg %p943_p9 }
  0x36   : > { %p949_p3 = pnand %p947_p1, %p944_p4 }
  0x38   : > { %952 = shalt.err (!%p949_p3)
}
  0x39   : > { %s953_s10 = scalar_lea.vmem %s1309_s12, 256  ;;  %p961_p13 = scmp.lt.s32.totalorder %s1309_s12, %s1309_s12 }
  0x3a   : > { %p954_p10 = scmp.ne.s32.totalorder %s1309_s12, %s953_s10  ;;  %p962_p0 = scmp.lt.s32.totalorder %s953_s10, %s953_s10 }
  0x3c   : > { %p956_p11 = pnand %p954_p10, %p1321_p8  ;;  %p963_p2 = por %p962_p0, %p961_p13 }
  0x3e   : > { %p957_p12 = pneg %p956_p11 }
  0x40   : > { %p964_p5 = pnand %p963_p2, %p957_p12 }
  0x42   : > { %967 = shalt.err (!%p964_p5)
}
  0x43   : > { %s1209_s11 = smov 64   ;;  %s1210_s14 = smov 4  }
  0x44   : > { %820 = dma.hbm_to_vmem [thread:$0]  (!%p1305_p6), %s1636_s3, 256, %s1309_s12, [#allocation9], %s1209_s11, %s1209_s11, %s1210_s14  }
  0x45   : > { %s1651_s2 = sld [smem:[#allocation21_spill]] }
  0x4b   : > { %s968_s20 = scalar_lea.hbm %s1651_s2, 16 }
  0x4c   : > { %p969_p7 = scmp.ne.s32.totalorder %s1651_s2, %s968_s20  ;;  %p975_p1 = scmp.lt.u32.totalorder %s968_s20, %s1651_s2 }
  0x4e   : > { %p971_p9 = pnand %p969_p7, %p1321_p8 }
  0x50   : > { %p972_p4 = pneg %p971_p9 }
  0x52   : > { %p977_p3 = pnand %p975_p1, %p972_p4 }
  0x54   : > { %980 = shalt.err (!%p977_p3)
}
  0x55   : > { %s981_s16 = scalar_lea.vmem %s267_s15, 16  ;;  %s988_s12 = scalar_lea.vmem %s267_s15, 32 }
  0x56   : > { %p982_p10 = scmp.ne.s32.totalorder %s267_s15, %s981_s16  ;;  %p989_p13 = scmp.lt.s32.totalorder %s267_s15, %s267_s15 }
  0x57   : > { %p990_p0 = scmp.lt.s32.totalorder %s988_s12, %s981_s16 }
  0x58   : > { %p984_p11 = pnand %p982_p10, %p1321_p8 }
  0x59   : > { %p991_p2 = por %p990_p0, %p989_p13 }
  0x5a   : > { %p985_p12 = pneg %p984_p11 }
  0x5c   : > { %p992_p5 = pnand %p991_p2, %p985_p12 }
  0x5e   : > { %995 = shalt.err (!%p992_p5)
}
  0x5f   : > { %817 = dma.hbm_to_vmem [thread:$0]  (!%p1305_p6), %s1651_s2, 16, %s267_s15, [#allocation6]  }
  0x60   : > { %s1211_s17 = smov [#allocation10]   ;;  %s996_s22 = scalar_lea.hbm %s1637_s4, 16 }
  0x61   : > { %s290_s18 = sshll.u32 %s1211_s17, 4  ;;  %p997_p7 = scmp.ne.s32.totalorder %s1637_s4, %s996_s22  ;;  %s291_s18 = int_to_ptr.vmem [resolvable:$true] %s290_s18 }
  0x62   : > { %p1003_p1 = scmp.lt.u32.totalorder %s996_s22, %s1637_s4 }
  0x63   : > { %p999_p9 = pnand %p997_p7, %p1321_p8 }
  0x65   : > { %p1000_p4 = pneg %p999_p9 }
  0x67   : > { %p1005_p3 = pnand %p1003_p1, %p1000_p4 }
  0x69   : > { %1008 = shalt.err (!%p1005_p3)
}
  0x6a   : > { %s1009_s15 = scalar_lea.vmem %s291_s18, 16  ;;  %s1016_s12 = scalar_lea.vmem %s291_s18, 32 }
  0x6b   : > { %p1010_p10 = scmp.ne.s32.totalorder %s291_s18, %s1009_s15  ;;  %p1017_p13 = scmp.lt.s32.totalorder %s291_s18, %s291_s18 }
  0x6c   : > { %p1018_p0 = scmp.lt.s32.totalorder %s1016_s12, %s1009_s15 }
  0x6d   : > { %p1012_p11 = pnand %p1010_p10, %p1321_p8 }
  0x6e   : > { %p1019_p2 = por %p1018_p0, %p1017_p13 }
  0x6f   : > { %p1013_p12 = pneg %p1012_p11 }
  0x71   : > { %p1020_p5 = pnand %p1019_p2, %p1013_p12 }
  0x73   : > { %1023 = shalt.err (!%p1020_p5)
}
  0x74   : > { %823 = dma.hbm_to_vmem [thread:$0]  (!%p1305_p6), %s1637_s4, 16, %s291_s18, [#allocation9]  }
  0x75   : > { %s1643_s21 = sadd.s32 4294967294, %s1204_s29   ;;  %s41_s17 = sadd.s32 1, %s1200_s28 }
  0x76   : > { %p43_p8 = scmp.ge.s32.totalorder %s41_s17, 2  ;;  %s50_s13 = sadd.s32 1, %s1192_s26 }
  0x77   : > { %p57_p7 = scmp.ne.s32.totalorder %s1192_s26, %s1188_s25  ;;  %p58_p9 = scmp.eq.s32.totalorder %s1204_s29, 0 }
  0x78   : > { %s1673_s17 = smov (%p43_p8, %s41_s17), 0  ;;  %p63_p1 = scmp.ne.s32.totalorder %s1188_s25, %s1184_s24 }
  0x79   : > { %p1405_p4 = por %p58_p9, %p57_p7  ;;  %s45_s18 = ssub.s32 %s1200_s28, %s1673_s17 }
  0x7a   : > { %p173_p6 = scmp.eq.s32.totalorder %s1291_s30, 1  ;;  %p48_p3 = scmp.eq.s32.totalorder %s45_s18, 0 }
  0x7b   : > { %p1653_p10 = scmp.eq.s32.totalorder %s1291_s30, 0  ;;  %p179_p13 = scmp.eq.s32.totalorder %s1643_s21, 1 }
  0x7c   : > { %p1420_p12 = por %p173_p6, %p57_p7  ;;  %p842_p2 = scmp.lt.s32.totalorder %s1204_s29, 2 }
  0x7d   : > { %p1416_p11 = por %p1653_p10, %p63_p1  ;;  %p1429_p0 = por %p179_p13, %p63_p1 }
  0x7e   : > { %s1655_s22 = scalar_select %p1420_p12, 1, 0 }
  0x7f   : > { %s1427_s23 = scalar_select %p48_p3, %s1192_s26, %s50_s13  }
  0x80   : > { %s1656_s9 = scalar_select %p1429_p0, 1, 0 }
  0x81   : > { %s301_s10 = sand.u32 1, %s1192_s26   ;;  %s750_s16 = sshll.u32 %s1200_s28, 7 }
  0x82   : > { %s749_s15 = sshll.u32 %s301_s10, 3  ;;  %s1439_s14 = scalar_lea.hbm %s1633_s0, %s750_s16 }
  0x83   : > { %s305_s18 = scalar_lea.vmem [#allocation2], %s749_s15  ;;  %p1443_p5 = pnand %p842_p2, %p1405_p4 }
  0x84   : > { %s313_s13 = sshll.u32 %s305_s18, 4  ;;  %s302_s1 = scalar_lea.sflag [#allocation3], %s301_s10  ;;  %s1447_s13 = int_to_ptr.vmem [resolvable:$true] %s313_s13 }
  0x85   : > { %s1024_s2 = scalar_lea.hbm %s1439_s14, 128  ;;  %p1026_p7 = pneg %p1443_p5 }
  0x86   : > { %p1025_p8 = scmp.ne.s32.totalorder %s1439_s14, %s1024_s2  ;;  %s1029_s19 = scalar_lea.hbm %s1633_s0, 256 }
  0x87   : > { %p1030_p4 = scmp.lt.u32.totalorder %s1439_s14, %s1633_s0  ;;  %p1031_p6 = scmp.lt.u32.totalorder %s1029_s19, %s1024_s2 }
  0x88   : > { %p1027_p9 = pnand %p1026_p7, %p1025_p8  ;;  %p1033_p10 = scmp.lt.u32.totalorder %s1024_s2, %s1439_s14 }
  0x89   : > { %p1032_p3 = por %p1031_p6, %p1030_p4 }
  0x8a   : > { %p1028_p1 = pneg %p1027_p9 }
  0x8b   : > { %p1034_p13 = por %p1033_p10, %p1032_p3 }
  0x8d   : > { %p1035_p2 = pnand %p1034_p13, %p1028_p1 }
  0x8f   : > { %1038 = shalt.err (!%p1035_p2)
}
  0x90   : > { %s1039_s10 = scalar_lea.vmem %s1447_s13, 128  ;;  %s1212_s18 = smov [#allocation2]  }
  0x91   : > { %p1040_p8 = scmp.ne.s32.totalorder %s1447_s13, %s1039_s10  ;;  %s1044_s16 = sshll.u32 %s1212_s18, 4  ;;  %s1045_s16 = int_to_ptr.vmem [resolvable:$false] %s1044_s16 }
  0x92   : > { %s1046_s15 = scalar_lea.vmem %s1045_s16, 256  ;;  %p1047_p12 = scmp.lt.s32.totalorder %s1447_s13, %s1045_s16 }
  0x93   : > { %p1042_p9 = pnand %p1040_p8, %p1026_p7  ;;  %p1048_p4 = scmp.lt.s32.totalorder %s1046_s15, %s1039_s10 }
  0x95   : > { %p1043_p0 = pneg %p1042_p9  ;;  %p1049_p6 = por %p1048_p4, %p1047_p12 }
  0x97   : > { %p1050_p3 = pnand %p1049_p6, %p1043_p0 }
  0x99   : > { %1053 = shalt.err (!%p1050_p3)
}
  0x9a   : > { %827 = dma.hbm_to_vmem [thread:$0]  (!%p1443_p5), %s1439_s14, 128, %s1447_s13, %s302_s1  }
  0x9b   : > { %p1658_p1 = scmp.ne.s32.totalorder %s1647_s8, 0 }
  0x9c   : > { %s1477_s2 = sand.u32 (!%p1658_p1), 1, %s1188_s25  }
  0x9d   : > { %322 = sbr.rel (%p1658_p1) target bundleno = 869 (0x365), region = 40  ;;  %s752_s19 = sshll.u32 (!%p1658_p1), %s1477_s2, 3 }
  0x9e   : > { %s325_s12 = scalar_lea.sflag (!%p1658_p1), [#allocation3], %s1477_s2  ;;  %s328_s11 = scalar_lea.vmem (!%p1658_p1), [#allocation2], %s752_s19 }
  0xa4   : > { %1163 = dma.done.wait (%p1416_p11), %s325_s12, 128  }
  0xa5   : > { %1165 = vsyncadd (%p1416_p11), %s325_s12, 4294967168  ;;  %p1659_p12 = scmp.eq.s32.totalorder %s1291_s30, 0 }
  0xa7   : > { %1167 = dma.done.wait (%p1659_p12), [#allocation6], 32   ;;  %p1660_p0 = pmov %p1659_p12 }
  0xa9   : > { %1169 = vsyncadd (%p1660_p0), [#allocation6], 4294967264  ;;  %p1661_p5 = pmov %p1660_p0 }
  0xaa   : > { %p1662_p7 = pmov %p1660_p0 }
  0xab   : > { %1171 = dma.done.wait (%p1661_p5), [#allocation9], 272  }
  0xac   : > { %1173 = vsyncadd (%p1662_p7), [#allocation9], 4294967024  ;;  %vm389_vm0 = vcmask 261120   ;;  %v386_v0 = vld [vmem:[%s328_s11] sm:$0xff]  ;;  %v906_v7 = vld [vmem:[#allocation8] sm:$0xff]   ;;  %v1213_v8 = vmov 0.0  }
  0xad   : > { %v390_v1 = vsel %vm389_vm0, %v386_v0, 0.0  ;;  %779 = vmatprep.subr.bf16.mxu0 %v1213_v8  ;;  %vm1214_vm1 = vmmov 0   ;;  %v907_v9 = vld [vmem:[#allocation8 + $0x8] sm:$0xff]   ;;  %v760_v18 = vld [vmem:[#allocation5] ss:$0 sm:$0xff]  ;;  %s1497_s1 = sshll.u32 %s1477_s2, 2 }
  0xae   : > { %391 = vadd.xlane.f32.xlu0 %v390_v1  ;;  %783 = vmatprep.mubr.msk.bf16.mxu0 %vm1214_vm1, %v1213_v8  ;;  %v761_v21 = vld [vmem:[#allocation7] ss:$0 sm:$0xff]  ;;  %v762_v25 = vld [vmem:[#allocation10] ss:$0 sm:$0xff]  ;;  %s1500_s8 = sshll.u32 %s1196_s27, 6  ;;  %s370_s21 = scalar_lea.vmem [#allocation11], %s1497_s1 }
  0xaf   : > { %780 = vmatpush3.bf16.msra.mxu0 %v906_v7  ;;  %s532_s20 = sshll.u32 %s370_s21, 4  ;;  %vm494_vm4 = vcmask 257024   ;;  %s1507_s10 = scalar_lea.hbm %s1638_s5, %s1500_s8  ;;  %s1509_s20 = int_to_ptr.vmem [resolvable:$true] %s532_s20 }
  0xb0   : > { %781 = vmatprep.subr.bf16.mxu0 %v1213_v8  ;;  %s1215_s27 = smov 96   ;;  %s508_s18 = scalar_lea.sflag [#allocation4], %s1477_s2 }
  0xb1   : > { %s1054_s16 = scalar_lea.vmem %s1509_s20, 64  ;;  %p1663_p10 = scmp.ne.s32.totalorder %s1655_s22, 0 }
  0xb2   : > { %p1055_p11 = scmp.ne.s32.totalorder %s1509_s20, %s1054_s16  ;;  %s1216_s15 = smov [#allocation11]  }
  0xb3   : > { %782 = vmatpush3.bf16.msra.mxu0 %v907_v9  ;;  %s1058_s19 = sshll.u32 %s1216_s15, 4  ;;  %s1059_s19 = int_to_ptr.vmem [resolvable:$false] %s1058_s19 }
  0xb4   : > { %p1056_p13 = pnand %p1055_p11, %p1663_p10  ;;  %s1060_s12 = scalar_lea.vmem %s1059_s19, 128 }
  0xb5   : > { %p1061_p8 = scmp.lt.s32.totalorder %s1509_s20, %s1059_s19  ;;  %p1062_p9 = scmp.lt.s32.totalorder %s1060_s12, %s1054_s16 }
  0xb6   : > { %p1057_p2 = pneg %p1056_p13 }
  0xb7   : > { %p1063_p4 = por %p1062_p9, %p1061_p8 }
  0xb9   : > { %p1064_p6 = pnand %p1063_p4, %p1057_p2 }
 0x13b   : > { %v392_v2 = vpop.xlane.xlu0 %391 }
 0x13c   : > { %v394_v3 = vmul.f32 0.03125, %v392_v2 }
 0x13e   : > { %v395_v4 = vsub.f32 %v386_v0, %v394_v3 }
 0x140   : > { %v396_v5 = vmul.f32 %v395_v4, %v395_v4  ;;  %v417_v19 = vmul.f32 %v760_v18, %v395_v4 }
 0x142   : > { %v397_v6 = vsel %vm389_vm0, %v396_v5, 0.0 }
 0x143   : > { %398 = vadd.xlane.f32.xlu0 %v397_v6 }
 0x1d0   : > { %v399_v10 = vpop.xlane.xlu0 %398 }
 0x1d1   : > { %v400_v11 = vmul.f32 0.03125, %v399_v10 }
 0x1d3   : > { %908 = vrsqrt.f32 %v400_v11  ;;  %vm403_vm2 = vcmp.eq.f32.partialorder %v400_v11, inf  ;;  %v406_v14 = vand.u32 2147483648, %v400_v11  ;;  %vm405_vm3 = vcmp.eq.f32.partialorder %v400_v11, 0.0 }
 0x1dd   : > { %v909_v12 = vpop.eup %908 }
 0x1de   : > { %v402_v13 = vmul.f32 %v909_v12, %v400_v11 }
 0x1e0   : > { %v404_v15 = vsel %vm403_vm2, %v400_v11, %v402_v13 }
 0x1e1   : > { %v407_v16 = vsel %vm405_vm3, %v406_v14, %v404_v15 }
 0x1e2   : > { %v408_v17 = vadd.f32 1e-06, %v407_v16 }
 0x1e4   : > { %910 = vrcp.f32 %v408_v17 }
 0x1ee   : > { %v911_v20 = vpop.eup %910 }
 0x1ef   : > { %v418_v22 = vmul.f32 %v911_v20, %v417_v19 }
 0x1f1   : > { %v425_v23 = vadd.f32 %v761_v21, %v418_v22 }
 0x1f3   : > { %v426_v24 = vpack.c.bf16 %v425_v23, %v425_v23 }
 0x1f5   : > { %784 = vmatmul.mubr.msk.bf16.vlgmr.msra.gmra.mrb[0].mxu0 %vm389_vm0, %v426_v24 }
 0x2c8   : > { %v487_v26 = vpop.f32.mrb[0].mxu0 }
 0x2c9   : > { %v488_v27 = vadd.f32 %v762_v25, %v487_v26  ;;  %v785_v28 = vpop.f32.mrb[1].mxu0 }
 0x2ca   : > { %v490_v29 = vpop.f32.mrb[2].mxu0 }
 0x2cb   : > { %v493_v30 = vpack.c.bf16 %v488_v27, %v488_v27  ;;  %v786_v31 = vpop.f32.mrb[3].mxu0 }
 0x2cd   : > { %499 = vrot.lane.b32.xlu1 %v493_v30, %s1215_s27  ;;  %495 = vst.msk [vmem:[%s370_s21] sm:$0xf] %vm494_vm4, %v493_v30 }
 0x2ce   : > { %1067 = shalt.err (!%p1064_p6)
}
 0x2cf   : > { %s1068_s2 = scalar_lea.hbm %s1507_s10, 64  ;;  %s1072_s14 = scalar_lea.hbm %s1638_s5, 128 }
 0x2d0   : > { %p1069_p3 = scmp.ne.s32.totalorder %s1507_s10, %s1068_s2  ;;  %p1073_p0 = scmp.lt.u32.totalorder %s1507_s10, %s1638_s5 }
 0x2d1   : > { %p1074_p5 = scmp.lt.u32.totalorder %s1072_s14, %s1068_s2  ;;  %p1076_p11 = scmp.lt.u32.totalorder %s1068_s2, %s1507_s10 }
 0x2d2   : > { %p1070_p1 = pnand %p1069_p3, %p1663_p10 }
 0x2d3   : > { %p1075_p7 = por %p1074_p5, %p1073_p0 }
 0x2d4   : > { %p1071_p12 = pneg %p1070_p1 }
 0x2d5   : > { %p1077_p13 = por %p1076_p11, %p1075_p7 }
 0x2d7   : > { %p1078_p2 = pnand %p1077_p13, %p1071_p12 }
 0x2d9   : > { %1081 = shalt.err (!%p1078_p2)
}
 0x2da   : > { %805 = dma.vmem_to_hbm [thread:$0]  (%p1663_p10), %s1509_s20, 64, %s1507_s10, %s508_s18  }
 0x2db   : > { %s1217_s16 = smov 64   ;;  %s512_s15 = sand.u32 1, %s1291_s30  }
 0x2dc   : > { %503 = vrot.lane.b32.xlu1 %v493_v30, %s1217_s16  ;;  %s377_s19 = scalar_lea.vmem [#allocation12], %s1497_s1  ;;  %s1540_s21 = scalar_lea.hbm %s1639_s6, %s1500_s8 }
 0x2dd   : > { %s546_s12 = sshll.u32 %s377_s19, 4  ;;  %s384_s14 = scalar_lea.vmem [#allocation14], %s1497_s1  ;;  %s1542_s12 = int_to_ptr.vmem [resolvable:$true] %s546_s12 }
 0x2de   : > { %s1547_s13 = sshll.u32 %s384_s14, 4  ;;  %s1550_s30 = scalar_lea.sflag [#allocation13], %s512_s15  ;;  %s1581_s13 = int_to_ptr.vmem [resolvable:$true] %s1547_s13 }
 0x2df   : > { %s1082_s20 = scalar_lea.vmem %s1542_s12, 64  ;;  %s1218_s10 = smov [#allocation12]  }
 0x2e0   : > { %p1083_p8 = scmp.ne.s32.totalorder %s1542_s12, %s1082_s20  ;;  %s1086_s18 = sshll.u32 %s1218_s10, 4  ;;  %s1087_s18 = int_to_ptr.vmem [resolvable:$false] %s1086_s18 }
 0x2e1   : > { %s1088_s27 = scalar_lea.vmem %s1087_s18, 128  ;;  %p1089_p6 = scmp.lt.s32.totalorder %s1542_s12, %s1087_s18 }
 0x2e2   : > { %p1084_p9 = pnand %p1083_p8, %p1663_p10  ;;  %p1090_p3 = scmp.lt.s32.totalorder %s1088_s27, %s1082_s20 }
 0x2e4   : > { %p1085_p4 = pneg %p1084_p9  ;;  %p1091_p1 = por %p1090_p3, %p1089_p6 }
 0x2e6   : > { %p1092_p12 = pnand %p1091_p1, %p1085_p4 }
 0x33f   : > { %v500_v32 = vpop.permute.xlu1 %499 }
 0x340   : > { %502 = vst.msk [vmem:[%s377_s19] sm:$0xf] %vm494_vm4, %v500_v32 }
 0x341   : > { %1095 = shalt.err (!%p1092_p12)
}
 0x342   : > { %s1096_s16 = scalar_lea.hbm %s1540_s21, 64  ;;  %s1100_s2 = scalar_lea.hbm %s1639_s6, 128 }
 0x343   : > { %p1097_p0 = scmp.ne.s32.totalorder %s1540_s21, %s1096_s16  ;;  %p1101_p11 = scmp.lt.u32.totalorder %s1540_s21, %s1639_s6 }
 0x344   : > { %p1102_p13 = scmp.lt.u32.totalorder %s1100_s2, %s1096_s16  ;;  %p1104_p8 = scmp.lt.u32.totalorder %s1096_s16, %s1540_s21 }
 0x345   : > { %p1098_p5 = pnand %p1097_p0, %p1663_p10 }
 0x346   : > { %p1103_p2 = por %p1102_p13, %p1101_p11 }
 0x347   : > { %p1099_p7 = pneg %p1098_p5 }
 0x348   : > { %p1105_p9 = por %p1104_p8, %p1103_p2 }
 0x34a   : > { %p1106_p4 = pnand %p1105_p9, %p1099_p7 }
 0x34c   : > { %1109 = shalt.err (!%p1106_p4)
}
 0x34d   : > { %806 = dma.vmem_to_hbm [thread:$0]  (%p1663_p10), %s1542_s12, 64, %s1540_s21, %s1550_s30  }
 0x34e   : > { %s1578_s27 = scalar_lea.hbm %s1640_s7, %s1500_s8  ;;  %v504_v33 = vpop.permute.xlu1 %503  ;;  %s1110_s16 = scalar_lea.vmem %s1581_s13, 64 }
 0x34f   : > { %506 = vst.msk [vmem:[%s384_s14] sm:$0xf] %vm494_vm4, %v504_v33  ;;  %p1111_p6 = scmp.ne.s32.totalorder %s1581_s13, %s1110_s16  ;;  %s1219_s12 = smov [#allocation14]  }
 0x350   : > { %s1114_s21 = sshll.u32 %s1219_s12, 4  ;;  %s1115_s21 = int_to_ptr.vmem [resolvable:$false] %s1114_s21 }
 0x351   : > { %p1112_p3 = pnand %p1111_p6, %p1663_p10  ;;  %s1116_s15 = scalar_lea.vmem %s1115_s21, 128 }
 0x352   : > { %p1117_p12 = scmp.lt.s32.totalorder %s1581_s13, %s1115_s21  ;;  %p1118_p0 = scmp.lt.s32.totalorder %s1116_s15, %s1110_s16 }
 0x353   : > { %p1113_p1 = pneg %p1112_p3 }
 0x354   : > { %p1119_p5 = por %p1118_p0, %p1117_p12 }
 0x356   : > { %p1120_p7 = pnand %p1119_p5, %p1113_p1 }
 0x358   : > { %1123 = shalt.err (!%p1120_p7)
}
 0x359   : > { %s1124_s1 = scalar_lea.hbm %s1578_s27, 64  ;;  %s1128_s19 = scalar_lea.hbm %s1640_s7, 128 }
 0x35a   : > { %p1125_p11 = scmp.ne.s32.totalorder %s1578_s27, %s1124_s1  ;;  %p1129_p8 = scmp.lt.u32.totalorder %s1578_s27, %s1640_s7 }
 0x35b   : > { %p1130_p9 = scmp.lt.u32.totalorder %s1128_s19, %s1124_s1  ;;  %p1132_p6 = scmp.lt.u32.totalorder %s1124_s1, %s1578_s27 }
 0x35c   : > { %p1126_p13 = pnand %p1125_p11, %p1663_p10 }
 0x35d   : > { %p1131_p4 = por %p1130_p9, %p1129_p8 }
 0x35e   : > { %p1127_p2 = pneg %p1126_p13 }
 0x35f   : > { %p1133_p3 = por %p1132_p6, %p1131_p4 }
 0x361   : > { %p1134_p1 = pnand %p1133_p3, %p1127_p2 }
 0x363   : > { %1137 = shalt.err (!%p1134_p1)
}
 0x364   : > { %807 = dma.vmem_to_hbm [thread:$0]  (%p1663_p10), %s1581_s13, 64, %s1578_s27, %s1550_s30  }
 0x365 PF: > { %s572_s10 = sand.u32 1, %s1184_s24   ;;  %p1664_p12 = scmp.ne.s32.totalorder %s1656_s9, 0 }
 0x366   : > { %p1665_p0 = scmp.ge.s32.totalorder %s1204_s29, 2  ;;  %s573_s20 = scalar_lea.sflag [#allocation4], %s572_s10 }
 0x368   : > { %p829_p5 = pnand %p1665_p0, %p1664_p12 }
 0x36a   : > { %1175 = dma.done.wait (!%p829_p5), %s573_s20, 64  }
 0x36b   : > { %1177 = vsyncadd (!%p829_p5), %s573_s20, 4294967232  ;;  %s1666_s18 = sadd.s32 4294967294, %s1204_s29  }
 0x36c   : > { %s581_s16 = sand.u32 1, %s1666_s18  }
 0x36d   : > { %s582_s12 = scalar_lea.sflag [#allocation13], %s581_s16 }
 0x36e   : > { %1179 = dma.done.wait (!%p829_p5), %s582_s12, 128  }
 0x36f   : > { %1181 = vsyncadd (!%p829_p5), %s582_s12, 4294967168  ;;  %s29_s29 = sadd.s32 1, %s1204_s29   ;;  %s1667_s24 = smov %s1188_s25 }
 0x370   : > { %p26_p10 = scmp.ge.s32.totalorder %s29_s29, 4   ;;  %s1668_s25 = smov %s1192_s26 }
 0x371   : > { %s1669_s26 = smov %s1427_s23  ;;  %s1670_s27 = smov %s1200_s28 }
 0x372   : > { %s1671_s28 = smov %s1673_s17  ;;  %28 = sbr.rel (!%p26_p10) target bundleno = 13 (0xd), region = 133 }
 0x379   :  { %596 = vsyncpa [#allocation3], 1 }
 0x37a   :  { %598 = vsyncpa [#allocation3 + $0x1], 1 }
 0x37b   :  { %599 = vsyncpa [#allocation6], 1 }
 0x37c   :  { %600 = vsyncpa [#allocation9], 1 }
 0x37d   :  { %601 = vsyncpa [#allocation4], 1 }
 0x37e   :  { %603 = vsyncpa [#allocation4 + $0x1], 1 }
 0x37f   :  { %604 = vsyncpa [#allocation13], 1 }
 0x380   :  { %606 = vsyncpa [#allocation13 + $0x1], 1 }

// kernel: _lambda_.3
= control target key start
LH: loop header
LB: loop body
LE: loop exit
PB: predicated region body
PF: predicated region fallthrough
CT: control target
= control target key end

     0   :  { %s3531_s0 = inlined_call_operand.hbm [shape: f32[2,8,32], index: 0, kind: input, shape index: {}]   ;;  %s3532_s1 = inlined_call_operand.hbm [shape: bf16[2,8,32], index: 1, kind: input, shape index: {}]   ;;  %s3533_s2 = inlined_call_operand.hbm [shape: bf16[2,8,32], index: 2, kind: input, shape index: {}]   ;;  %s3534_s3 = inlined_call_operand.hbm [shape: bf16[2,8,32], index: 3, kind: input, shape index: {}]   ;;  %s3535_s4 = inlined_call_operand.hbm [shape: f32[2,1,8], index: 4, kind: input, shape index: {}]   ;;  %s3536_s5 = inlined_call_operand.hbm [shape: bf16[32,32], index: 5, kind: input, shape index: {}]   ;;  %s3537_s6 = inlined_call_operand.hbm [shape: f32[1,32], index: 6, kind: input, shape index: {}]   ;;  %s3538_s7 = inlined_call_operand.hbm [shape: f32[1,32], index: 7, kind: input, shape index: {}]   ;;  %s3539_s8 = inlined_call_operand.hbm [shape: f32[1,32], index: 8, kind: input, shape index: {}]   ;;  %s3540_s9 = inlined_call_operand.hbm [shape: bf16[1,32,64], index: 9, kind: input, shape index: {}]   ;;  %s3541_s10 = inlined_call_operand.hbm [shape: f32[1,1,64], index: 10, kind: input, shape index: {}]   ;;  %s3542_s11 = inlined_call_operand.hbm [shape: bf16[1,64,32], index: 11, kind: input, shape index: {}]   ;;  %s3543_s12 = inlined_call_operand.hbm [shape: f32[1,32], index: 12, kind: input, shape index: {}]   ;;  %s3544_s13 = inlined_call_operand.hbm [shape: f32[2,8,32], index: 13, kind: output, shape index: {}]  }
   0x1   :  { %3568 = sst [smem:[#allocation42_spill]] %s3531_s0 }
   0x2   :  { %3569 = sst [smem:[#allocation43_spill]] %s3532_s1 }
   0x3   :  { %3570 = sst [smem:[#allocation44_spill]] %s3533_s2 }
   0x4   :  { %3571 = sst [smem:[#allocation45_spill]] %s3534_s3 }
   0x5   :  { %3572 = sst [smem:[#allocation46_spill]] %s3535_s4 }
   0x6   :  { %3573 = sst [smem:[#allocation47_spill]] %s3536_s5 }
   0x7   :  { %3574 = sst [smem:[#allocation48_spill]] %s3538_s7 }
   0x8   :  { %3575 = sst [smem:[#allocation49_spill]] %s3540_s9 }
   0x9   :  { %3576 = sst [smem:[#allocation50_spill]] %s3542_s11 }
   0xa   :  { %3577 = sst [smem:[#allocation51_spill]] %s3543_s12 }
   0xb   :  { %3578 = sst [smem:[#allocation52_spill]] %s3544_s13 }
   0xc   :  { %18 = vsyncpa [#allocation6], 0 }
   0xd   :  { %20 = vsyncpa [#allocation6 + $0x1], 0 }
   0xe   :  { %21 = vsyncpa [#allocation9], 0 }
   0xf   :  { %23 = vsyncpa [#allocation9 + $0x1], 0 }
  0x10   :  { %24 = vsyncpa [#allocation12], 0 }
  0x11   :  { %26 = vsyncpa [#allocation12 + $0x1], 0 }
  0x12   :  { %27 = vsyncpa [#allocation15], 0 }
  0x13   :  { %28 = vsyncpa [#allocation18], 0 }
  0x14   :  { %29 = vsyncpa [#allocation21], 0 }
  0x15   :  { %30 = vsyncpa [#allocation24], 0 }
  0x16   :  { %31 = vsyncpa [#allocation7], 0 }
  0x17   :  { %33 = vsyncpa [#allocation7 + $0x1], 0  ;;  %s2854_s25 = smov 0   ;;  %s2856_s26 = smov 0  }
  0x18   :  { %s2858_s27 = smov 0   ;;  %s2860_s28 = smov 0  }
  0x19   :  { %s2862_s29 = smov 0   ;;  %s2864_s30 = smov 0  }
  0x1a LB: > { %3579 = sst [smem:[#allocation35_spill]] %s2735_s25  ;;  %s2885_s14 = sadd.s32 4294967295, %s2755_s30   ;;  %s2755_s30 = sphi %s2864_s30, %s39_s30   ;;  %s2751_s29 = sphi %s2862_s29, %s3638_s29   ;;  %s2747_s28 = sphi %s2860_s28, %s3637_s28   ;;  %s2743_s27 = sphi %s2858_s27, %s3633_s27   ;;  %s2739_s26 = sphi %s2856_s26, %s3636_s26   ;;  %s2735_s25 = sphi %s2854_s25, %s3635_s25  }
  0x1b   : > { %3580 = sst [smem:[#allocation36_spill]] %s2743_s27  ;;  %p1891_p0 = scmp.ge.s32.totalorder %s2755_s30, 1 }
  0x1c   : > { %3581 = sst [smem:[#allocation37_spill]] %s2747_s28  ;;  %p3551_p1 = scmp.eq.s32.totalorder %s2885_s14, 0 }
  0x1d   : > { %p399_p2 = scmp.lt.s32.totalorder %s2755_s30, 3  ;;  %s2757_s16 = smov [#allocation14]  }
  0x1e   : > { %s411_s17 = sshll.u32 %s2757_s16, 4  ;;  %s2758_s19 = smov [#allocation17]   ;;  %s2894_s17 = int_to_ptr.vmem [resolvable:$true] %s411_s17 }
  0x1f   : > { %p2890_p3 = pnand %p1891_p0, %p399_p2  ;;  %s436_s20 = sshll.u32 %s2758_s19, 4  ;;  %s2905_s20 = int_to_ptr.vmem [resolvable:$true] %s436_s20 }
  0x20   : > { %s2759_s21 = smov [#allocation20]   ;;  %s3585_s5 = sld [smem:[#allocation47_spill]] }
  0x21   : > { %s3582_s15 = scalar_select %p2890_p3, 1, 0 }
  0x22   : > { %p2102_p4 = pneg %p2890_p3  ;;  %s2907_s22 = sshll.u32 %s2759_s21, 4  ;;  %s458_s22 = int_to_ptr.vmem [resolvable:$true] %s2907_s22 }
  0x23   : > { %3583 = sst [smem:[#allocation38_spill]] %s3582_s15 }
  0x24   : > { %p2901_p6 = pnand %p2102_p4, %p3551_p1 }
  0x26   : > { %s3584_s18 = scalar_select %p2901_p6, 1, 0 }
  0x27   : > { %s2275_s16 = scalar_lea.hbm %s3585_s5, 256  ;;  %p2917_p8 = pneg %p2901_p6 }
  0x28   : > { %p2276_p7 = scmp.ne.s32.totalorder %s3585_s5, %s2275_s16  ;;  %p2282_p11 = scmp.lt.u32.totalorder %s2275_s16, %s3585_s5 }
  0x29   : > { %s3586_s15 = scalar_select %p2917_p8, 1, 0 }
  0x2a   : > { %p2278_p9 = pnand %p2917_p8, %p2276_p7 }
  0x2c   : > { %p2279_p10 = pneg %p2278_p9 }
  0x2e   : > { %p2284_p12 = pnand %p2282_p11, %p2279_p10 }
  0x30   : > { %2287 = shalt.err (!%p2284_p12)
}
  0x31   : > { %s2288_s13 = scalar_lea.vmem %s2894_s17, 256  ;;  %p2296_p4 = scmp.lt.s32.totalorder %s2894_s17, %s2894_s17 }
  0x32   : > { %p2289_p13 = scmp.ne.s32.totalorder %s2894_s17, %s2288_s13  ;;  %p2297_p5 = scmp.lt.s32.totalorder %s2288_s13, %s2288_s13 }
  0x34   : > { %p2291_p0 = pnand %p2289_p13, %p2917_p8  ;;  %p2298_p7 = por %p2297_p5, %p2296_p4 }
  0x36   : > { %p2292_p2 = pneg %p2291_p0 }
  0x38   : > { %p2299_p9 = pnand %p2298_p7, %p2292_p2 }
  0x3a   : > { %2302 = shalt.err (!%p2299_p9)
}
  0x3b   : > { %s2760_s28 = smov 64   ;;  %s2761_s23 = smov 4  }
  0x3c   : > { %2105 = dma.hbm_to_vmem [thread:$0]  (!%p2901_p6), %s3585_s5, 256, %s2894_s17, [#allocation15], %s2760_s28, %s2760_s28, %s2761_s23  }
  0x3d   : > { %s3587_s7 = sld [smem:[#allocation48_spill]] }
  0x43   : > { %s2303_s13 = scalar_lea.hbm %s3587_s7, 16 }
  0x44   : > { %p2304_p5 = scmp.ne.s32.totalorder %s3587_s7, %s2303_s13  ;;  %p2310_p12 = scmp.lt.u32.totalorder %s2303_s13, %s3587_s7 }
  0x46   : > { %p2306_p10 = pnand %p2304_p5, %p2917_p8 }
  0x48   : > { %p2307_p11 = pneg %p2306_p10 }
  0x4a   : > { %p2312_p13 = pnand %p2310_p12, %p2307_p11 }
  0x4c   : > { %2315 = shalt.err (!%p2312_p13)
}
  0x4d   : > { %s2316_s17 = scalar_lea.vmem %s2905_s20, 16  ;;  %s2323_s2 = scalar_lea.vmem %s2905_s20, 32 }
  0x4e   : > { %p2317_p0 = scmp.ne.s32.totalorder %s2905_s20, %s2316_s17  ;;  %p2324_p7 = scmp.lt.s32.totalorder %s2905_s20, %s2905_s20 }
  0x4f   : > { %p2325_p9 = scmp.lt.s32.totalorder %s2323_s2, %s2316_s17 }
  0x50   : > { %p2319_p2 = pnand %p2317_p0, %p2917_p8 }
  0x51   : > { %p2326_p5 = por %p2325_p9, %p2324_p7 }
  0x52   : > { %p2320_p4 = pneg %p2319_p2 }
  0x54   : > { %p2327_p10 = pnand %p2326_p5, %p2320_p4 }
  0x56   : > { %2330 = shalt.err (!%p2327_p10)
}
  0x57   : > { %2111 = dma.hbm_to_vmem [thread:$0]  (!%p2901_p6), %s3587_s7, 16, %s2905_s20, [#allocation18]  }
  0x58   : > { %s3588_s9 = sld [smem:[#allocation49_spill]] }
  0x5e   : > { %s2331_s16 = scalar_lea.hbm %s3588_s9, 256 }
  0x5f   : > { %p2332_p11 = scmp.ne.s32.totalorder %s3588_s9, %s2331_s16  ;;  %p2338_p0 = scmp.lt.u32.totalorder %s2331_s16, %s3588_s9 }
  0x61   : > { %p2334_p12 = pnand %p2332_p11, %p2917_p8 }
  0x63   : > { %p2335_p13 = pneg %p2334_p12 }
  0x65   : > { %p2340_p2 = pnand %p2338_p0, %p2335_p13 }
  0x67   : > { %2343 = shalt.err (!%p2340_p2)
}
  0x68   : > { %s2344_s2 = scalar_lea.vmem %s458_s22, 256  ;;  %p2352_p5 = scmp.lt.s32.totalorder %s458_s22, %s458_s22 }
  0x69   : > { %p2345_p4 = scmp.ne.s32.totalorder %s458_s22, %s2344_s2  ;;  %p2353_p10 = scmp.lt.s32.totalorder %s2344_s2, %s2344_s2 }
  0x6b   : > { %p2347_p7 = pnand %p2345_p4, %p2917_p8  ;;  %p2354_p1 = por %p2353_p10, %p2352_p5 }
  0x6d   : > { %p2348_p9 = pneg %p2347_p7 }
  0x6f   : > { %p2355_p3 = pnand %p2354_p1, %p2348_p9 }
  0x71   : > { %2358 = shalt.err (!%p2355_p3)
}
  0x72   : > { %2117 = dma.hbm_to_vmem [thread:$0]  (!%p2901_p6), %s3588_s9, 256, %s458_s22, [#allocation21], %s2760_s28, %s2760_s28, %s2761_s23  }
  0x73   : > { %s2762_s4 = smov [#allocation23]   ;;  %s3589_s11 = sld [smem:[#allocation50_spill]] }
  0x74   : > { %s481_s12 = sshll.u32 %s2762_s4, 4  ;;  %s482_s12 = int_to_ptr.vmem [resolvable:$true] %s481_s12 }
  0x79   : > { %s2359_s19 = scalar_lea.hbm %s3589_s11, 512 }
  0x7a   : > { %p2360_p1 = scmp.ne.s32.totalorder %s3589_s11, %s2359_s19  ;;  %p2366_p12 = scmp.lt.u32.totalorder %s2359_s19, %s3589_s11 }
  0x7c   : > { %p2362_p3 = pnand %p2360_p1, %p2917_p8 }
  0x7e   : > { %p2363_p11 = pneg %p2362_p3 }
  0x80   : > { %p2368_p13 = pnand %p2366_p12, %p2363_p11 }
  0x82   : > { %2371 = shalt.err (!%p2368_p13)
}
  0x83   : > { %s2372_s22 = scalar_lea.vmem %s482_s12, 512  ;;  %p2380_p7 = scmp.lt.s32.totalorder %s482_s12, %s482_s12 }
  0x84   : > { %p2373_p0 = scmp.ne.s32.totalorder %s482_s12, %s2372_s22  ;;  %p2381_p9 = scmp.lt.s32.totalorder %s2372_s22, %s2372_s22 }
  0x86   : > { %p2375_p2 = pnand %p2373_p0, %p2917_p8  ;;  %p2382_p5 = por %p2381_p9, %p2380_p7 }
  0x88   : > { %p2376_p4 = pneg %p2375_p2 }
  0x8a   : > { %p2383_p10 = pnand %p2382_p5, %p2376_p4 }
  0x8c   : > { %2386 = shalt.err (!%p2383_p10)
}
  0x8d   : > { %2123 = dma.hbm_to_vmem [thread:$0]  (!%p2901_p6), %s3589_s11, 512, %s482_s12, [#allocation24], %s2760_s28, %s2760_s28, %s2761_s23  }
  0x8e   : > { %s1890_s4 = sadd.s32 4294967294, %s2755_s30   ;;  %s58_s24 = sadd.s32 1, %s2751_s29 }
  0x8f   : > { %p60_p1 = scmp.ge.s32.totalorder %s58_s24, 2  ;;  %s67_s16 = sadd.s32 1, %s2743_s27 }
  0x90   : > { %p74_p3 = scmp.ne.s32.totalorder %s2743_s27, %s2739_s26  ;;  %p75_p11 = scmp.eq.s32.totalorder %s2755_s30, 0 }
  0x91   : > { %s3640_s24 = smov (%p60_p1, %s58_s24), 0  ;;  %p80_p13 = scmp.ne.s32.totalorder %s2739_s26, %s2735_s25 }
  0x92   : > { %3590 = sst [smem:[#allocation39_spill]] %s3640_s24  ;;  %p3016_p12 = por %p75_p11, %p74_p3 }
  0x93   : > { %s62_s28 = ssub.s32 %s2751_s29, %s3640_s24  ;;  %p386_p0 = scmp.eq.s32.totalorder %s2885_s14, 1 }
  0x94   : > { %p65_p2 = scmp.eq.s32.totalorder %s62_s28, 0  ;;  %p3592_p4 = scmp.eq.s32.totalorder %s2885_s14, 0 }
  0x95   : > { %p3031_p9 = por %p386_p0, %p74_p3  ;;  %p392_p5 = scmp.eq.s32.totalorder %s1890_s4, 1 }
  0x96   : > { %p3027_p7 = por %p3592_p4, %p80_p13  ;;  %p2155_p1 = scmp.lt.s32.totalorder %s2755_s30, 2 }
  0x97   : > { %s3594_s12 = scalar_select %p3031_p9, 1, 0 }
  0x98   : > { %s3593_s23 = scalar_select %p3027_p7, 1, 0 }
  0x99   : > { %s3036_s21 = scalar_select %p65_p2, %s2743_s27, %s67_s16  }
  0x9a   : > { %p3038_p10 = por %p392_p5, %p80_p13  ;;  %s3044_s17 = sand.u32 1, %s2743_s27  }
  0x9b   : > { %3595 = sst [smem:[#allocation40_spill]] %s3036_s21  ;;  %p3049_p11 = pnand %p2155_p1, %p3016_p12 }
  0x9c   : > { %s3596_s13 = scalar_select %p3038_p10, 1, 0 }
  0x9d   : > { %s3598_s22 = scalar_select %p3049_p11, 1, 0 }
  0x9e   : > { %3597 = sst [smem:[#allocation41_spill]] %s3596_s13  ;;  %s3054_s20 = sshll.u32 %s3044_s17, 2 }
  0x9f   : > { %s3057_s0 = sshll.u32 %s2751_s29, 6  ;;  %s3599_s1 = sld [smem:[#allocation43_spill]] }
  0xa0   : > { %s529_s19 = scalar_lea.vmem [#allocation8], %s3054_s20  ;;  %s3600_s5 = sand.u32 1, %s2755_s30  }
  0xa1   : > { %s537_s2 = sshll.u32 %s529_s19, 4  ;;  %s3070_s7 = scalar_lea.sflag [#allocation9], %s3600_s5  ;;  %s3066_s2 = int_to_ptr.vmem [resolvable:$true] %s537_s2 }
  0xa2   : > { %p3076_p12 = pneg %p3049_p11 }
  0xa4   : > { %s3601_s11 = scalar_select %p3076_p12, 1, 0 }
  0xa5   : > { %s3063_s28 = scalar_lea.hbm %s3599_s1, %s3057_s0  ;;  %s2392_s19 = scalar_lea.hbm %s3599_s1, 128 }
  0xa6   : > { %s2387_s9 = scalar_lea.hbm %s3063_s28, 64  ;;  %p2393_p2 = scmp.lt.u32.totalorder %s3063_s28, %s3599_s1 }
  0xa7   : > { %p2388_p3 = scmp.ne.s32.totalorder %s3063_s28, %s2387_s9  ;;  %p2394_p4 = scmp.lt.u32.totalorder %s2392_s19, %s2387_s9 }
  0xa8   : > { %p2396_p1 = scmp.lt.u32.totalorder %s2387_s9, %s3063_s28 }
  0xa9   : > { %p2390_p13 = pnand %p3076_p12, %p2388_p3  ;;  %p2395_p5 = por %p2394_p4, %p2393_p2 }
  0xab   : > { %p2391_p0 = pneg %p2390_p13  ;;  %p2397_p10 = por %p2396_p1, %p2395_p5 }
  0xad   : > { %p2398_p9 = pnand %p2397_p10, %p2391_p0 }
  0xaf   : > { %2401 = shalt.err (!%p2398_p9)
}
  0xb0   : > { %s2402_s5 = scalar_lea.vmem %s3066_s2, 64  ;;  %s2763_s4 = smov [#allocation8]  }
  0xb1   : > { %p2403_p3 = scmp.ne.s32.totalorder %s3066_s2, %s2402_s5  ;;  %s2407_s16 = sshll.u32 %s2763_s4, 4  ;;  %s2408_s16 = int_to_ptr.vmem [resolvable:$false] %s2407_s16 }
  0xb2   : > { %s2409_s24 = scalar_lea.vmem %s2408_s16, 128  ;;  %p2410_p6 = scmp.lt.s32.totalorder %s3066_s2, %s2408_s16 }
  0xb3   : > { %p2405_p13 = pnand %p2403_p3, %p3076_p12  ;;  %p2411_p8 = scmp.lt.s32.totalorder %s2409_s24, %s2402_s5 }
  0xb5   : > { %p2406_p7 = pneg %p2405_p13  ;;  %p2412_p2 = por %p2411_p8, %p2410_p6 }
  0xb7   : > { %p2413_p4 = pnand %p2412_p2, %p2406_p7 }
  0xb9   : > { %2416 = shalt.err (!%p2413_p4)
}
  0xba   : > { %2133 = dma.hbm_to_vmem [thread:$0]  (!%p3049_p11), %s3063_s28, 64, %s3066_s2, %s3070_s7  }
  0xbb   : > { %s3602_s3 = sld [smem:[#allocation45_spill]]  ;;  %s567_s5 = scalar_lea.vmem [#allocation11], %s3054_s20 }
  0xbc   : > { %s575_s4 = sshll.u32 %s567_s5, 4  ;;  %s2764_s16 = smov [#allocation16]   ;;  %s3107_s4 = int_to_ptr.vmem [resolvable:$true] %s575_s4 }
  0xbd   : > { %s3109_s24 = sshll.u32 %s2764_s16, 4  ;;  %s3603_s1 = sand.u32 1, %s2755_s30   ;;  %s426_s24 = int_to_ptr.vmem [resolvable:$true] %s3109_s24 }
  0xbe   : > { %s3113_s27 = scalar_lea.sflag [#allocation12], %s3603_s1 }
  0xc1   : > { %s3104_s19 = scalar_lea.hbm %s3602_s3, %s3057_s0  ;;  %s2422_s21 = scalar_lea.hbm %s3602_s3, 128 }
  0xc2   : > { %s2417_s2 = scalar_lea.hbm %s3104_s19, 64  ;;  %p2423_p9 = scmp.lt.u32.totalorder %s3104_s19, %s3602_s3 }
  0xc3   : > { %p2418_p6 = scmp.ne.s32.totalorder %s3104_s19, %s2417_s2  ;;  %p2424_p10 = scmp.lt.u32.totalorder %s2422_s21, %s2417_s2 }
  0xc4   : > { %p2426_p5 = scmp.lt.u32.totalorder %s2417_s2, %s3104_s19 }
  0xc5   : > { %p2420_p8 = pnand %p2418_p6, %p3076_p12  ;;  %p2425_p0 = por %p2424_p10, %p2423_p9 }
  0xc7   : > { %p2421_p7 = pneg %p2420_p8  ;;  %p2427_p1 = por %p2426_p5, %p2425_p0 }
  0xc9   : > { %p2428_p3 = pnand %p2427_p1, %p2421_p7 }
  0xcb   : > { %2431 = shalt.err (!%p2428_p3)
}
  0xcc   : > { %s2432_s1 = scalar_lea.vmem %s3107_s4, 64  ;;  %s2765_s5 = smov [#allocation11]  }
  0xcd   : > { %p2433_p13 = scmp.ne.s32.totalorder %s3107_s4, %s2432_s1  ;;  %s2437_s16 = sshll.u32 %s2765_s5, 4  ;;  %s2438_s16 = int_to_ptr.vmem [resolvable:$false] %s2437_s16 }
  0xce   : > { %s2439_s25 = scalar_lea.vmem %s2438_s16, 128  ;;  %p2440_p6 = scmp.lt.s32.totalorder %s3107_s4, %s2438_s16 }
  0xcf   : > { %p2435_p2 = pnand %p2433_p13, %p3076_p12  ;;  %p2441_p8 = scmp.lt.s32.totalorder %s2439_s25, %s2432_s1 }
  0xd1   : > { %p2436_p4 = pneg %p2435_p2  ;;  %p2442_p9 = por %p2441_p8, %p2440_p6 }
  0xd3   : > { %p2443_p10 = pnand %p2442_p9, %p2436_p4 }
  0xd5   : > { %2446 = shalt.err (!%p2443_p10)
}
  0xd6   : > { %2139 = dma.hbm_to_vmem [thread:$0]  (!%p3049_p11), %s3104_s19, 64, %s3107_s4, %s3113_s27  }
  0xd7   : > { %s2447_s28 = scalar_lea.hbm %s3537_s6, 16  ;;  %p3604_p0 = scmp.ne.s32.totalorder %s3586_s15, 0 }
  0xd8   : > { %p2448_p7 = scmp.ne.s32.totalorder %s3537_s6, %s2447_s28  ;;  %p2454_p3 = scmp.lt.u32.totalorder %s2447_s28, %s3537_s6 }
  0xda   : > { %p2450_p5 = pnand %p2448_p7, %p3604_p0 }
  0xdc   : > { %p2451_p1 = pneg %p2450_p5 }
  0xde   : > { %p2456_p13 = pnand %p2454_p3, %p2451_p1 }
  0xe0   : > { %2459 = shalt.err (!%p2456_p13)
}
  0xe1   : > { %s2460_s16 = scalar_lea.vmem %s426_s24, 16  ;;  %s2467_s19 = scalar_lea.vmem %s426_s24, 32 }
  0xe2   : > { %p2461_p2 = scmp.ne.s32.totalorder %s426_s24, %s2460_s16  ;;  %p2468_p8 = scmp.lt.s32.totalorder %s426_s24, %s426_s24 }
  0xe3   : > { %p2469_p9 = scmp.lt.s32.totalorder %s2467_s19, %s2460_s16 }
  0xe4   : > { %p2463_p4 = pnand %p2461_p2, %p3604_p0 }
  0xe5   : > { %p2470_p10 = por %p2469_p9, %p2468_p8 }
  0xe6   : > { %p2464_p6 = pneg %p2463_p4 }
  0xe8   : > { %p2471_p11 = pnand %p2470_p10, %p2464_p6 }
  0xea   : > { %2474 = shalt.err (!%p2471_p11)
}
  0xeb   : > { %p3605_p7 = scmp.ne.s32.totalorder %s3584_s18, 0  ;;  %s2766_s13 = smov [#allocation19]  }
  0xec   : > { %s447_s2 = sshll.u32 %s2766_s13, 4  ;;  %s2767_s28 = smov [#allocation22]   ;;  %s448_s2 = int_to_ptr.vmem [resolvable:$true] %s447_s2 }
  0xed   : > { %2108 = dma.hbm_to_vmem [thread:$0]  (!%p3605_p7), %s3537_s6, 16, %s426_s24, [#allocation15]  }
  0xee   : > { %s471_s9 = sshll.u32 %s2767_s28, 4  ;;  %s2475_s5 = scalar_lea.hbm %s3539_s8, 16  ;;  %s472_s9 = int_to_ptr.vmem [resolvable:$true] %s471_s9 }
  0xef   : > { %p2476_p11 = scmp.ne.s32.totalorder %s3539_s8, %s2475_s5  ;;  %p2482_p3 = scmp.lt.u32.totalorder %s2475_s5, %s3539_s8 }
  0xf1   : > { %p2478_p5 = pnand %p2476_p11, %p3604_p0 }
  0xf3   : > { %p2479_p1 = pneg %p2478_p5 }
  0xf5   : > { %p2484_p13 = pnand %p2482_p3, %p2479_p1 }
  0xf7   : > { %2487 = shalt.err (!%p2484_p13)
}
  0xf8   : > { %s2488_s24 = scalar_lea.vmem %s448_s2, 16  ;;  %s2495_s25 = scalar_lea.vmem %s448_s2, 32 }
  0xf9   : > { %p2489_p2 = scmp.ne.s32.totalorder %s448_s2, %s2488_s24  ;;  %p2496_p8 = scmp.lt.s32.totalorder %s448_s2, %s448_s2 }
  0xfa   : > { %p2497_p9 = scmp.lt.s32.totalorder %s2495_s25, %s2488_s24 }
  0xfb   : > { %p2491_p4 = pnand %p2489_p2, %p3604_p0 }
  0xfc   : > { %p2498_p10 = por %p2497_p9, %p2496_p8 }
  0xfd   : > { %p2492_p6 = pneg %p2491_p4 }
  0xff   : > { %p2499_p12 = pnand %p2498_p10, %p2492_p6 }
 0x101   : > { %2502 = shalt.err (!%p2499_p12)
}
 0x102   : > { %2114 = dma.hbm_to_vmem [thread:$0]  (!%p3605_p7), %s3539_s8, 16, %s448_s2, [#allocation18]  }
 0x103   : > { %s2503_s1 = scalar_lea.hbm %s3541_s10, 16 }
 0x104   : > { %p2504_p11 = scmp.ne.s32.totalorder %s3541_s10, %s2503_s1  ;;  %p2510_p12 = scmp.lt.u32.totalorder %s2503_s1, %s3541_s10 }
 0x106   : > { %p2506_p5 = pnand %p2504_p11, %p3604_p0 }
 0x108   : > { %p2507_p1 = pneg %p2506_p5 }
 0x10a   : > { %p2512_p3 = pnand %p2510_p12, %p2507_p1 }
 0x10c   : > { %2515 = shalt.err (!%p2512_p3)
}
 0x10d   : > { %s2516_s24 = scalar_lea.vmem %s472_s9, 16  ;;  %s2523_s2 = scalar_lea.vmem %s472_s9, 32 }
 0x10e   : > { %p2517_p13 = scmp.ne.s32.totalorder %s472_s9, %s2516_s24  ;;  %p2524_p6 = scmp.lt.s32.totalorder %s472_s9, %s472_s9 }
 0x10f   : > { %p2525_p8 = scmp.lt.s32.totalorder %s2523_s2, %s2516_s24 }
 0x110   : > { %p2519_p2 = pnand %p2517_p13, %p3604_p0 }
 0x111   : > { %p2526_p9 = por %p2525_p8, %p2524_p6 }
 0x112   : > { %p2520_p4 = pneg %p2519_p2 }
 0x114   : > { %p2527_p10 = pnand %p2526_p9, %p2520_p4 }
 0x116   : > { %2530 = shalt.err (!%p2527_p10)
}
 0x117   : > { %2120 = dma.hbm_to_vmem [thread:$0]  (!%p3605_p7), %s3541_s10, 16, %s472_s9, [#allocation21]  }
 0x118   : > { %s2768_s28 = smov [#allocation25]   ;;  %s1901_s21 = sshll.u32 %s3044_s17, 3 }
 0x119   : > { %s495_s3 = sshll.u32 %s2768_s28, 4  ;;  %s3606_s16 = sld [smem:[#allocation51_spill]]  ;;  %s496_s3 = int_to_ptr.vmem [resolvable:$true] %s495_s3 }
 0x11f   : > { %s2531_s19 = scalar_lea.hbm %s3606_s16, 16 }
 0x120   : > { %p2532_p11 = scmp.ne.s32.totalorder %s3606_s16, %s2531_s19  ;;  %p2538_p12 = scmp.lt.u32.totalorder %s2531_s19, %s3606_s16 }
 0x122   : > { %p2534_p5 = pnand %p2532_p11, %p3604_p0 }
 0x124   : > { %p2535_p1 = pneg %p2534_p5 }
 0x126   : > { %p2540_p3 = pnand %p2538_p12, %p2535_p1 }
 0x128   : > { %2543 = shalt.err (!%p2540_p3)
}
 0x129   : > { %s2544_s9 = scalar_lea.vmem %s496_s3, 16  ;;  %s2551_s13 = scalar_lea.vmem %s496_s3, 32 }
 0x12a   : > { %p2545_p13 = scmp.ne.s32.totalorder %s496_s3, %s2544_s9  ;;  %p2552_p6 = scmp.lt.s32.totalorder %s496_s3, %s496_s3 }
 0x12b   : > { %p2553_p8 = scmp.lt.s32.totalorder %s2551_s13, %s2544_s9 }
 0x12c   : > { %p2547_p2 = pnand %p2545_p13, %p3604_p0 }
 0x12d   : > { %p2554_p9 = por %p2553_p8, %p2552_p6 }
 0x12e   : > { %p2548_p4 = pneg %p2547_p2 }
 0x130   : > { %p2555_p10 = pnand %p2554_p9, %p2548_p4 }
 0x132   : > { %2558 = shalt.err (!%p2555_p10)
}
 0x133   : > { %2126 = dma.hbm_to_vmem [thread:$0]  (!%p3605_p7), %s3606_s16, 16, %s496_s3, [#allocation24]  }
 0x134   : > { %s1902_s5 = sshll.u32 %s2751_s29, 7  ;;  %s3607_s4 = sld [smem:[#allocation42_spill]] }
 0x135   : > { %s510_s2 = scalar_lea.vmem [#allocation5], %s1901_s21  ;;  %s507_s18 = scalar_lea.sflag [#allocation6], %s3044_s17 }
 0x136   : > { %s518_s25 = sshll.u32 %s510_s2, 4  ;;  %p3608_p11 = scmp.ne.s32.totalorder %s3601_s11, 0  ;;  %s519_s25 = int_to_ptr.vmem [resolvable:$true] %s518_s25 }
 0x13a   : > { %s3215_s24 = scalar_lea.hbm %s3607_s4, %s1902_s5  ;;  %s2564_s28 = scalar_lea.hbm %s3607_s4, 256 }
 0x13b   : > { %s2559_s9 = scalar_lea.hbm %s3215_s24, 128  ;;  %p2565_p7 = scmp.lt.u32.totalorder %s3215_s24, %s3607_s4 }
 0x13c   : > { %p2560_p0 = scmp.ne.s32.totalorder %s3215_s24, %s2559_s9  ;;  %p2566_p12 = scmp.lt.u32.totalorder %s2564_s28, %s2559_s9 }
 0x13d   : > { %p2568_p13 = scmp.lt.u32.totalorder %s2559_s9, %s3215_s24 }
 0x13e   : > { %p2562_p5 = pnand %p2560_p0, %p3608_p11  ;;  %p2567_p3 = por %p2566_p12, %p2565_p7 }
 0x140   : > { %p2563_p1 = pneg %p2562_p5  ;;  %p2569_p2 = por %p2568_p13, %p2567_p3 }
 0x142   : > { %p2570_p4 = pnand %p2569_p2, %p2563_p1 }
 0x144   : > { %2573 = shalt.err (!%p2570_p4)
}
 0x145   : > { %s2574_s21 = scalar_lea.vmem %s519_s25, 128  ;;  %s2769_s19 = smov [#allocation5]  }
 0x146   : > { %p2575_p6 = scmp.ne.s32.totalorder %s519_s25, %s2574_s21  ;;  %s2579_s15 = sshll.u32 %s2769_s19, 4  ;;  %s2580_s15 = int_to_ptr.vmem [resolvable:$false] %s2579_s15 }
 0x147   : > { %s2581_s2 = scalar_lea.vmem %s2580_s15, 256  ;;  %p2582_p10 = scmp.lt.s32.totalorder %s519_s25, %s2580_s15 }
 0x148   : > { %p2577_p8 = pnand %p2575_p6, %p3608_p11  ;;  %p2583_p0 = scmp.lt.s32.totalorder %s2581_s2, %s2574_s21 }
 0x14a   : > { %p2578_p9 = pneg %p2577_p8  ;;  %p2584_p5 = por %p2583_p0, %p2582_p10 }
 0x14c   : > { %p2585_p7 = pnand %p2584_p5, %p2578_p9 }
 0x14e   : > { %2588 = shalt.err (!%p2585_p7)
}
 0x14f   : > { %p3609_p12 = scmp.ne.s32.totalorder %s3598_s22, 0  ;;  %s3610_s13 = sld [smem:[#allocation44_spill]] }
 0x150   : > { %s548_s1 = scalar_lea.vmem [#allocation10], %s3054_s20 }
 0x151   : > { %2130 = dma.hbm_to_vmem [thread:$0]  (!%p3609_p12), %s3215_s24, 128, %s519_s25, %s507_s18  }
 0x152   : > { %s556_s5 = sshll.u32 %s548_s1, 4  ;;  %s557_s5 = int_to_ptr.vmem [resolvable:$true] %s556_s5 }
 0x155   : > { %s3239_s28 = scalar_lea.hbm %s3610_s13, %s3057_s0  ;;  %s2594_s24 = scalar_lea.hbm %s3610_s13, 128 }
 0x156   : > { %s2589_s21 = scalar_lea.hbm %s3239_s28, 64  ;;  %p2595_p2 = scmp.lt.u32.totalorder %s3239_s28, %s3610_s13 }
 0x157   : > { %p2590_p1 = scmp.ne.s32.totalorder %s3239_s28, %s2589_s21  ;;  %p2596_p4 = scmp.lt.u32.totalorder %s2594_s24, %s2589_s21 }
 0x158   : > { %p2598_p8 = scmp.lt.u32.totalorder %s2589_s21, %s3239_s28 }
 0x159   : > { %p2592_p3 = pnand %p2590_p1, %p3608_p11  ;;  %p2597_p6 = por %p2596_p4, %p2595_p2 }
 0x15b   : > { %p2593_p13 = pneg %p2592_p3  ;;  %p2599_p9 = por %p2598_p8, %p2597_p6 }
 0x15d   : > { %p2600_p10 = pnand %p2599_p9, %p2593_p13 }
 0x15f   : > { %2603 = shalt.err (!%p2600_p10)
}
 0x160   : > { %s2604_s20 = scalar_lea.vmem %s557_s5, 64  ;;  %s2770_s0 = smov [#allocation10]  }
 0x161   : > { %p2605_p0 = scmp.ne.s32.totalorder %s557_s5, %s2604_s20  ;;  %s2609_s2 = sshll.u32 %s2770_s0, 4  ;;  %s2610_s2 = int_to_ptr.vmem [resolvable:$false] %s2609_s2 }
 0x162   : > { %s2611_s9 = scalar_lea.vmem %s2610_s2, 128  ;;  %p2612_p1 = scmp.lt.s32.totalorder %s557_s5, %s2610_s2 }
 0x163   : > { %p2607_p5 = pnand %p2605_p0, %p3608_p11  ;;  %p2613_p3 = scmp.lt.s32.totalorder %s2611_s9, %s2604_s20 }
 0x165   : > { %p2608_p7 = pneg %p2607_p5  ;;  %p2614_p12 = por %p2613_p3, %p2612_p1 }
 0x167   : > { %p2615_p2 = pnand %p2614_p12, %p2608_p7 }
 0x169   : > { %2618 = shalt.err (!%p2615_p2)
}
 0x16a   : > { %p3611_p4 = scmp.ne.s32.totalorder %s3598_s22, 0  ;;  %s1909_s3 = sshll.u32 %s2751_s29, 4 }
 0x16b   : > { %s585_s1 = scalar_lea.vmem [#allocation13], %s3044_s17  ;;  %s3612_s24 = sld [smem:[#allocation46_spill]] }
 0x16c   : > { %2136 = dma.hbm_to_vmem [thread:$0]  (!%p3611_p4), %s3239_s28, 64, %s557_s5, %s3070_s7  }
 0x16d   : > { %s593_s21 = sshll.u32 %s585_s1, 4  ;;  %s594_s21 = int_to_ptr.vmem [resolvable:$true] %s593_s21 }
 0x171   : > { %s591_s25 = scalar_lea.hbm %s3612_s24, %s1909_s3  ;;  %s2624_s2 = scalar_lea.hbm %s3612_s24, 32 }
 0x172   : > { %s2619_s18 = scalar_lea.hbm %s591_s25, 16  ;;  %p2625_p8 = scmp.lt.u32.totalorder %s591_s25, %s3612_s24 }
 0x173   : > { %p2620_p13 = scmp.ne.s32.totalorder %s591_s25, %s2619_s18  ;;  %p2626_p9 = scmp.lt.u32.totalorder %s2624_s2, %s2619_s18 }
 0x174   : > { %p2628_p0 = scmp.lt.u32.totalorder %s2619_s18, %s591_s25 }
 0x175   : > { %p2622_p12 = pnand %p2620_p13, %p3608_p11  ;;  %p2627_p10 = por %p2626_p9, %p2625_p8 }
 0x177   : > { %p2623_p6 = pneg %p2622_p12  ;;  %p2629_p5 = por %p2628_p0, %p2627_p10 }
 0x179   : > { %p2630_p7 = pnand %p2629_p5, %p2623_p6 }
 0x17b   : > { %2633 = shalt.err (!%p2630_p7)
}
 0x17c   : > { %s2634_s7 = scalar_lea.vmem %s594_s21, 16  ;;  %s2771_s17 = smov [#allocation13]  }
 0x17d   : > { %p2635_p1 = scmp.ne.s32.totalorder %s594_s21, %s2634_s7  ;;  %s2639_s28 = sshll.u32 %s2771_s17, 4  ;;  %s2640_s28 = int_to_ptr.vmem [resolvable:$false] %s2639_s28 }
 0x17e   : > { %s2641_s5 = scalar_lea.vmem %s2640_s28, 32  ;;  %p2642_p13 = scmp.lt.s32.totalorder %s594_s21, %s2640_s28 }
 0x17f   : > { %p2637_p3 = pnand %p2635_p1, %p3608_p11  ;;  %p2643_p12 = scmp.lt.s32.totalorder %s2641_s5, %s2634_s7 }
 0x181   : > { %p2638_p2 = pneg %p2637_p3  ;;  %p2644_p4 = por %p2643_p12, %p2642_p13 }
 0x183   : > { %p2645_p8 = pnand %p2644_p4, %p2638_p2 }
 0x185   : > { %2648 = shalt.err (!%p2645_p8)
}
 0x186   : > { %p3613_p9 = scmp.ne.s32.totalorder %s3598_s22, 0  ;;  %s3614_s4 = sld [smem:[#allocation38_spill]] }
 0x188   : > { %2142 = dma.hbm_to_vmem [thread:$0]  (!%p3613_p9), %s591_s25, 16, %s594_s21, %s3113_s27  }
 0x18c   : > { %p3615_p6 = scmp.ne.s32.totalorder %s3614_s4, 0 }
 0x18d   : > { %s3281_s11 = sand.u32 (!%p3615_p6), 1, %s2739_s26   ;;  %p3616_p11 = scmp.ne.s32.totalorder (!%p3615_p6), %s3593_s23, 0 }
 0x18e   : > { %602 = sbr.rel (%p3615_p6) target bundleno = 2449 (0x991), region = 72  ;;  %s1911_s3 = sshll.u32 (!%p3615_p6), %s3281_s11, 3 }
 0x18f   : > { %s605_s1 = scalar_lea.sflag (!%p3615_p6), [#allocation6], %s3281_s11  ;;  %s3287_s19 = scalar_lea.vmem (!%p3615_p6), [#allocation5], %s1911_s3 }
 0x195   : > { %2702 = dma.done.wait (%p3616_p11), %s605_s1, 128  }
 0x196   : > { %2704 = vsyncadd (%p3616_p11), %s605_s1, 4294967168  ;;  %s613_s27 = sand.u32 1, %s2885_s14   ;;  %s3295_s22 = sshll.u32 %s3281_s11, 2 }
 0x197   : > { %s614_s21 = scalar_lea.sflag [#allocation9], %s613_s27  ;;  %s617_s15 = scalar_lea.vmem [#allocation8], %s3295_s22 }
 0x198   : > { %2706 = dma.done.wait (%p3616_p11), %s614_s21, 128  }
 0x199   : > { %2708 = vsyncadd (%p3616_p11), %s614_s21, 4294967168  ;;  %s626_s25 = scalar_lea.vmem [#allocation10], %s3295_s22  ;;  %s632_s18 = scalar_lea.sflag [#allocation12], %s613_s27 }
 0x19a   : > { %s635_s20 = scalar_lea.vmem [#allocation11], %s3295_s22 }
 0x19b   : > { %2710 = dma.done.wait (%p3616_p11), %s632_s18, 80  }
 0x19c   : > { %2712 = vsyncadd (%p3616_p11), %s632_s18, 4294967216  ;;  %s643_s0 = scalar_lea.vmem [#allocation13], %s3281_s11  ;;  %p3617_p4 = scmp.eq.s32.totalorder %s2885_s14, 0 }
 0x19e   : > { %2714 = dma.done.wait (%p3617_p4), [#allocation15], 272   ;;  %p3618_p10 = pmov %p3617_p4 }
 0x19f   : > { %p3619_p0 = pmov %p3617_p4 }
 0x1a0   : > { %2716 = vsyncadd (%p3618_p10), [#allocation15], 4294967024 }
 0x1a1   : > { %2718 = dma.done.wait (%p3619_p0), [#allocation18], 32   ;;  %p3620_p5 = pmov %p3619_p0 }
 0x1a2   : > { %p3621_p7 = pmov %p3619_p0 }
 0x1a3   : > { %2720 = vsyncadd (%p3620_p5), [#allocation18], 4294967264 }
 0x1a4   : > { %2722 = dma.done.wait (%p3621_p7), [#allocation21], 272   ;;  %p3622_p1 = pmov %p3619_p0 }
 0x1a5   : > { %p3623_p3 = pmov %p3619_p0 }
 0x1a6   : > { %2724 = vsyncadd (%p3622_p1), [#allocation21], 4294967024 }
 0x1a7   : > { %2726 = dma.done.wait (%p3623_p3), [#allocation24], 528   ;;  %p3624_p2 = pmov %p3619_p0 }
 0x1a8   : > { %v2772_v0 = vmov 0.0   ;;  %vm2773_vm0 = vmmov 0   ;;  %vm765_vm1 = vcmask 64512   ;;  %v757_v1 = vld [vmem:[%s626_s25] sm:$0xf]  ;;  %s2774_s14 = smov 120   ;;  %v760_v15 = vlaneseq }
 0x1a9   : > { %2728 = vsyncadd (%p3624_p2), [#allocation24], 4294966768  ;;  %1982 = vmatprep.subr.bf16.mxu0 %v2772_v0  ;;  %1984 = vmatprep.mubr.msk.bf16.mxu0 %vm2773_vm0, %v2772_v0  ;;  %v756_v2 = vld [vmem:[%s617_s15] sm:$0xf]  ;;  %v770_v3 = vsel %vm765_vm1, %v757_v1, 0  ;;  %v1927_v4 = vcombine.low %v757_v1, %v757_v1  ;;  %s2775_s23 = smov 112  }
 0x1aa   : > { %1994 = vmatprep.subr.bf16.mxu1 %v2772_v0  ;;  %1996 = vmatprep.mubr.msk.bf16.mxu1 %vm2773_vm0, %v2772_v0  ;;  %v1926_v5 = vcombine.low %v756_v2, %v756_v2  ;;  %s2776_s2 = smov 104   ;;  %v753_v16 = vld [vmem:[%s643_s0] sm:$0x1]  ;;  %v761_v17 = vshrl.u32 %v760_v15, 7  ;;  %v2777_v19 = vmov -1e+09  }
 0x1ab   : > { %1983 = vmatpush3.bf16.xpose.msra.mxu0 %v770_v3  ;;  %902 = vrot.lane.b32.xlu0 %v1927_v4, %s2774_s14  ;;  %vm754_vm2 = vcmp.gt.f32.partialorder %v753_v16, 0.0  ;;  %vm742_vm3 = vcmask 7168   ;;  %v2778_v28 = vmov -1e+30   ;;  %v2779_v29 = vmov 0   ;;  %s2780_s9 = smov 8  }
 0x1ac   : > { %1044 = vrot.lane.b32.xlu1 %v1927_v4, %s2775_s23  ;;  %1988 = vmatprep.subr.bf16.mxu0 %v2772_v0  ;;  %v762_v18 = vsub.s32 0, %v761_v17  ;;  %v755_v20 = vsel %vm754_vm2, 0.0, %v2777_v19  ;;  %743 = vst.msk [vmem:[#allocation2] sm:$0xff] %vm742_vm3, %v2778_v28  ;;  %744 = vst.msk [vmem:[#allocation2 + $0x8] sm:$0xff] %vm742_vm3, %v2778_v28  ;;  %v758_v52 = vld [vmem:[%s635_s20] sm:$0xf] }
 0x1ad   : > { %745 = vst.msk [vmem:[#allocation2 + $0x10] sm:$0xff] %vm742_vm3, %v2778_v28  ;;  %746 = vst.msk [vmem:[#allocation2 + $0x18] sm:$0xff] %vm742_vm3, %v2778_v28  ;;  %2234 = vset.pattern.permute.xlu1 %v2779_v29  ;;  %2235 = vset.pattern.permute.xlu0 %v2779_v29  ;;  %vm847_vm4 = vcmask 1043456   ;;  %v1929_v62 = vcombine.low %v758_v52, %v758_v52  ;;  %vm751_vm5 = vcmask 261120   ;;  %s2781_s7 = smov 16   ;;  %s2782_s17 = smov 24  }
 0x1ae   : > { %v763_v21 = vrot.slane %v755_v20, %v762_v18  ;;  %747 = vst.msk [vmem:[#allocation3] sm:$0xff] %vm742_vm3, %v2772_v0  ;;  %748 = vst.msk [vmem:[#allocation3 + $0x8] sm:$0xff] %vm742_vm3, %v2772_v0  ;;  %v849_v53 = vsel %vm847_vm4, %v758_v52, 0  ;;  %vm1039_vm6 = vcmask 130112   ;;  %vm1178_vm7 = vcmask 195712   ;;  %s3625_s28 = sld [smem:[#allocation37_spill]] }
 0x1af   : > { %897 = vrot.lane.b32.xlu0 %v1926_v5, %s2774_s14  ;;  %749 = vst.msk [vmem:[#allocation3 + $0x10] sm:$0xff] %vm742_vm3, %v2772_v0  ;;  %750 = vst.msk [vmem:[#allocation3 + $0x18] sm:$0xff] %vm742_vm3, %v2772_v0  ;;  %vm1317_vm8 = vcmask 261312   ;;  %vm1574_vm11 = vcmask 523264   ;;  %s736_s4 = scalar_lea.vmem [#allocation26], %s1911_s3  ;;  %s3626_s22 = sld [smem:[#allocation52_spill]] }
 0x1b0   : > { %1042 = vrot.lane.b32.xlu1 %v1926_v5, %s2775_s23  ;;  %752 = vst.msk [vmem:[#allocation4] sm:$0xff] %vm751_vm5, %v2772_v0  ;;  %s1643_s1 = sshll.u32 %s736_s4, 4  ;;  %s1629_s15 = scalar_lea.sflag [#allocation7], %s3281_s11  ;;  %s3483_s1 = int_to_ptr.vmem [resolvable:$true] %s1643_s1 }
 0x1b1   : > { %s2649_s3 = scalar_lea.vmem %s3483_s1, 128  ;;  %p3627_p12 = scmp.ne.s32.totalorder %s3594_s12, 0 }
 0x1b2   : > { %1985 = vmatmul.mubr.msk.bf16.vlgmr.msra.gmra.mrb[0].mxu0 %vm765_vm1, %v756_v2  ;;  %p2650_p13 = scmp.ne.s32.totalorder %s3483_s1, %s2649_s3  ;;  %s2783_s25 = smov [#allocation26]  }
 0x1b3   : > { %1990 = vmatprep.mubr.msk.bf16.mxu0 %vm2773_vm0, %v2772_v0  ;;  %1183 = vrot.lane.b32.xlu0 %v1927_v4, %s2776_s2  ;;  %v3384_v48 = vld [vmem:[#allocation2] sm:$0xff]  ;;  %v3398_v54 = vld [vmem:[#allocation2 + $0x8] sm:$0xff]  ;;  %s2653_s18 = sshll.u32 %s2783_s25, 4  ;;  %s2654_s18 = int_to_ptr.vmem [resolvable:$false] %s2653_s18 }
 0x1b4   : > { %1181 = vrot.lane.b32.xlu1 %v1926_v5, %s2776_s2  ;;  %1989 = vmatpush3.bf16.msra.mxu0 %v849_v53  ;;  %v3408_v58 = vld [vmem:[#allocation2 + $0x10] sm:$0xff]  ;;  %v1232_v2 = vld [vmem:[#allocation2 + $0x18] sm:$0xff]  ;;  %s1952_s5 = sshll.u32 %s3625_s28, 7  ;;  %p2651_p8 = pnand %p2650_p13, %p3627_p12 }
 0x1b5   : > { %2000 = vmatprep.subr.bf16.mxu0 %v2772_v0  ;;  %v968_v52 = vld [vmem:[#allocation3 + $0x8] sm:$0xff]  ;;  %s3481_s21 = scalar_lea.hbm %s3626_s22, %s1952_s5  ;;  %s2655_s20 = scalar_lea.vmem %s2654_s18, 256 }
 0x1b6   : > { %p2652_p9 = pneg %p2651_p8  ;;  %p2656_p6 = scmp.lt.s32.totalorder %s3483_s1, %s2654_s18 }
 0x1b7   : > { %p2657_p11 = scmp.lt.s32.totalorder %s2655_s20, %s2649_s3 }
 0x1b9   : > { %p2658_p4 = por %p2657_p11, %p2656_p6 }
 0x1bb   : > { %p2659_p10 = pnand %p2658_p4, %p2652_p9 }
 0x21d   : > { %v903_v6 = vpop.permute.xlu0 %902 }
 0x21e   : > { %v908_v7 = vsel %vm765_vm1, %v903_v6, 0  ;;  %v1045_v8 = vpop.permute.xlu1 %1044 }
 0x21f   : > { %1995 = vmatpush3.bf16.xpose.msra.mxu1 %v908_v7  ;;  %v1050_v10 = vsel %vm765_vm1, %v1045_v8, 0 }
 0x220   : > { %2006 = vmatprep.subr.bf16.mxu1 %v2772_v0 }
 0x221   : > { %v898_v9 = vpop.permute.xlu0 %897 }
 0x222   : > { %v1043_v12 = vpop.permute.xlu1 %1042 }
 0x225   : > { %v1184_v11 = vpop.permute.xlu0 %1183 }
 0x226   : > { %1997 = vmatmul.mubr.msk.bf16.vlgmr.msra.gmra.mrb[0].mxu1 %vm765_vm1, %v898_v9  ;;  %v1189_v13 = vsel %vm765_vm1, %v1184_v11, 0  ;;  %v1182_v14 = vpop.permute.xlu1 %1181 }
 0x227   : > { %2007 = vmatpush3.bf16.xpose.msra.mxu1 %v1050_v10  ;;  %2008 = vmatprep.mubr.msk.bf16.mxu1 %vm2773_vm0, %v2772_v0 }
 0x228   : > { %2018 = vmatprep.subr.bf16.mxu1 %v2772_v0 }
 0x22e   : > { %2009 = vmatmul.mubr.msk.bf16.vlgmr.msra.gmra.mrb[4].mxu1 %vm765_vm1, %v1043_v12 }
 0x22f   : > { %2019 = vmatpush3.bf16.xpose.msra.mxu1 %v1189_v13  ;;  %2020 = vmatprep.mubr.msk.bf16.mxu1 %vm2773_vm0, %v2772_v0 }
 0x230   : > { %2030 = vmatprep.subr.bf16.mxu1 %v2772_v0 }
 0x236   : > { %2021 = vmatmul.mubr.msk.bf16.vlgmr.msra.gmra.mrb[8].mxu1 %vm765_vm1, %v1182_v14 }
 0x237   : > { %2034 = vmatprep.mubr.msk.bf16.mxu1 %vm2773_vm0, %v2772_v0 }
 0x285   : > { %v806_v22 = vpop.f32.mrb[0].mxu0 }
 0x286   : > { %v3359_v23 = vadd.f32 %v806_v22, %v763_v21  ;;  %v1986_v24 = vpop.f32.mrb[1].mxu0 }
 0x287   : > { %v809_v25 = vpop.f32.mrb[2].mxu0 }
 0x288   : > { %v813_v26 = vsel %vm765_vm1, %v3359_v23, -inf  ;;  %v1987_v27 = vpop.f32.mrb[3].mxu0 }
 0x289   : > { %814 = vmax.xlane.f32.xlu0 %v813_v26 }
 0x2f9   : > { %v944_v30 = vpop.f32.mrb[0].mxu1 }
 0x2fa   : > { %v3375_v31 = vadd.f32 %v944_v30, %v763_v21  ;;  %v1998_v32 = vpop.f32.mrb[1].mxu1 }
 0x2fb   : > { %v947_v33 = vpop.f32.mrb[2].mxu1 }
 0x2fc   : > { %v1999_v34 = vpop.f32.mrb[3].mxu1  ;;  %v952_v35 = vsel %vm765_vm1, %v3375_v31, -inf }
 0x2fd   : > { %953 = vmax.xlane.f32.xlu1 %v952_v35 }
 0x301   : > { %v1086_v36 = vpop.f32.mrb[4].mxu1 }
 0x302   : > { %v1087_v37 = vadd.f32 %v1086_v36, %v763_v21  ;;  %v2010_v38 = vpop.f32.mrb[5].mxu1 }
 0x303   : > { %v1089_v39 = vpop.f32.mrb[6].mxu1 }
 0x304   : > { %v2011_v40 = vpop.f32.mrb[7].mxu1  ;;  %v1094_v41 = vsel %vm765_vm1, %v1087_v37, -inf }
 0x305   : > { %1095 = vmax.xlane.f32.xlu0 %v1094_v41  ;;  %v828_v41 = vld [vmem:[#allocation3] sm:$0xff] }
 0x309   : > { %v1225_v42 = vpop.f32.mrb[8].mxu1 }
 0x30a   : > { %v3380_v43 = vadd.f32 %v1225_v42, %v763_v21  ;;  %v2022_v44 = vpop.f32.mrb[9].mxu1 }
 0x30b   : > { %v1228_v45 = vpop.f32.mrb[10].mxu1 }
 0x30c   : > { %v2023_v46 = vpop.f32.mrb[11].mxu1  ;;  %v1233_v47 = vsel %vm765_vm1, %v3380_v43, -inf }
 0x30d   : > { %1234 = vmax.xlane.f32.xlu0 %v1233_v47 }
 0x316   : > { %v815_v49 = vpop.xlane.xlu0 %814 }
 0x317   : > { %v3387_v50 = vmax.f32 %v3384_v48, %v815_v49 }
 0x319   : > { %v817_v51 = vsub.f32 %v3384_v48, %v3387_v50  ;;  %893 = vst.msk [vmem:[#allocation2] sm:$0xff] %vm742_vm3, %v3387_v50  ;;  %822 = vperm.xlu1 %2234, %v3387_v50  }
 0x31b   : > { %v818_v27 = vmul.f32 1.442695, %v817_v51 }
 0x38a   : > { %v954_v55 = vpop.xlane.xlu1 %953 }
 0x38b   : > { %v3401_v56 = vmax.f32 %v3398_v54, %v954_v55 }
 0x38d   : > { %v956_v57 = vsub.f32 %v3398_v54, %v3401_v56  ;;  %1041 = vst.msk [vmem:[#allocation2 + $0x8] sm:$0xff] %vm742_vm3, %v3401_v56  ;;  %961 = vperm.xlu0 %2235, %v3401_v56   ;;  %v1110_v56 = vld [vmem:[#allocation3 + $0x10] sm:$0xff] }
 0x38f   : > { %v957_v32 = vmul.f32 1.442695, %v956_v57  ;;  %v836_v57 = vld [vmem:[#allocation4] sm:$0xff] }
 0x392   : > { %v1096_v59 = vpop.xlane.xlu0 %1095 }
 0x393   : > { %v1097_v60 = vmax.f32 %v3408_v58, %v1096_v59 }
 0x395   : > { %v1098_v61 = vsub.f32 %v3408_v58, %v1097_v60  ;;  %1180 = vst.msk [vmem:[#allocation2 + $0x10] sm:$0xff] %vm742_vm3, %v1097_v60  ;;  %1103 = vperm.xlu1 %2234, %v1097_v60  }
 0x397   : > { %v1099_v33 = vmul.f32 1.442695, %v1098_v61 }
 0x398   : > { %v823_v63 = vpop.permute.xlu1 %822 }
 0x399   : > { %v825_v1 = vsub.f32 %v3359_v23, %v823_v63  ;;  %986 = vrot.lane.b32.xlu1 %v1929_v62, %s2774_s14 }
 0x39a   : > { %v1235_v4 = vpop.xlane.xlu0 %1234 }
 0x39b   : > { %v826_v3 = vmul.f32 1.442695, %v825_v1  ;;  %v1236_v5 = vmax.f32 %v1232_v2, %v1235_v4  ;;  %v1249_v4 = vld [vmem:[#allocation3 + $0x18] sm:$0xff] }
 0x39d   : > { %2247 = vpow2.f32 %v826_v3  ;;  %v1237_v6 = vsub.f32 %v1232_v2, %v1236_v5  ;;  %1319 = vst.msk [vmem:[#allocation2 + $0x18] sm:$0xff] %vm742_vm3, %v1236_v5  ;;  %1242 = vperm.xlu1 %2234, %v1236_v5  }
 0x39f   : > { %v1238_v35 = vmul.f32 1.442695, %v1237_v6 }
 0x3a1   : > { %1125 = vrot.lane.b32.xlu1 %v1929_v62, %s2775_s23 }
 0x3a5   : > { %1264 = vrot.lane.b32.xlu1 %v1929_v62, %s2776_s2 }
 0x3a7   : > { %v2248_v7 = vpop.eup %2247 }
 0x3a8   : > { %v843_v8 = vpack.c.bf16 %v2248_v7, %v2248_v7  ;;  %v830_v9 = vsel %vm765_vm1, %v2248_v7, 0.0 }
 0x3aa   : > { %1991 = vmatmul.mubr.msk.bf16.vlgmr.msra.gmra.mrb[4].mxu0 %vm765_vm1, %v843_v8 }
 0x3ab   : > { %2002 = vmatprep.mubr.msk.bf16.mxu0 %vm2773_vm0, %v2772_v0 }
 0x3c9   : > { %831 = vadd.xlane.f32.xlu1 %v830_v9 }
 0x40c   : > { %v962_v10 = vpop.permute.xlu0 %961 }
 0x40d   : > { %v964_v11 = vsub.f32 %v3375_v31, %v962_v10 }
 0x40f   : > { %v965_v12 = vmul.f32 1.442695, %v964_v11 }
 0x411   : > { %2249 = vpow2.f32 %v965_v12 }
 0x414   : > { %v1104_v13 = vpop.permute.xlu1 %1103 }
 0x415   : > { %v1106_v14 = vsub.f32 %v1087_v37, %v1104_v13 }
 0x417   : > { %v1107_v15 = vmul.f32 1.442695, %v1106_v14 }
 0x418   : > { %v987_v16 = vpop.permute.xlu1 %986 }
 0x419   : > { %2251 = vpow2.f32 %v1107_v15  ;;  %v992_v17 = vsel %vm847_vm4, %v987_v16, 0 }
 0x41a   : > { %2001 = vmatpush3.bf16.msra.mxu0 %v992_v17 }
 0x41b   : > { %v2250_v18 = vpop.eup %2249  ;;  %2012 = vmatprep.subr.bf16.mxu0 %v2772_v0 }
 0x41c   : > { %v1243_v19 = vpop.permute.xlu1 %1242  ;;  %v970_v20 = vsel %vm765_vm1, %v2250_v18, 0.0  ;;  %v982_v21 = vpack.c.bf16 %v2250_v18, %v2250_v18 }
 0x41d   : > { %v1245_v22 = vsub.f32 %v3380_v43, %v1243_v19  ;;  %971 = vadd.xlane.f32.xlu0 %v970_v20 }
 0x41e   : > { %2003 = vmatmul.mubr.msk.bf16.vlgmr.msra.gmra.mrb[8].mxu0 %vm765_vm1, %v982_v21 }
 0x41f   : > { %v1246_v23 = vmul.f32 1.442695, %v1245_v22  ;;  %2014 = vmatprep.mubr.msk.bf16.mxu0 %vm2773_vm0, %v2772_v0 }
 0x420   : > { %v1126_v24 = vpop.permute.xlu1 %1125 }
 0x421   : > { %2253 = vpow2.f32 %v1246_v23  ;;  %v1131_v25 = vsel %vm847_vm4, %v1126_v24, 0  ;;  %v2239_v24 = vld [vmem:[#allocation14] sm:$0xff]  }
 0x422   : > { %2013 = vmatpush3.bf16.msra.mxu0 %v1131_v25  ;;  %2255 = vpow2.f32 %v818_v27  ;;  %2031 = vmatpush3.bf16.msra.mxu1 %v2239_v24  ;;  %v2240_v25 = vld [vmem:[#allocation14 + $0x8] sm:$0xff]   ;;  %v2245_v24 = vld [vmem:[#allocation23 + $0x10] sm:$0xff]  }
 0x423   : > { %v2252_v26 = vpop.eup %2251  ;;  %2024 = vmatprep.subr.bf16.mxu0 %v2772_v0  ;;  %2257 = vpow2.f32 %v957_v32  ;;  %2032 = vmatprep.subr.bf16.mxu1 %v2772_v0 }
 0x424   : > { %v1112_v28 = vsel %vm765_vm1, %v2252_v26, 0.0  ;;  %v1124_v29 = vpack.c.bf16 %v2252_v26, %v2252_v26  ;;  %v1265_v30 = vpop.permute.xlu1 %1264  ;;  %2259 = vpow2.f32 %v1099_v33 }
 0x425   : > { %1113 = vadd.xlane.f32.xlu1 %v1112_v28  ;;  %v1270_v31 = vsel %vm847_vm4, %v1265_v30, 0  ;;  %2261 = vpow2.f32 %v1238_v35 }
 0x426   : > { %2015 = vmatmul.mubr.msk.bf16.vlgmr.msra.gmra.mrb[12].mxu0 %vm765_vm1, %v1124_v29  ;;  %2033 = vmatpush3.bf16.msra.mxu1 %v2240_v25  ;;  %v2246_v25 = vld [vmem:[#allocation23 + $0x18] sm:$0xff]  }
 0x427   : > { %2025 = vmatpush3.bf16.msra.mxu0 %v1270_v31  ;;  %2026 = vmatprep.mubr.msk.bf16.mxu0 %vm2773_vm0, %v2772_v0 }
 0x428   : > { %2038 = vmatprep.subr.bf16.mxu0 %v2772_v0  ;;  %2046 = vmatprep.subr.bf16.mxu1 %v2772_v0 }
 0x42b   : > { %v2254_v34 = vpop.eup %2253 }
 0x42c   : > { %v1263_v36 = vpack.c.bf16 %v2254_v34, %v2254_v34  ;;  %v2256_v37 = vpop.eup %2255  ;;  %v1251_v45 = vsel %vm765_vm1, %v2254_v34, 0.0 }
 0x42d   : > { %v2258_v38 = vpop.eup %2257  ;;  %v829_v42 = vmul.f32 %v2256_v37, %v828_v41 }
 0x42e   : > { %2027 = vmatmul.mubr.msk.bf16.vlgmr.msra.gmra.mrb[16].mxu0 %vm765_vm1, %v1263_v36  ;;  %v2260_v39 = vpop.eup %2259  ;;  %v969_v53 = vmul.f32 %v2258_v38, %v968_v52 }
 0x42f   : > { %2042 = vmatprep.mubr.msk.bf16.mxu0 %vm2773_vm0, %v2772_v0  ;;  %v2262_v40 = vpop.eup %2261  ;;  %v1111_v58 = vmul.f32 %v2260_v39, %v1110_v56  ;;  %v1938_v56 = vld [vmem:[#allocation16] ss:$0 sm:$0xff] }
 0x430   : > { %v1250_v5 = vmul.f32 %v2262_v40, %v1249_v4 }
 0x433   : > { %839 = vperm.xlu0 %2235, %v2256_v37  }
 0x436   : > { %978 = vperm.xlu1 %2234, %v2258_v38  }
 0x437   : > { %1120 = vperm.xlu0 %2235, %v2260_v39  }
 0x43b   : > { %1259 = vperm.xlu0 %2235, %v2262_v40  }
 0x456   : > { %v832_v43 = vpop.xlane.xlu1 %831 }
 0x457   : > { %v833_v44 = vadd.f32 %v832_v43, %v829_v42 }
 0x459   : > { %835 = vst.msk [vmem:[#allocation3] sm:$0xff] %vm742_vm3, %v833_v44 }
 0x45a   : > { %1252 = vadd.xlane.f32.xlu1 %v1251_v45 }
 0x460   : > { %v1323_v46 = vld [vmem:[#allocation3] sm:$0xff] }
 0x461   : > { %2263 = vrcp.f32 %v1323_v46 }
 0x46b   : > { %v2264_v47 = vpop.eup %2263 }
 0x46c   : > { %1328 = vperm.xlu0 %2235, %v2264_v47  }
 0x47d   : > { %v885_v48 = vpop.f32.mrb[4].mxu0 }
 0x47e   : > { %v1992_v49 = vpop.f32.mrb[5].mxu0 }
 0x47f   : > { %v888_v50 = vpop.f32.mrb[6].mxu0 }
 0x480   : > { %v1993_v51 = vpop.f32.mrb[7].mxu0 }
 0x4aa   : > { %v972_v54 = vpop.xlane.xlu0 %971 }
 0x4ab   : > { %v973_v55 = vadd.f32 %v972_v54, %v969_v53  ;;  %v1425_v54 = vld [vmem:[%s3287_s19] sm:$0xff] }
 0x4ad   : > { %974 = vst.msk [vmem:[#allocation3 + $0x8] sm:$0xff] %vm742_vm3, %v973_v55 }
 0x4b2   : > { %v1114_v59 = vpop.xlane.xlu1 %1113  ;;  %v840_v60 = vpop.permute.xlu0 %839 }
 0x4b3   : > { %v1115_v61 = vadd.f32 %v1114_v59, %v1111_v58  ;;  %v842_v62 = vmul.f32 %v840_v60, %v836_v57 }
 0x4b4   : > { %v1333_v12 = vld [vmem:[#allocation3 + $0x8] sm:$0xff] }
 0x4b5   : > { %1116 = vst.msk [vmem:[#allocation3 + $0x10] sm:$0xff] %vm742_vm3, %v1115_v61  ;;  %v891_v63 = vadd.f32 %v885_v48, %v842_v62 }
 0x4b6   : > { %v979_v3 = vpop.permute.xlu1 %978  ;;  %v1121_v30 = vpop.permute.xlu0 %1120 }
 0x4b7   : > { %892 = vst.msk [vmem:[#allocation4] sm:$0xff] %vm765_vm1, %v891_v63 }
 0x4ba   : > { %v1260_v35 = vpop.permute.xlu0 %1259 }
 0x4bc   : > { %v1343_v1 = vld [vmem:[#allocation3 + $0x10] sm:$0xff] }
 0x4bd   : > { %2265 = vrcp.f32 %v1343_v1 }
 0x4be   : > { %2267 = vrcp.f32 %v1333_v12  ;;  %v975_v26 = vld [vmem:[#allocation4] sm:$0xff] }
 0x4bf   : > { %v981_v27 = vmul.f32 %v979_v3, %v975_v26  ;;  %v1941_v26 = vld [vmem:[#allocation22] ss:$0 sm:$0xff] }
 0x4c7   : > { %v2266_v2 = vpop.eup %2265 }
 0x4c8   : > { %1348 = vperm.xlu0 %2235, %v2266_v2   ;;  %v2268_v22 = vpop.eup %2267 }
 0x4e7   : > { %v1253_v6 = vpop.xlane.xlu1 %1252 }
 0x4e8   : > { %v1254_v7 = vadd.f32 %v1253_v6, %v1250_v5  ;;  %v2241_v5 = vld [vmem:[#allocation20] sm:$0xff]   ;;  %v2242_v6 = vld [vmem:[#allocation20 + $0x8] sm:$0xff]  }
 0x4e9   : > { %2039 = vmatpush3.bf16.msra.mxu0 %v2241_v5 }
 0x4ea   : > { %1255 = vst.msk [vmem:[#allocation3 + $0x18] sm:$0xff] %vm742_vm3, %v1254_v7  ;;  %2040 = vmatprep.subr.bf16.mxu0 %v2772_v0  ;;  %v2243_v7 = vld [vmem:[#allocation23] sm:$0xff]  }
 0x4eb   : > { %v1329_v40 = vpop.permute.xlu0 %1328 }
 0x4ed   : > { %2041 = vmatpush3.bf16.msra.mxu0 %v2242_v6 }
 0x4f1   : > { %v1028_v8 = vpop.f32.mrb[8].mxu0  ;;  %v1353_v17 = vld [vmem:[#allocation3 + $0x18] sm:$0xff] }
 0x4f2   : > { %v2004_v9 = vpop.f32.mrb[9].mxu0  ;;  %1035 = vrot.lane.b32.xlu1 %v1028_v8, %s2780_s9  ;;  %2269 = vrcp.f32 %v1353_v17  ;;  %v2244_v8 = vld [vmem:[#allocation23 + $0x8] sm:$0xff]  }
 0x4f3   : > { %v1031_v10 = vpop.f32.mrb[10].mxu0  ;;  %v1939_v17 = vld [vmem:[#allocation17] ss:$0 sm:$0xff] }
 0x4f4   : > { %v2005_v11 = vpop.f32.mrb[11].mxu0 }
 0x4f9   : > { %v1167_v13 = vpop.f32.mrb[12].mxu0 }
 0x4fa   : > { %1174 = vrot.lane.b32.xlu1 %v1167_v13, %s2781_s7  ;;  %v2016_v14 = vpop.f32.mrb[13].mxu0 }
 0x4fb   : > { %v1170_v15 = vpop.f32.mrb[14].mxu0 }
 0x4fc   : > { %v2017_v16 = vpop.f32.mrb[15].mxu0  ;;  %v2270_v23 = vpop.eup %2269 }
 0x501   : > { %v1306_v18 = vpop.f32.mrb[16].mxu0 }
 0x502   : > { %1313 = vrot.lane.b32.xlu1 %v1306_v18, %s2782_s17  ;;  %v2028_v19 = vpop.f32.mrb[17].mxu0 }
 0x503   : > { %v1309_v20 = vpop.f32.mrb[18].mxu0 }
 0x504   : > { %v2029_v21 = vpop.f32.mrb[19].mxu0  ;;  %v1940_v20 = vld [vmem:[#allocation19] ss:$0 sm:$0xff] }
 0x506   : > { %1338 = vperm.xlu1 %2234, %v2268_v22  }
 0x50a   : > { %1358 = vperm.xlu1 %2234, %v2270_v23  }
 0x547   : > { %v1349_v46 = vpop.permute.xlu0 %1348 }
 0x564   : > { %v1036_v28 = vpop.permute.xlu1 %1035 }
 0x565   : > { %v1038_v29 = vadd.f32 %v1036_v28, %v981_v27 }
 0x567   : > { %1040 = vst.msk [vmem:[#allocation4] sm:$0xff] %vm1039_vm6, %v1038_v29 }
 0x56c   : > { %v1175_v33 = vpop.permute.xlu1 %1174 }
 0x56e   : > { %v1117_v31 = vld [vmem:[#allocation4] sm:$0xff] }
 0x56f   : > { %v1123_v32 = vmul.f32 %v1121_v30, %v1117_v31 }
 0x571   : > { %v1177_v34 = vadd.f32 %v1175_v33, %v1123_v32 }
 0x573   : > { %1179 = vst.msk [vmem:[#allocation4] sm:$0xff] %vm1178_vm7, %v1177_v34 }
 0x574   : > { %v1314_v38 = vpop.permute.xlu1 %1313 }
 0x57a   : > { %v1256_v36 = vld [vmem:[#allocation4] sm:$0xff] }
 0x57b   : > { %v1262_v37 = vmul.f32 %v1260_v35, %v1256_v36  ;;  %v1950_v35 = vld [vmem:[#allocation25] ss:$0 sm:$0xff] }
 0x57d   : > { %v1316_v39 = vadd.f32 %v1314_v38, %v1262_v37 }
 0x57f   : > { %1318 = vst.msk [vmem:[#allocation4] sm:$0xff] %vm1317_vm8, %v1316_v39 }
 0x585   : > { %v1339_v43 = vpop.permute.xlu1 %1338 }
 0x586   : > { %v1325_v41 = vld [vmem:[#allocation4] sm:$0xff] }
 0x587   : > { %v1331_v42 = vmul.f32 %v1329_v40, %v1325_v41 }
 0x589   : > { %1332 = vst.msk [vmem:[#allocation4] sm:$0xff] %vm765_vm1, %v1331_v42  ;;  %v1359_v49 = vpop.permute.xlu1 %1358 }
 0x590   : > { %v1335_v44 = vld [vmem:[#allocation4] sm:$0xff] }
 0x591   : > { %v1341_v45 = vmul.f32 %v1339_v43, %v1335_v44 }
 0x593   : > { %1342 = vst.msk [vmem:[#allocation4] sm:$0xff] %vm1039_vm6, %v1341_v45 }
 0x59a   : > { %v1345_v47 = vld [vmem:[#allocation4] sm:$0xff] }
 0x59b   : > { %v1351_v48 = vmul.f32 %v1349_v46, %v1345_v47 }
 0x59d   : > { %1352 = vst.msk [vmem:[#allocation4] sm:$0xff] %vm1178_vm7, %v1351_v48 }
 0x5a4   : > { %v1355_v50 = vld [vmem:[#allocation4] sm:$0xff] }
 0x5a5   : > { %v1361_v51 = vmul.f32 %v1359_v49, %v1355_v50 }
 0x5a7   : > { %1362 = vst.msk [vmem:[#allocation4] sm:$0xff] %vm1317_vm8, %v1361_v51 }
 0x5ae   : > { %v1363_v52 = vld [vmem:[#allocation4] sm:$0xff] }
 0x5af   : > { %v1364_v53 = vpack.c.bf16 %v1363_v52, %v1363_v52 }
 0x5b1   : > { %2035 = vmatmul.mubr.msk.bf16.vlgmr.msra.gmra.mrb[12].mxu1 %vm751_vm5, %v1364_v53 }
 0x5b2   : > { %2054 = vmatprep.mubr.msk.bf16.mxu1 %vm2773_vm0, %v2772_v0  ;;  %2047 = vmatpush3.bf16.msra.mxu1 %v2243_v7 }
 0x5b3   : > { %2048 = vmatprep.subr.bf16.mxu1 %v2772_v0 }
 0x5b6   : > { %2049 = vmatpush3.bf16.msra.mxu1 %v2244_v8 }
 0x5b7   : > { %2050 = vmatprep.subr.bf16.mxu1 %v2772_v0 }
 0x5ba   : > { %2051 = vmatpush3.bf16.msra.mxu1 %v2245_v24 }
 0x5bb   : > { %2052 = vmatprep.subr.bf16.mxu1 %v2772_v0 }
 0x5be   : > { %2053 = vmatpush3.bf16.msra.mxu1 %v2246_v25 }
 0x684   : > { %v1419_v55 = vpop.f32.mrb[12].mxu1 }
 0x685   : > { %v1426_v57 = vadd.f32 %v1425_v54, %v1419_v55  ;;  %v2036_v58 = vpop.f32.mrb[13].mxu1 }
 0x686   : > { %v1422_v59 = vpop.f32.mrb[14].mxu1 }
 0x687   : > { %v1434_v60 = vadd.f32 %v1938_v56, %v1426_v57  ;;  %v2037_v61 = vpop.f32.mrb[15].mxu1 }
 0x689   : > { %v1437_v62 = vsel %vm751_vm5, %v1434_v60, 0.0 }
 0x68a   : > { %1438 = vadd.xlane.f32.xlu0 %v1437_v62 }
 0x717   : > { %v1439_v63 = vpop.xlane.xlu0 %1438 }
 0x718   : > { %v1441_v1 = vmul.f32 0.03125, %v1439_v63 }
 0x71a   : > { %v1442_v2 = vsub.f32 %v1434_v60, %v1441_v1 }
 0x71c   : > { %v1443_v3 = vmul.f32 %v1442_v2, %v1442_v2  ;;  %v1464_v18 = vmul.f32 %v1939_v17, %v1442_v2 }
 0x71e   : > { %v1444_v4 = vsel %vm751_vm5, %v1443_v3, 0.0 }
 0x71f   : > { %1445 = vadd.xlane.f32.xlu1 %v1444_v4 }
 0x7ac   : > { %v1446_v9 = vpop.xlane.xlu1 %1445 }
 0x7ad   : > { %v1447_v10 = vmul.f32 0.03125, %v1446_v9 }
 0x7af   : > { %2271 = vrsqrt.f32 %v1447_v10  ;;  %vm1450_vm9 = vcmp.eq.f32.partialorder %v1447_v10, inf  ;;  %v1453_v13 = vand.u32 2147483648, %v1447_v10  ;;  %vm1452_vm10 = vcmp.eq.f32.partialorder %v1447_v10, 0.0 }
 0x7b9   : > { %v2272_v11 = vpop.eup %2271 }
 0x7ba   : > { %v1449_v12 = vmul.f32 %v2272_v11, %v1447_v10 }
 0x7bc   : > { %v1451_v14 = vsel %vm1450_vm9, %v1447_v10, %v1449_v12 }
 0x7bd   : > { %v1454_v15 = vsel %vm1452_vm10, %v1453_v13, %v1451_v14 }
 0x7be   : > { %v1455_v16 = vadd.f32 1e-06, %v1454_v15 }
 0x7c0   : > { %2273 = vrcp.f32 %v1455_v16 }
 0x7ca   : > { %v2274_v19 = vpop.eup %2273 }
 0x7cb   : > { %v1465_v21 = vmul.f32 %v2274_v19, %v1464_v18 }
 0x7cd   : > { %v1472_v22 = vadd.f32 %v1940_v20, %v1465_v21 }
 0x7cf   : > { %v1473_v23 = vpack.c.bf16 %v1472_v22, %v1472_v22 }
 0x7d1   : > { %2043 = vmatmul.mubr.msk.bf16.vlgmr.msra.gmra.mrb[20].mxu0 %vm751_vm5, %v1473_v23 }
 0x8a4   : > { %v1534_v27 = vpop.f32.mrb[20].mxu0 }
 0x8a5   : > { %v1535_v28 = vadd.f32 %v1941_v26, %v1534_v27  ;;  %v2044_v29 = vpop.f32.mrb[21].mxu0 }
 0x8a6   : > { %v1537_v30 = vpop.f32.mrb[22].mxu0 }
 0x8a7   : > { %v1540_v31 = vmax.f32 %v1535_v28, 0.0  ;;  %v2045_v32 = vpop.f32.mrb[23].mxu0 }
 0x8a9   : > { %v1541_v33 = vpack.c.bf16 %v1540_v31, %v1540_v31 }
 0x8ab   : > { %2055 = vmatmul.mubr.msk.bf16.vlgmr.msra.gmra.mrb[16].mxu1 %vm1574_vm11, %v1541_v33 }
 0x97e   : > { %v1612_v34 = vpop.f32.mrb[16].mxu1 }
 0x97f   : > { %v1618_v0 = vadd.f32 %v1612_v34, %v1434_v60  ;;  %v2056_v36 = vpop.f32.mrb[17].mxu1 }
 0x980   : > { %v1615_v37 = vpop.f32.mrb[18].mxu1 }
 0x981   : > { %v1626_v38 = vadd.f32 %v1950_v35, %v1618_v0  ;;  %v2057_v39 = vpop.f32.mrb[19].mxu1 }
 0x983   : > { %1627 = vst.msk [vmem:[%s736_s4] sm:$0xff] %vm751_vm5, %v1626_v38 }
 0x984   : > { %2662 = shalt.err (!%p2659_p10)
}
 0x985   : > { %s2663_s11 = scalar_lea.hbm %s3481_s21, 128  ;;  %s2667_s23 = scalar_lea.hbm %s3626_s22, 256 }
 0x986   : > { %p2664_p0 = scmp.ne.s32.totalorder %s3481_s21, %s2663_s11  ;;  %p2668_p1 = scmp.lt.u32.totalorder %s3481_s21, %s3626_s22 }
 0x987   : > { %p2669_p3 = scmp.lt.u32.totalorder %s2667_s23, %s2663_s11  ;;  %p2671_p13 = scmp.lt.u32.totalorder %s2663_s11, %s3481_s21 }
 0x988   : > { %p2665_p5 = pnand %p2664_p0, %p3627_p12 }
 0x989   : > { %p2670_p2 = por %p2669_p3, %p2668_p1 }
 0x98a   : > { %p2666_p7 = pneg %p2665_p5 }
 0x98b   : > { %p2672_p8 = por %p2671_p13, %p2670_p2 }
 0x98d   : > { %p2673_p9 = pnand %p2672_p8, %p2666_p7 }
 0x98f   : > { %2676 = shalt.err (!%p2673_p9)
}
 0x990   : > { %2100 = dma.vmem_to_hbm [thread:$0]  (%p3627_p12), %s3483_s1, 128, %s3481_s21, %s1629_s15  }
 0x991 PF: > { %s3628_s7 = sld [smem:[#allocation35_spill]]  ;;  %s3629_s17 = sld [smem:[#allocation41_spill]] }
 0x992   : > { %p3631_p11 = scmp.ge.s32.totalorder %s2755_s30, 2 }
 0x997   : > { %s1655_s28 = sand.u32 1, %s3628_s7   ;;  %p3630_p6 = scmp.ne.s32.totalorder %s3629_s17, 0 }
 0x998   : > { %s1656_s5 = scalar_lea.sflag [#allocation7], %s1655_s28 }
 0x999   : > { %p2144_p4 = pnand %p3631_p11, %p3630_p6 }
 0x99b   : > { %2730 = dma.done.wait (!%p2144_p4), %s1656_s5, 128  }
 0x99c   : > { %2732 = vsyncadd (!%p2144_p4), %s1656_s5, 4294967168  ;;  %s39_s30 = sadd.s32 1, %s2755_s30   ;;  %s3632_s4 = sld [smem:[#allocation36_spill]] }
 0x99d   : > { %p36_p10 = scmp.ge.s32.totalorder %s39_s30, 4   ;;  %s3633_s27 = sld [smem:[#allocation40_spill]] }
 0x99e   : > { %s3634_s12 = sld [smem:[#allocation39_spill]]  ;;  %s3635_s25 = smov %s2739_s26 }
 0x99f   : > { %s3637_s28 = smov %s2751_s29  ;;  %38 = sbr.rel (!%p36_p10) target bundleno = 26 (0x1a), region = 211 }
 0x9a2   : > { %s3636_s26 = smov %s3632_s4 }
 0x9a4   : > { %s3638_s29 = smov %s3634_s12 }
 0x9a6   :  { %1661 = vsyncpa [#allocation6], 1 }
 0x9a7   :  { %1663 = vsyncpa [#allocation6 + $0x1], 1 }
 0x9a8   :  { %1664 = vsyncpa [#allocation9], 1 }
 0x9a9   :  { %1666 = vsyncpa [#allocation9 + $0x1], 1 }
 0x9aa   :  { %1667 = vsyncpa [#allocation12], 1 }
 0x9ab   :  { %1669 = vsyncpa [#allocation12 + $0x1], 1 }
 0x9ac   :  { %1670 = vsyncpa [#allocation15], 1 }
 0x9ad   :  { %1671 = vsyncpa [#allocation18], 1 }
 0x9ae   :  { %1672 = vsyncpa [#allocation21], 1 }
 0x9af   :  { %1673 = vsyncpa [#allocation24], 1 }
 0x9b0   :  { %1674 = vsyncpa [#allocation7], 1 }
 0x9b1   :  { %1676 = vsyncpa [#allocation7 + $0x1], 1 }

</bundles_post_ra>
